<compile_context>
chip_gen: v7x
topology: tpu7x:2x2x1
jax: 0.10.0
libtpu: 0.0.40
codegen_flags: <defaults>
</compile_context>

<pallas_src>
import functools

import jax
import jax.numpy as jnp
from jax import lax
from jax.experimental import pallas as pl
from jax.experimental.pallas import tpu as pltpu


def _bottleneck_kernel(x_ref, w1_ref, b1_ref, w2_ref, b2_ref, w3_ref, b3_ref,
                       out_ref, col_ref, *, H, W, NB):
    HW = H * W
    HPW = (H + 2) * W                   # rows per image incl. 1-row zero halos
    M = NB * HW                         # spatial positions in this batch block
    P = w1_ref.shape[-1]                # planes
    Cout = w3_ref.shape[-1]             # planes * 4 == Cin
    Cin = x_ref.shape[-1]

    # Zero only the one-row halos of the im2col scratch; the interior is fully
    # rewritten every step.  Re-zeroed each step (cheap) so this stays correct
    # if the "parallel" batch axis is split across TensorCores.
    halo = jnp.zeros((NB, W, 3 * P), dtype=col_ref.dtype)
    col_ref[:, 0:W, :] = halo
    col_ref[:, W + HW:HPW, :] = halo

    x_flat = x_ref[...].reshape(M, Cin)                       # (M, Cin) bf16

    # ---- conv1 (1x1, BN scale folded) + bias + relu ------------------------
    h1 = jnp.dot(x_flat, w1_ref[...], preferred_element_type=jnp.float32)
    h1 = jnp.maximum(h1 + b1_ref[...], 0.0)                   # (M, P) f32

    # ---- conv2 (3x3, stride 1, SAME) + bias + relu --------------------------
    # dw = +-1 shifts via pltpu.roll on the flat spatial axis + boundary mask.
    # All cross-row / cross-image wrap positions are exactly the masked ones
    # (jcol == 0 or jcol == W-1), so rolling across the whole NB*HW axis is
    # safe.  Kept in f32 for v5e portability; one bf16 cast at the store.
    jcol = lax.broadcasted_iota(jnp.int32, (M, 1), 0) % W
    left = jnp.where(jcol > 0, pltpu.roll(h1, shift=1, axis=0), 0.0)
    right = jnp.where(jcol < W - 1, pltpu.roll(h1, shift=M - 1, axis=0), 0.0)

    # Single lane-dense (M, 3P) store of the im2col center block.
    cat = jnp.concatenate([left, h1, right], axis=-1).astype(col_ref.dtype)
    col_ref[:, W:W + HW, :] = cat.reshape(NB, HW, 3 * P)

    # One fused matmul over all (H+2)*W rows with MXU N = 3P (kh folded into
    # the output axis), then sum the three kh groups with their +-1 row shift.
    col = col_ref[...].reshape(NB * HPW, 3 * P)
    y = jnp.dot(col, w2_ref[...], preferred_element_type=jnp.float32)
    y = y.reshape(NB, HPW, 3 * P)
    acc = (y[:, 0:HW, 0:P]                          # kh = 0 (input row h-1)
           + y[:, W:W + HW, P:2 * P]                # kh = 1 (same row)
           + y[:, 2 * W:2 * W + HW, 2 * P:3 * P])   # kh = 2 (input row h+1)
    h2 = jnp.maximum(acc.reshape(M, P) + b2_ref[...], 0.0)    # (M, P) f32

    # ---- conv3 (1x1, BN scale folded) + bias --------------------------------
    # NOTE: h1/h2 pass through one bf16 rounding before the next MXU matmul;
    # this is an intentional perf/accuracy tradeoff vs a pure-f32 reference.
    h3 = jnp.dot(h2.astype(jnp.bfloat16), w3_ref[...],
                 preferred_element_type=jnp.float32) + b3_ref[...]

    # ---- residual add (f32) + relu (downsample is None) ---------------------
    out = jnp.maximum(h3 + x_flat.astype(jnp.float32), 0.0)
    out_ref[...] = out.reshape(NB, HW, Cout).astype(out_ref.dtype)


def _pick_batch_block(N, H, W, Cin, P, budget_bytes=6 * 1024 * 1024):
    """Largest divisor of N whose rough per-step f32 working set fits a budget."""
    per_image = 4 * (H * W * (2 * Cin + 5 * P) + (H + 2) * W * 6 * P)
    nb = min(N, max(1, budget_bytes // max(per_image, 1)))
    while N % nb:
        nb -= 1
    return nb


def bottleneck_forward(x, folded, *, batch_block=None):
    """x: (N, H, W, Cin) NHWC; folded: dict of scale-folded weights + biases."""
    N, H, W, Cin = x.shape
    P = folded["w1f"].shape[-1]
    Cout = folded["w3f"].shape[-1]
    assert Cout == Cin, "identity residual requires inplanes == planes * 4"
    HW = H * W

    NB = batch_block if batch_block is not None else _pick_batch_block(
        N, H, W, Cin, P)
    assert N % NB == 0, "batch_block must divide N"

    # (3, 3, P, P) HWIO -> (3P, 3P): contraction dim (kw, cin), output (kh, cout).
    w2r = folded["w2f"].reshape(3, 3 * P, P)
    w2cat = jnp.concatenate([w2r[0], w2r[1], w2r[2]], axis=-1)

    # Present activations as lane-dense (N, H*W, C) slabs.
    x2 = x.reshape(N, HW, Cin).astype(jnp.bfloat16)

    kernel = functools.partial(_bottleneck_kernel, H=H, W=W, NB=NB)

    def run(single_buffer_weights):
        def cspec(shape):
            # Grid-invariant operands: no double-buffered constant copies.
            if single_buffer_weights:
                return pl.BlockSpec(shape, lambda n: (0, 0),
                                    pipeline_mode=pl.Buffered(1))
            return pl.BlockSpec(shape, lambda n: (0, 0))

        return pl.pallas_call(
            kernel,
            out_shape=jax.ShapeDtypeStruct((N, HW, Cout), jnp.bfloat16),
            grid_spec=pltpu.PrefetchScalarGridSpec(
                num_scalar_prefetch=0,
                grid=(N // NB,),
                in_specs=[
                    pl.BlockSpec((NB, HW, Cin), lambda n: (n, 0, 0)),   # x
                    cspec((Cin, P)),                                    # w1*s1
                    cspec((1, P)),                                      # b1
                    cspec((3 * P, 3 * P)),                              # w2*s2
                    cspec((1, P)),                                      # b2
                    cspec((P, Cout)),                                   # w3*s3
                    cspec((1, Cout)),                                   # b3
                ],
                out_specs=pl.BlockSpec((NB, HW, Cout), lambda n: (n, 0, 0)),
                # im2col scratch; one zero halo row per image on each end of H.
                scratch_shapes=[
                    pltpu.VMEM((NB, (H + 2) * W, 3 * P), jnp.bfloat16)],
            ),
            compiler_params=pltpu.CompilerParams(
                dimension_semantics=("parallel",),
                vmem_limit_bytes=48 * 1024 * 1024,
            ),
        )(x2, folded["w1f"], folded["b1"], w2cat, folded["b2"],
          folded["w3f"], folded["b3"])

    try:
        out2 = run(single_buffer_weights=True)
    except Exception:
        # Fallback if this JAX build rejects single-buffered pipeline_mode.
        out2 = run(single_buffer_weights=False)

    return out2.reshape(N, H, W, Cout)


def make_params(key, inplanes, planes, dtype=jnp.float32, eps=1e-5):
    """Deterministic synthetic parameters; BN expressed as (scale, bias)."""
    ks = jax.random.split(key, 12)
    expansion = 4

    def fold_bn(gamma, beta, mean, var):
        scale = gamma / jnp.sqrt(var + eps)
        bias = beta - mean * scale
        return scale.reshape(1, -1).astype(dtype), bias.reshape(1, -1).astype(dtype)

    w1 = (jax.random.normal(ks[0], (inplanes, planes)) * 0.1).astype(dtype)
    s1, b1 = fold_bn(jax.random.normal(ks[1], (planes,)) * 0.1 + 1.0,
                     jax.random.normal(ks[2], (planes,)) * 0.1,
                     jax.random.normal(ks[3], (planes,)) * 0.1,
                     jax.nn.softplus(jax.random.normal(ks[4], (planes,))) + 0.5)

    w2 = (jax.random.normal(ks[5], (3, 3, planes, planes)) * 0.1).astype(dtype)
    s2, b2 = fold_bn(jax.random.normal(ks[6], (planes,)) * 0.1 + 1.0,
                     jax.random.normal(ks[7], (planes,)) * 0.1,
                     jax.random.normal(ks[8], (planes,)) * 0.1,
                     jax.nn.softplus(jax.random.normal(ks[9], (planes,))) + 0.5)

    w3 = (jax.random.normal(ks[10], (planes, planes * expansion)) * 0.1).astype(dtype)
    s3, b3 = fold_bn(jnp.linspace(0.8, 1.2, planes * expansion),
                     jnp.linspace(-0.1, 0.1, planes * expansion),
                     jnp.linspace(-0.05, 0.05, planes * expansion),
                     jnp.linspace(0.5, 1.5, planes * expansion))

    return dict(w1=w1, s1=s1, b1=b1, w2=w2, s2=s2, b2=b2, w3=w3, s3=s3, b3=b3)


def fold_params(params, w_dtype=jnp.bfloat16):
    """Fold BN scales into the conv weights; keep biases in f32."""
    return dict(
        w1f=(params["w1"] * params["s1"]).astype(w_dtype),
        b1=params["b1"].astype(jnp.float32),
        w2f=(params["w2"] * params["s2"].reshape(1, 1, 1, -1)).astype(w_dtype),
        b2=params["b2"].astype(jnp.float32),
        w3f=(params["w3"] * params["s3"]).astype(w_dtype),
        b3=params["b3"].astype(jnp.float32),
    )


def bottleneck_reference(x, folded):
    """Pure-JAX f32 reference built from the same stored (bf16) values."""
    xf = x.astype(jnp.float32)
    w1 = folded["w1f"].astype(jnp.float32)
    w2 = folded["w2f"].astype(jnp.float32)
    w3 = folded["w3f"].astype(jnp.float32)

    h = jnp.einsum("nhwc,cd->nhwd", xf, w1) + folded["b1"]
    h = jax.nn.relu(h)
    h = lax.conv_general_dilated(
        h, w2, window_strides=(1, 1), padding="SAME",
        dimension_numbers=("NHWC", "HWIO", "NHWC")) + folded["b2"]
    h = jax.nn.relu(h)
    h = jnp.einsum("nhwc,cd->nhwd", h, w3) + folded["b3"]
    return jax.nn.relu(h + xf)


if __name__ == "__main__":
    # Small shapes: batch=4 (2 images per grid step), inplanes=64, planes=16
    # (expansion 4 -> out=64), spatial 8x8, stride=1, downsample=None.
    N, H, W = 4, 8, 8
    inplanes, planes = 64, 16

    key = jax.random.PRNGKey(0)
    kx, kp = jax.random.split(key)
    x = jax.random.normal(kx, (N, H, W, inplanes), dtype=jnp.float32)
    params = make_params(kp, inplanes, planes)
    folded = fold_params(params)

    # Store activations in bf16 (same values fed to kernel and reference).
    x_bf = x.astype(jnp.bfloat16)

    out = bottleneck_forward(x_bf, folded, batch_block=2)
    out = jax.block_until_ready(out)

    ref = bottleneck_reference(x_bf, folded)
    assert out.shape == (N, H, W, planes * 4)
    # bf16 intermediate storage (h1 -> col scratch, h2 -> conv3 operand, bf16
    # output) adds rounding the f32 reference does not have; tolerance sized
    # accordingly while still catching any indexing / conv-math bug (O(1) error).
    assert jnp.allclose(out.astype(jnp.float32), ref, atol=5e-2, rtol=5e-2), \
        "mismatch vs reference"

    print("KERNEL_OK")
</pallas_src>

<mosaic_0001>
module attributes {stable_mosaic.version = 11 : i64} {
  func.func @_bottleneck_kernel(%arg0: i32, %arg1: memref<2x64x64xbf16, #tpu.memory_space<vmem>>, %arg2: memref<64x16xbf16, #tpu.memory_space<vmem>>, %arg3: memref<1x16xf32, #tpu.memory_space<vmem>>, %arg4: memref<48x48xbf16, #tpu.memory_space<vmem>>, %arg5: memref<1x16xf32, #tpu.memory_space<vmem>>, %arg6: memref<16x64xbf16, #tpu.memory_space<vmem>>, %arg7: memref<1x64xf32, #tpu.memory_space<vmem>>, %arg8: memref<2x64x64xbf16, #tpu.memory_space<vmem>>, %arg9: memref<2x80x48xbf16, #tpu.memory_space<vmem>>) attributes {dimension_semantics = [#tpu.dimension_semantics<parallel>], iteration_bounds = array<i64: 2>, scalar_prefetch = 0 : i64, scratch_operands = 1 : i64, tpu.core_type = #tpu.core_type<tc>, window_params = [{transform_indices = @transform_0, window_bounds = array<i64: 2, 64, 64>}, {pipeline_mode = #tpu.pipeline_mode<synchronous>, transform_indices = @transform_1, window_bounds = array<i64: 64, 16>}, {pipeline_mode = #tpu.pipeline_mode<synchronous>, transform_indices = @transform_2, window_bounds = array<i64: 1, 16>}, {pipeline_mode = #tpu.pipeline_mode<synchronous>, transform_indices = @transform_3, window_bounds = array<i64: 48, 48>}, {pipeline_mode = #tpu.pipeline_mode<synchronous>, transform_indices = @transform_4, window_bounds = array<i64: 1, 16>}, {pipeline_mode = #tpu.pipeline_mode<synchronous>, transform_indices = @transform_5, window_bounds = array<i64: 16, 64>}, {pipeline_mode = #tpu.pipeline_mode<synchronous>, transform_indices = @transform_6, window_bounds = array<i64: 1, 64>}, {transform_indices = @transform_7, window_bounds = array<i64: 2, 64, 64>}]} {
    %cst = arith.constant 0.000000e+00 : bf16
    %0 = vector.broadcast %cst : bf16 to vector<2x8x48xbf16>
    %c0 = arith.constant 0 : index
    %c0_0 = arith.constant 0 : index
    %c0_1 = arith.constant 0 : index
    %1 = vector.load %arg9[%c0, %c0_0, %c0_1] : memref<2x80x48xbf16, #tpu.memory_space<vmem>>, vector<2x8x48xbf16>
    tpu.vector_store %arg9[%c0, %c0_0, %c0_1], %0 {strides = array<i32>} : memref<2x80x48xbf16, #tpu.memory_space<vmem>>, vector<2x8x48xbf16>,
    %c0_2 = arith.constant 0 : index
    %c72 = arith.constant 72 : index
    %c0_3 = arith.constant 0 : index
    %2 = vector.load %arg9[%c0_2, %c72, %c0_3] : memref<2x80x48xbf16, #tpu.memory_space<vmem>>, vector<2x8x48xbf16>
    tpu.vector_store %arg9[%c0_2, %c72, %c0_3], %0 {strides = array<i32>} : memref<2x80x48xbf16, #tpu.memory_space<vmem>>, vector<2x8x48xbf16>,
    %c0_4 = arith.constant 0 : index
    %c0_5 = arith.constant 0 : index
    %c0_6 = arith.constant 0 : index
    %3 = vector.load %arg1[%c0_4, %c0_5, %c0_6] : memref<2x64x64xbf16, #tpu.memory_space<vmem>>, vector<2x64x64xbf16>
    %4 = vector.shape_cast %3 : vector<2x64x64xbf16> to vector<128x64xbf16>
    %c0_7 = arith.constant 0 : index
    %c0_8 = arith.constant 0 : index
    %5 = vector.load %arg2[%c0_7, %c0_8] : memref<64x16xbf16, #tpu.memory_space<vmem>>, vector<64x16xbf16>
    %cst_9 = arith.constant dense<0.000000e+00> : vector<128x16xf32>
    %6 = tpu.matmul %4, %5, %cst_9 {dimension_numbers = #tpu.dot_dimension_numbers<[1], [0], [0], [1], [0, 0, 1, 1], [], []>} : vector<128x64xbf16>, vector<64x16xbf16>, vector<128x16xf32> -> vector<128x16xf32>
    %c0_10 = arith.constant 0 : index
    %c0_11 = arith.constant 0 : index
    %7 = vector.load %arg3[%c0_10, %c0_11] : memref<1x16xf32, #tpu.memory_space<vmem>>, vector<1x16xf32>
    %8 = vector.broadcast %7 : vector<1x16xf32> to vector<128x16xf32>
    %9 = arith.addf %6, %8 : vector<128x16xf32>
    %cst_12 = arith.constant 0.000000e+00 : f32
    %10 = vector.broadcast %cst_12 : f32 to vector<128x16xf32>
    %11 = arith.maximumf %9, %10 : vector<128x16xf32>
    %12 = tpu.iota {dimensions = array<i32: 0>} : vector<128x1xi32>
    %c8_i32 = arith.constant 8 : i32
    %c0_i32 = arith.constant 0 : i32
    %13 = arith.cmpi eq, %c8_i32, %c0_i32 : i32
    %c1_i32 = arith.constant 1 : i32
    %14 = arith.select %13, %c1_i32, %c8_i32 : i32
    %15 = vector.broadcast %14 : i32 to vector<128x1xi32>
    %16 = arith.remsi %12, %15 : vector<128x1xi32>
    %c0_i32_13 = arith.constant 0 : i32
    %17 = vector.broadcast %c0_i32_13 : i32 to vector<128x1xi32>
    %18 = arith.cmpi ne, %16, %17 : vector<128x1xi32>
    %c0_i32_14 = arith.constant 0 : i32
    %19 = vector.broadcast %c0_i32_14 : i32 to vector<128x1xi32>
    %20 = arith.cmpi slt, %16, %19 : vector<128x1xi32>
    %c0_i32_15 = arith.constant 0 : i32
    %21 = arith.cmpi slt, %14, %c0_i32_15 : i32
    %22 = vector.broadcast %21 : i1 to vector<128x1xi1>
    %23 = vector.broadcast %22 : vector<128x1xi1> to vector<128x1xi1>
    %24 = arith.xori %20, %23 : vector<128x1xi1>
    %25 = arith.andi %24, %18 : vector<128x1xi1>
    %26 = vector.broadcast %14 : i32 to vector<128x1xi32>
    %27 = arith.addi %16, %26 : vector<128x1xi32>
    %28 = arith.select %25, %27, %16 : vector<128x1xi1>, vector<128x1xi32>
    %c0_i32_16 = arith.constant 0 : i32
    %29 = vector.broadcast %c0_i32_16 : i32 to vector<128x1xi32>
    %30 = arith.cmpi sgt, %28, %29 : vector<128x1xi32>
    %c1_i32_17 = arith.constant 1 : i32
    %31 = tpu.dynamic_rotate %11 by %c1_i32_17 dim 0 : vector<128x16xf32>, i32 -> vector<128x16xf32>
    %cst_18 = arith.constant 0.000000e+00 : f32
    %32 = vector.shape_cast %30 : vector<128x1xi1> to vector<128x1xi1>
    %33 = vector.broadcast %32 : vector<128x1xi1> to vector<128x16xi1>
    %34 = vector.broadcast %cst_18 : f32 to vector<128x16xf32>
    %35 = arith.select %33, %31, %34 : vector<128x16xi1>, vector<128x16xf32>
    %c7_i32 = arith.constant 7 : i32
    %36 = vector.broadcast %c7_i32 : i32 to vector<128x1xi32>
    %37 = arith.cmpi slt, %28, %36 : vector<128x1xi32>
    %c127_i32 = arith.constant 127 : i32
    %38 = tpu.dynamic_rotate %11 by %c127_i32 dim 0 : vector<128x16xf32>, i32 -> vector<128x16xf32>
    %cst_19 = arith.constant 0.000000e+00 : f32
    %39 = vector.shape_cast %37 : vector<128x1xi1> to vector<128x1xi1>
    %40 = vector.broadcast %39 : vector<128x1xi1> to vector<128x16xi1>
    %41 = vector.broadcast %cst_19 : f32 to vector<128x16xf32>
    %42 = arith.select %40, %38, %41 : vector<128x16xi1>, vector<128x16xf32>
    %43 = tpu.concatenate %35, %11, %42 in 1 : vector<128x16xf32>, vector<128x16xf32>, vector<128x16xf32> -> vector<128x48xf32>
    %44 = arith.truncf %43 : vector<128x48xf32> to vector<128x48xbf16>
    %45 = vector.shape_cast %44 : vector<128x48xbf16> to vector<2x64x48xbf16>
    %c0_20 = arith.constant 0 : index
    %c8 = arith.constant 8 : index
    %c0_21 = arith.constant 0 : index
    %46 = vector.load %arg9[%c0_20, %c8, %c0_21] : memref<2x80x48xbf16, #tpu.memory_space<vmem>>, vector<2x64x48xbf16>
    tpu.vector_store %arg9[%c0_20, %c8, %c0_21], %45 {strides = array<i32>} : memref<2x80x48xbf16, #tpu.memory_space<vmem>>, vector<2x64x48xbf16>,
    %c0_22 = arith.constant 0 : index
    %c0_23 = arith.constant 0 : index
    %c0_24 = arith.constant 0 : index
    %47 = vector.load %arg9[%c0_22, %c0_23, %c0_24] : memref<2x80x48xbf16, #tpu.memory_space<vmem>>, vector<2x80x48xbf16>
    %48 = vector.shape_cast %47 : vector<2x80x48xbf16> to vector<160x48xbf16>
    %c0_25 = arith.constant 0 : index
    %c0_26 = arith.constant 0 : index
    %49 = vector.load %arg4[%c0_25, %c0_26] : memref<48x48xbf16, #tpu.memory_space<vmem>>, vector<48x48xbf16>
    %cst_27 = arith.constant dense<0.000000e+00> : vector<160x48xf32>
    %50 = tpu.matmul %48, %49, %cst_27 {dimension_numbers = #tpu.dot_dimension_numbers<[1], [0], [0], [1], [0, 0, 1, 1], [], []>} : vector<160x48xbf16>, vector<48x48xbf16>, vector<160x48xf32> -> vector<160x48xf32>
    %51 = vector.shape_cast %50 : vector<160x48xf32> to vector<2x80x48xf32>
    %52 = vector.extract_strided_slice %51 {offsets = [0, 0, 0], sizes = [2, 64, 16], strides = [1, 1, 1]} : vector<2x80x48xf32> to vector<2x64x16xf32>
    %53 = vector.extract_strided_slice %51 {offsets = [0, 8, 16], sizes = [2, 64, 16], strides = [1, 1, 1]} : vector<2x80x48xf32> to vector<2x64x16xf32>
    %54 = arith.addf %52, %53 : vector<2x64x16xf32>
    %55 = vector.extract_strided_slice %51 {offsets = [0, 16, 32], sizes = [2, 64, 16], strides = [1, 1, 1]} : vector<2x80x48xf32> to vector<2x64x16xf32>
    %56 = arith.addf %54, %55 : vector<2x64x16xf32>
    %57 = vector.shape_cast %56 : vector<2x64x16xf32> to vector<128x16xf32>
    %c0_28 = arith.constant 0 : index
    %c0_29 = arith.constant 0 : index
    %58 = vector.load %arg5[%c0_28, %c0_29] : memref<1x16xf32, #tpu.memory_space<vmem>>, vector<1x16xf32>
    %59 = vector.broadcast %58 : vector<1x16xf32> to vector<128x16xf32>
    %60 = arith.addf %57, %59 : vector<128x16xf32>
    %cst_30 = arith.constant 0.000000e+00 : f32
    %61 = vector.broadcast %cst_30 : f32 to vector<128x16xf32>
    %62 = arith.maximumf %60, %61 : vector<128x16xf32>
    %63 = arith.truncf %62 : vector<128x16xf32> to vector<128x16xbf16>
    %c0_31 = arith.constant 0 : index
    %c0_32 = arith.constant 0 : index
    %64 = vector.load %arg6[%c0_31, %c0_32] : memref<16x64xbf16, #tpu.memory_space<vmem>>, vector<16x64xbf16>
    %cst_33 = arith.constant dense<0.000000e+00> : vector<128x64xf32>
    %65 = tpu.matmul %63, %64, %cst_33 {dimension_numbers = #tpu.dot_dimension_numbers<[1], [0], [0], [1], [0, 0, 1, 1], [], []>} : vector<128x16xbf16>, vector<16x64xbf16>, vector<128x64xf32> -> vector<128x64xf32>
    %c0_34 = arith.constant 0 : index
    %c0_35 = arith.constant 0 : index
    %66 = vector.load %arg7[%c0_34, %c0_35] : memref<1x64xf32, #tpu.memory_space<vmem>>, vector<1x64xf32>
    %67 = vector.broadcast %66 : vector<1x64xf32> to vector<128x64xf32>
    %68 = arith.addf %65, %67 : vector<128x64xf32>
    %69 = arith.extf %4 : vector<128x64xbf16> to vector<128x64xf32>
    %70 = arith.addf %68, %69 : vector<128x64xf32>
    %cst_36 = arith.constant 0.000000e+00 : f32
    %71 = vector.broadcast %cst_36 : f32 to vector<128x64xf32>
    %72 = arith.maximumf %70, %71 : vector<128x64xf32>
    %73 = vector.shape_cast %72 : vector<128x64xf32> to vector<2x64x64xf32>
    %74 = arith.truncf %73 : vector<2x64x64xf32> to vector<2x64x64xbf16>
    %c0_37 = arith.constant 0 : index
    %c0_38 = arith.constant 0 : index
    %c0_39 = arith.constant 0 : index
    %75 = vector.load %arg8[%c0_37, %c0_38, %c0_39] : memref<2x64x64xbf16, #tpu.memory_space<vmem>>, vector<2x64x64xbf16>
    tpu.vector_store %arg8[%c0_37, %c0_38, %c0_39], %74 {strides = array<i32>} : memref<2x64x64xbf16, #tpu.memory_space<vmem>>, vector<2x64x64xbf16>,
    return
  }
  func.func @transform_0(%arg0: i32) -> (i32, i32, i32) {
    %c0_i32 = arith.constant 0 : i32
    %c0_i32_0 = arith.constant 0 : i32
    %c0_i32_1 = arith.constant 0 : i32
    return %arg0, %c0_i32, %c0_i32_0 : i32, i32, i32
  }
  func.func @transform_1(%arg0: i32) -> (i32, i32) {
    %c0_i32 = arith.constant 0 : i32
    %c0_i32_0 = arith.constant 0 : i32
    %c0_i32_1 = arith.constant 0 : i32
    return %c0_i32, %c0_i32_0 : i32, i32
  }
  func.func @transform_2(%arg0: i32) -> (i32, i32) {
    %c0_i32 = arith.constant 0 : i32
    %c0_i32_0 = arith.constant 0 : i32
    %c0_i32_1 = arith.constant 0 : i32
    return %c0_i32, %c0_i32_0 : i32, i32
  }
  func.func @transform_3(%arg0: i32) -> (i32, i32) {
    %c0_i32 = arith.constant 0 : i32
    %c0_i32_0 = arith.constant 0 : i32
    %c0_i32_1 = arith.constant 0 : i32
    return %c0_i32, %c0_i32_0 : i32, i32
  }
  func.func @transform_4(%arg0: i32) -> (i32, i32) {
    %c0_i32 = arith.constant 0 : i32
    %c0_i32_0 = arith.constant 0 : i32
    %c0_i32_1 = arith.constant 0 : i32
    return %c0_i32, %c0_i32_0 : i32, i32
  }
  func.func @transform_5(%arg0: i32) -> (i32, i32) {
    %c0_i32 = arith.constant 0 : i32
    %c0_i32_0 = arith.constant 0 : i32
    %c0_i32_1 = arith.constant 0 : i32
    return %c0_i32, %c0_i32_0 : i32, i32
  }
  func.func @transform_6(%arg0: i32) -> (i32, i32) {
    %c0_i32 = arith.constant 0 : i32
    %c0_i32_0 = arith.constant 0 : i32
    %c0_i32_1 = arith.constant 0 : i32
    return %c0_i32, %c0_i32_0 : i32, i32
  }
  func.func @transform_7(%arg0: i32) -> (i32, i32, i32) {
    %c0_i32 = arith.constant 0 : i32
    %c0_i32_0 = arith.constant 0 : i32
    %c0_i32_1 = arith.constant 0 : i32
    return %arg0, %c0_i32, %c0_i32_0 : i32, i32, i32
  }
}

module attributes {stable_mosaic.version = 11 : i64} {
  func.func @_bottleneck_kernel(%arg0: i32, %arg1: memref<2x64x64xbf16, #tpu.memory_space<vmem>>, %arg2: memref<64x16xbf16, #tpu.memory_space<vmem>>, %arg3: memref<1x16xf32, #tpu.memory_space<vmem>>, %arg4: memref<48x48xbf16, #tpu.memory_space<vmem>>, %arg5: memref<1x16xf32, #tpu.memory_space<vmem>>, %arg6: memref<16x64xbf16, #tpu.memory_space<vmem>>, %arg7: memref<1x64xf32, #tpu.memory_space<vmem>>, %arg8: memref<2x64x64xbf16, #tpu.memory_space<vmem>>, %arg9: memref<2x80x48xbf16, #tpu.memory_space<vmem>>) attributes {dimension_semantics = [#tpu.dimension_semantics<parallel>], iteration_bounds = array<i64: 2>, scalar_prefetch = 0 : i64, scratch_operands = 1 : i64, tpu.core_type = #tpu.core_type<tc>, window_params = [{transform_indices = @transform_0, window_bounds = array<i64: 2, 64, 64>}, {pipeline_mode = #tpu.pipeline_mode<synchronous>, transform_indices = @transform_1, window_bounds = array<i64: 64, 16>}, {pipeline_mode = #tpu.pipeline_mode<synchronous>, transform_indices = @transform_2, window_bounds = array<i64: 1, 16>}, {pipeline_mode = #tpu.pipeline_mode<synchronous>, transform_indices = @transform_3, window_bounds = array<i64: 48, 48>}, {pipeline_mode = #tpu.pipeline_mode<synchronous>, transform_indices = @transform_4, window_bounds = array<i64: 1, 16>}, {pipeline_mode = #tpu.pipeline_mode<synchronous>, transform_indices = @transform_5, window_bounds = array<i64: 16, 64>}, {pipeline_mode = #tpu.pipeline_mode<synchronous>, transform_indices = @transform_6, window_bounds = array<i64: 1, 64>}, {transform_indices = @transform_7, window_bounds = array<i64: 2, 64, 64>}]} {
    %cst = arith.constant 0.000000e+00 : bf16
    %0 = vector.broadcast %cst : bf16 to vector<2x8x48xbf16>
    %c0 = arith.constant 0 : index
    %c0_0 = arith.constant 0 : index
    %c0_1 = arith.constant 0 : index
    %1 = vector.load %arg9[%c0, %c0_0, %c0_1] : memref<2x80x48xbf16, #tpu.memory_space<vmem>>, vector<2x8x48xbf16>
    tpu.vector_store %arg9[%c0, %c0_0, %c0_1], %0 {strides = array<i32>} : memref<2x80x48xbf16, #tpu.memory_space<vmem>>, vector<2x8x48xbf16>,
    %c0_2 = arith.constant 0 : index
    %c72 = arith.constant 72 : index
    %c0_3 = arith.constant 0 : index
    %2 = vector.load %arg9[%c0_2, %c72, %c0_3] : memref<2x80x48xbf16, #tpu.memory_space<vmem>>, vector<2x8x48xbf16>
    tpu.vector_store %arg9[%c0_2, %c72, %c0_3], %0 {strides = array<i32>} : memref<2x80x48xbf16, #tpu.memory_space<vmem>>, vector<2x8x48xbf16>,
    %c0_4 = arith.constant 0 : index
    %c0_5 = arith.constant 0 : index
    %c0_6 = arith.constant 0 : index
    %3 = vector.load %arg1[%c0_4, %c0_5, %c0_6] : memref<2x64x64xbf16, #tpu.memory_space<vmem>>, vector<2x64x64xbf16>
    %4 = vector.shape_cast %3 : vector<2x64x64xbf16> to vector<128x64xbf16>
    %c0_7 = arith.constant 0 : index
    %c0_8 = arith.constant 0 : index
    %5 = vector.load %arg2[%c0_7, %c0_8] : memref<64x16xbf16, #tpu.memory_space<vmem>>, vector<64x16xbf16>
    %cst_9 = arith.constant dense<0.000000e+00> : vector<128x16xf32>
    %6 = tpu.matmul %4, %5, %cst_9 {dimension_numbers = #tpu.dot_dimension_numbers<[1], [0], [0], [1], [0, 0, 1, 1], [], []>} : vector<128x64xbf16>, vector<64x16xbf16>, vector<128x16xf32> -> vector<128x16xf32>
    %c0_10 = arith.constant 0 : index
    %c0_11 = arith.constant 0 : index
    %7 = vector.load %arg3[%c0_10, %c0_11] : memref<1x16xf32, #tpu.memory_space<vmem>>, vector<1x16xf32>
    %8 = vector.broadcast %7 : vector<1x16xf32> to vector<128x16xf32>
    %9 = arith.addf %6, %8 : vector<128x16xf32>
    %cst_12 = arith.constant 0.000000e+00 : f32
    %10 = vector.broadcast %cst_12 : f32 to vector<128x16xf32>
    %11 = arith.maximumf %9, %10 : vector<128x16xf32>
    %12 = tpu.iota {dimensions = array<i32: 0>} : vector<128x1xi32>
    %c8_i32 = arith.constant 8 : i32
    %c0_i32 = arith.constant 0 : i32
    %13 = arith.cmpi eq, %c8_i32, %c0_i32 : i32
    %c1_i32 = arith.constant 1 : i32
    %14 = arith.select %13, %c1_i32, %c8_i32 : i32
    %15 = vector.broadcast %14 : i32 to vector<128x1xi32>
    %16 = arith.remsi %12, %15 : vector<128x1xi32>
    %c0_i32_13 = arith.constant 0 : i32
    %17 = vector.broadcast %c0_i32_13 : i32 to vector<128x1xi32>
    %18 = arith.cmpi ne, %16, %17 : vector<128x1xi32>
    %c0_i32_14 = arith.constant 0 : i32
    %19 = vector.broadcast %c0_i32_14 : i32 to vector<128x1xi32>
    %20 = arith.cmpi slt, %16, %19 : vector<128x1xi32>
    %c0_i32_15 = arith.constant 0 : i32
    %21 = arith.cmpi slt, %14, %c0_i32_15 : i32
    %22 = vector.broadcast %21 : i1 to vector<128x1xi1>
    %23 = vector.broadcast %22 : vector<128x1xi1> to vector<128x1xi1>
    %24 = arith.xori %20, %23 : vector<128x1xi1>
    %25 = arith.andi %24, %18 : vector<128x1xi1>
    %26 = vector.broadcast %14 : i32 to vector<128x1xi32>
    %27 = arith.addi %16, %26 : vector<128x1xi32>
    %28 = arith.select %25, %27, %16 : vector<128x1xi1>, vector<128x1xi32>
    %c0_i32_16 = arith.constant 0 : i32
    %29 = vector.broadcast %c0_i32_16 : i32 to vector<128x1xi32>
    %30 = arith.cmpi sgt, %28, %29 : vector<128x1xi32>
    %c1_i32_17 = arith.constant 1 : i32
    %31 = tpu.dynamic_rotate %11 by %c1_i32_17 dim 0 : vector<128x16xf32>, i32 -> vector<128x16xf32>
    %cst_18 = arith.constant 0.000000e+00 : f32
    %32 = vector.shape_cast %30 : vector<128x1xi1> to vector<128x1xi1>
    %33 = vector.broadcast %32 : vector<128x1xi1> to vector<128x16xi1>
    %34 = vector.broadcast %cst_18 : f32 to vector<128x16xf32>
    %35 = arith.select %33, %31, %34 : vector<128x16xi1>, vector<128x16xf32>
    %c7_i32 = arith.constant 7 : i32
    %36 = vector.broadcast %c7_i32 : i32 to vector<128x1xi32>
    %37 = arith.cmpi slt, %28, %36 : vector<128x1xi32>
    %c127_i32 = arith.constant 127 : i32
    %38 = tpu.dynamic_rotate %11 by %c127_i32 dim 0 : vector<128x16xf32>, i32 -> vector<128x16xf32>
    %cst_19 = arith.constant 0.000000e+00 : f32
    %39 = vector.shape_cast %37 : vector<128x1xi1> to vector<128x1xi1>
    %40 = vector.broadcast %39 : vector<128x1xi1> to vector<128x16xi1>
    %41 = vector.broadcast %cst_19 : f32 to vector<128x16xf32>
    %42 = arith.select %40, %38, %41 : vector<128x16xi1>, vector<128x16xf32>
    %43 = tpu.concatenate %35, %11, %42 in 1 : vector<128x16xf32>, vector<128x16xf32>, vector<128x16xf32> -> vector<128x48xf32>
    %44 = arith.truncf %43 : vector<128x48xf32> to vector<128x48xbf16>
    %45 = vector.shape_cast %44 : vector<128x48xbf16> to vector<2x64x48xbf16>
    %c0_20 = arith.constant 0 : index
    %c8 = arith.constant 8 : index
    %c0_21 = arith.constant 0 : index
    %46 = vector.load %arg9[%c0_20, %c8, %c0_21] : memref<2x80x48xbf16, #tpu.memory_space<vmem>>, vector<2x64x48xbf16>
    tpu.vector_store %arg9[%c0_20, %c8, %c0_21], %45 {strides = array<i32>} : memref<2x80x48xbf16, #tpu.memory_space<vmem>>, vector<2x64x48xbf16>,
    %c0_22 = arith.constant 0 : index
    %c0_23 = arith.constant 0 : index
    %c0_24 = arith.constant 0 : index
    %47 = vector.load %arg9[%c0_22, %c0_23, %c0_24] : memref<2x80x48xbf16, #tpu.memory_space<vmem>>, vector<2x80x48xbf16>
    %48 = vector.shape_cast %47 : vector<2x80x48xbf16> to vector<160x48xbf16>
    %c0_25 = arith.constant 0 : index
    %c0_26 = arith.constant 0 : index
    %49 = vector.load %arg4[%c0_25, %c0_26] : memref<48x48xbf16, #tpu.memory_space<vmem>>, vector<48x48xbf16>
    %cst_27 = arith.constant dense<0.000000e+00> : vector<160x48xf32>
    %50 = tpu.matmul %48, %49, %cst_27 {dimension_numbers = #tpu.dot_dimension_numbers<[1], [0], [0], [1], [0, 0, 1, 1], [], []>} : vector<160x48xbf16>, vector<48x48xbf16>, vector<160x48xf32> -> vector<160x48xf32>
    %51 = vector.shape_cast %50 : vector<160x48xf32> to vector<2x80x48xf32>
    %52 = vector.extract_strided_slice %51 {offsets = [0, 0, 0], sizes = [2, 64, 16], strides = [1, 1, 1]} : vector<2x80x48xf32> to vector<2x64x16xf32>
    %53 = vector.extract_strided_slice %51 {offsets = [0, 8, 16], sizes = [2, 64, 16], strides = [1, 1, 1]} : vector<2x80x48xf32> to vector<2x64x16xf32>
    %54 = arith.addf %52, %53 : vector<2x64x16xf32>
    %55 = vector.extract_strided_slice %51 {offsets = [0, 16, 32], sizes = [2, 64, 16], strides = [1, 1, 1]} : vector<2x80x48xf32> to vector<2x64x16xf32>
    %56 = arith.addf %54, %55 : vector<2x64x16xf32>
    %57 = vector.shape_cast %56 : vector<2x64x16xf32> to vector<128x16xf32>
    %c0_28 = arith.constant 0 : index
    %c0_29 = arith.constant 0 : index
    %58 = vector.load %arg5[%c0_28, %c0_29] : memref<1x16xf32, #tpu.memory_space<vmem>>, vector<1x16xf32>
    %59 = vector.broadcast %58 : vector<1x16xf32> to vector<128x16xf32>
    %60 = arith.addf %57, %59 : vector<128x16xf32>
    %cst_30 = arith.constant 0.000000e+00 : f32
    %61 = vector.broadcast %cst_30 : f32 to vector<128x16xf32>
    %62 = arith.maximumf %60, %61 : vector<128x16xf32>
    %63 = arith.truncf %62 : vector<128x16xf32> to vector<128x16xbf16>
    %c0_31 = arith.constant 0 : index
    %c0_32 = arith.constant 0 : index
    %64 = vector.load %arg6[%c0_31, %c0_32] : memref<16x64xbf16, #tpu.memory_space<vmem>>, vector<16x64xbf16>
    %cst_33 = arith.constant dense<0.000000e+00> : vector<128x64xf32>
    %65 = tpu.matmul %63, %64, %cst_33 {dimension_numbers = #tpu.dot_dimension_numbers<[1], [0], [0], [1], [0, 0, 1, 1], [], []>} : vector<128x16xbf16>, vector<16x64xbf16>, vector<128x64xf32> -> vector<128x64xf32>
    %c0_34 = arith.constant 0 : index
    %c0_35 = arith.constant 0 : index
    %66 = vector.load %arg7[%c0_34, %c0_35] : memref<1x64xf32, #tpu.memory_space<vmem>>, vector<1x64xf32>
    %67 = vector.broadcast %66 : vector<1x64xf32> to vector<128x64xf32>
    %68 = arith.addf %65, %67 : vector<128x64xf32>
    %69 = arith.extf %4 : vector<128x64xbf16> to vector<128x64xf32>
    %70 = arith.addf %68, %69 : vector<128x64xf32>
    %cst_36 = arith.constant 0.000000e+00 : f32
    %71 = vector.broadcast %cst_36 : f32 to vector<128x64xf32>
    %72 = arith.maximumf %70, %71 : vector<128x64xf32>
    %73 = vector.shape_cast %72 : vector<128x64xf32> to vector<2x64x64xf32>
    %74 = arith.truncf %73 : vector<2x64x64xf32> to vector<2x64x64xbf16>
    %c0_37 = arith.constant 0 : index
    %c0_38 = arith.constant 0 : index
    %c0_39 = arith.constant 0 : index
    %75 = vector.load %arg8[%c0_37, %c0_38, %c0_39] : memref<2x64x64xbf16, #tpu.memory_space<vmem>>, vector<2x64x64xbf16>
    tpu.vector_store %arg8[%c0_37, %c0_38, %c0_39], %74 {strides = array<i32>} : memref<2x64x64xbf16, #tpu.memory_space<vmem>>, vector<2x64x64xbf16>,
    return
  }
  func.func @transform_0(%arg0: i32) -> (i32, i32, i32) {
    %c0_i32 = arith.constant 0 : i32
    %c0_i32_0 = arith.constant 0 : i32
    %c0_i32_1 = arith.constant 0 : i32
    return %arg0, %c0_i32, %c0_i32_0 : i32, i32, i32
  }
  func.func @transform_1(%arg0: i32) -> (i32, i32) {
    %c0_i32 = arith.constant 0 : i32
    %c0_i32_0 = arith.constant 0 : i32
    %c0_i32_1 = arith.constant 0 : i32
    return %c0_i32, %c0_i32_0 : i32, i32
  }
  func.func @transform_2(%arg0: i32) -> (i32, i32) {
    %c0_i32 = arith.constant 0 : i32
    %c0_i32_0 = arith.constant 0 : i32
    %c0_i32_1 = arith.constant 0 : i32
    return %c0_i32, %c0_i32_0 : i32, i32
  }
  func.func @transform_3(%arg0: i32) -> (i32, i32) {
    %c0_i32 = arith.constant 0 : i32
    %c0_i32_0 = arith.constant 0 : i32
    %c0_i32_1 = arith.constant 0 : i32
    return %c0_i32, %c0_i32_0 : i32, i32
  }
  func.func @transform_4(%arg0: i32) -> (i32, i32) {
    %c0_i32 = arith.constant 0 : i32
    %c0_i32_0 = arith.constant 0 : i32
    %c0_i32_1 = arith.constant 0 : i32
    return %c0_i32, %c0_i32_0 : i32, i32
  }
  func.func @transform_5(%arg0: i32) -> (i32, i32) {
    %c0_i32 = arith.constant 0 : i32
    %c0_i32_0 = arith.constant 0 : i32
    %c0_i32_1 = arith.constant 0 : i32
    return %c0_i32, %c0_i32_0 : i32, i32
  }
  func.func @transform_6(%arg0: i32) -> (i32, i32) {
    %c0_i32 = arith.constant 0 : i32
    %c0_i32_0 = arith.constant 0 : i32
    %c0_i32_1 = arith.constant 0 : i32
    return %c0_i32, %c0_i32_0 : i32, i32
  }
  func.func @transform_7(%arg0: i32) -> (i32, i32, i32) {
    %c0_i32 = arith.constant 0 : i32
    %c0_i32_0 = arith.constant 0 : i32
    %c0_i32_1 = arith.constant 0 : i32
    return %arg0, %c0_i32, %c0_i32_0 : i32, i32, i32
  }
}

</mosaic_0001>

<bundles_post_ra>
// kernel: tpu_custom_call.1
= control target key start
LH: loop header
LB: loop body
LE: loop exit
PB: predicated region body
PF: predicated region fallthrough
CT: control target
= control target key end

     0   :  { %12 = vsyncpa [#allocation4], 0  ;;  %s3547_s0 = inlined_call_operand.hbm [shape: bf16[4,64,64], index: 0, kind: input, shape index: {}]   ;;  %s3548_s1 = inlined_call_operand.vmem [shape: bf16[64,16], index: 1, kind: input, shape index: {}]   ;;  %s3549_s2 = inlined_call_operand.vmem [shape: f32[1,16], index: 2, kind: input, shape index: {}]   ;;  %s3550_s3 = inlined_call_operand.vmem [shape: bf16[48,48], index: 3, kind: input, shape index: {}]   ;;  %s3551_s4 = inlined_call_operand.vmem [shape: f32[1,16], index: 4, kind: input, shape index: {}]   ;;  %s3552_s5 = inlined_call_operand.vmem [shape: bf16[16,64], index: 5, kind: input, shape index: {}]   ;;  %s3553_s6 = inlined_call_operand.vmem [shape: f32[1,64], index: 6, kind: input, shape index: {}]   ;;  %s3554_s7 = inlined_call_operand.hbm [shape: bf16[4,64,64], index: 7, kind: output, shape index: {}]  }
   0x1   :  { %14 = vsyncpa [#allocation4 + $0x1], 0 }
   0x2   :  { %15 = vsyncpa [#allocation5], 0 }
   0x3   :  { %17 = vsyncpa [#allocation5 + $0x1], 0  ;;  %s2403_s24 = smov 0   ;;  %s2405_s25 = smov 0  }
   0x4   :  { %s2407_s26 = smov 0   ;;  %s2409_s27 = smov 0  }
   0x5 LB: > { %s2424_s28 = sadd.s32 4294967295, %s2350_s27   ;;  %s1880_s29 = sadd.s32 4294967294, %s2350_s27   ;;  %s2350_s27 = sphi %s2409_s27, %s3716_s27   ;;  %s2346_s26 = sphi %s2407_s26, %s3715_s26   ;;  %s2342_s25 = sphi %s2405_s25, %s3714_s25   ;;  %s2338_s24 = sphi %s2403_s24, %s3713_s24  }
   0x6   : > { %s2428_s30 = sadd.s32 1, %s2350_s27   ;;  %s30_s8 = sadd.s32 1, %s2346_s26 }
   0x7   : > { %s27_s9 = ssub.s32 %s2350_s27, %s2428_s30  ;;  %p37_p0 = scmp.ne.s32.totalorder %s2346_s26, %s2342_s25 }
   0x8   : > { %p28_p1 = scmp.eq.s32.totalorder %s27_s9, 0  ;;  %p38_p2 = scmp.eq.s32.totalorder %s2350_s27, 0 }
   0x9   : > { %p43_p3 = scmp.ne.s32.totalorder %s2342_s25, %s2338_s24  ;;  %p44_p4 = scmp.eq.s32.totalorder %s2424_s28, 0 }
   0xa   : > { %s2440_s10 = scalar_select %p28_p1, %s2346_s26, %s30_s8  }
   0xb   : > { %p2442_p5 = por %p38_p2, %p37_p0  ;;  %p2446_p6 = por %p44_p4, %p43_p3 }
   0xc   : > { %p193_p7 = scmp.eq.s32.totalorder %s2424_s28, 1  ;;  %p199_p8 = scmp.eq.s32.totalorder %s1880_s29, 1 }
   0xd   : > { %p2099_p10 = scmp.lt.s32.totalorder %s2350_s27, 2  ;;  %s237_s15 = sand.u32 1, %s2346_s26  }
   0xe   : > { %p2453_p11 = por %p193_p7, %p37_p0  ;;  %p2457_p12 = por %p199_p8, %p43_p3 }
   0xf   : > { %s1958_s16 = sshll.u32 %s2350_s27, 10  ;;  %s1883_s17 = sshll.u32 %s237_s15, 6 }
  0x10   : > { %s3578_s13 = scalar_select %p2453_p11, 1, 0 }
  0x11   : > { %s3579_s14 = scalar_select %p2457_p12, 1, 0 }
  0x12   : > { %s2466_s20 = scalar_lea.hbm %s3547_s0, %s1958_s16  ;;  %s241_s21 = scalar_lea.vmem [#allocation3], %s1883_s17 }
  0x13   : > { %s249_s22 = sshll.u32 %s241_s21, 4  ;;  %p2470_p13 = pnand %p2099_p10, %p2442_p5  ;;  %s2474_s22 = int_to_ptr.vmem [resolvable:$true] %s249_s22 }
  0x14   : > { %s2476_s29 = scalar_lea.sflag [#allocation4], %s237_s15  ;;  %s2254_s8 = scalar_lea.hbm %s2466_s20, 1024 }
  0x15   : > { %p2255_p0 = scmp.ne.s32.totalorder %s2466_s20, %s2254_s8  ;;  %p2256_p1 = pneg %p2470_p13 }
  0x16   : > { %s2259_s16 = scalar_lea.hbm %s3547_s0, 2048  ;;  %p2260_p4 = scmp.lt.u32.totalorder %s2466_s20, %s3547_s0 }
  0x17   : > { %p2257_p2 = pnand %p2256_p1, %p2255_p0  ;;  %p2261_p5 = scmp.lt.u32.totalorder %s2259_s16, %s2254_s8 }
  0x18   : > { %p2263_p8 = scmp.lt.u32.totalorder %s2254_s8, %s2466_s20 }
  0x19   : > { %p2258_p3 = pneg %p2257_p2  ;;  %p2262_p7 = por %p2261_p5, %p2260_p4 }
  0x1b   : > { %p2264_p10 = por %p2263_p8, %p2262_p7 }
  0x1d   : > { %p2265_p9 = pnand %p2264_p10, %p2258_p3 }
  0x1f   : > { %2268 = shalt.err (!%p2265_p9)
}
  0x20   : > { %s2269_s15 = scalar_lea.vmem %s2474_s22, 1024  ;;  %s2352_s19 = smov [#allocation3]  }
  0x21   : > { %p2270_p0 = scmp.ne.s32.totalorder %s2474_s22, %s2269_s15  ;;  %s2274_s21 = sshll.u32 %s2352_s19, 4  ;;  %s2275_s21 = int_to_ptr.vmem [resolvable:$false] %s2274_s21 }
  0x22   : > { %s2276_s9 = scalar_lea.vmem %s2275_s21, 2048  ;;  %p2277_p11 = scmp.lt.s32.totalorder %s2474_s22, %s2275_s21 }
  0x23   : > { %p2272_p2 = pnand %p2270_p0, %p2256_p1  ;;  %p2278_p4 = scmp.lt.s32.totalorder %s2276_s9, %s2269_s15 }
  0x25   : > { %p2273_p12 = pneg %p2272_p2  ;;  %p2279_p5 = por %p2278_p4, %p2277_p11 }
  0x27   : > { %p2280_p7 = pnand %p2279_p5, %p2273_p12 }
  0x29   : > { %2283 = shalt.err (!%p2280_p7)
}
  0x2a   : > { %s2353_s8 = smov 64   ;;  %s2354_s11 = smov 4  }
  0x2b   : > { %2094 = dma.hbm_to_vmem [thread:$0]  (!%p2470_p13), %s2466_s20, 1024, %s2474_s22, %s2476_s29, %s2353_s8, %s2353_s8, %s2354_s11  }
  0x2c   : > { %p1887_p9 = scmp.ge.s32.totalorder %s2350_s27, 1  ;;  %p257_p1 = scmp.lt.s32.totalorder %s2350_s27, 3 }
  0x2e   : > { %p258_p3 = pnand %p1887_p9, %p257_p1 }
  0x2f   : > { %s2507_s16 = sand.u32 (!%p258_p3), 1, %s2342_s25  }
  0x30   : > { %261 = sbr.rel (%p258_p3) target bundleno = 1071 (0x42f), region = 48  ;;  %s1888_s17 = sshll.u32 (!%p258_p3), %s2507_s16, 6 }
  0x31   : > { %s264_s18 = scalar_lea.sflag (!%p258_p3), [#allocation4], %s2507_s16  ;;  %s2513_s15 = scalar_lea.vmem (!%p258_p3), [#allocation3], %s1888_s17 }
  0x37   : > { %2329 = dma.done.wait (%p2446_p6), %s264_s18, 1024  }
  0x38   : > { %2331 = vsyncadd (%p2446_p6), %s264_s18, 4294966272  ;;  %v2222_v0 = vld [vmem:[%s3548_s1] sm:$0xff]   ;;  %v2223_v1 = vld [vmem:[%s3548_s1 + $0x8] sm:$0xff]   ;;  %vm402_vm0 = vcmask 523264   ;;  %v540_v12 = vlaneseq  ;;  %vm3569_vm7 = vcmask 392196   ;;  %s2356_s18 = smov 16  }
  0x39   : > { %2011 = vmatprep.subr.bf16.mxu0 %v2222_v0  ;;  %2079 = vmatprep.subr.bf16.mxu1 %v2222_v0  ;;  %v2224_v2 = vld [vmem:[%s3548_s1 + $0x10] sm:$0xff]   ;;  %v319_v4 = vld [vmem:[%s2513_s15 + $0x30] sm:$0xff]   ;;  %v2225_v5 = vld [vmem:[%s3548_s1 + $0x18] sm:$0xff]   ;;  %s2357_s20 = smov 32   ;;  %s2358_s9 = smov 96  }
  0x3a   : > { %2012 = vmatpush3.bf16.msra.mxu0 %v2222_v0  ;;  %2083 = vmatpush3.bf16.msra.mxu1 %v2222_v0  ;;  %v307_v3 = vld [vmem:[%s2513_s15] sm:$0xff]   ;;  %v309_v6 = vld [vmem:[%s2513_s15 + $0x8] sm:$0xff]   ;;  %v321_v7 = vld [vmem:[%s2513_s15 + $0x38] sm:$0xff]   ;;  %v2547_v13 = vshrl.u32 %v540_v12, 7  ;;  %s2359_s8 = smov 112   ;;  %s3446_s12 = scalar_lea.vmem [#allocation6], %s1888_s17 }
  0x3b   : > { %2013 = vmatprep.subr.bf16.mxu0 %v2223_v1  ;;  %2080 = vmatprep.subr.bf16.mxu1 %v2223_v1  ;;  %v311_v8 = vld [vmem:[%s2513_s15 + $0x10] sm:$0xff]   ;;  %v313_v9 = vld [vmem:[%s2513_s15 + $0x18] sm:$0xff]   ;;  %v315_v10 = vld [vmem:[%s2513_s15 + $0x20] sm:$0xff]   ;;  %s1976_s17 = sshll.u32 %s2424_s28, 10  ;;  %s1793_s28 = scalar_lea.sflag [#allocation5], %s2507_s16 }
  0x3c   : > { %2019 = vmatprep.mubr.msk.bf16.mxu0 %vm402_vm0, %v307_v3  ;;  %2031 = vmatprep.mubr.msk.bf16.mxu1 %vm402_vm0, %v319_v4  ;;  %v317_v11 = vld [vmem:[%s2513_s15 + $0x28] sm:$0xff]   ;;  %v2550_v14 = vadd.s32 16, %v2547_v13  ;;  %v2553_v15 = vadd.s32 8, %v2547_v13  ;;  %v2556_v16 = vadd.s32 24, %v2547_v13  ;;  %v2559_v17 = vadd.s32 32, %v2547_v13  ;;  %p3710_p11 = scmp.ne.s32.totalorder %s3578_s13, 0 }
  0x3d   : > { %v2562_v18 = vadd.s32 48, %v2547_v13  ;;  %v2565_v19 = vadd.s32 112, %v2547_v13  ;;  %v2568_v20 = vadd.s32 120, %v2547_v13  ;;  %v2571_v21 = vadd.s32 40, %v2547_v13  ;;  %v2581_v25 = vld [vmem:[%s3549_s2] ss:$0 sm:$0xff] }
  0x3e   : > { %2014 = vmatpush3.bf16.msra.mxu0 %v2223_v1  ;;  %2084 = vmatpush3.bf16.msra.mxu1 %v2223_v1  ;;  %v2574_v22 = vadd.s32 56, %v2547_v13  ;;  %v561_v23 = vand.u32 7, %v2547_v13  ;;  %v575_v24 = vand.u32 7, %v2550_v14  ;;  %v568_v26 = vand.u32 7, %v2553_v15  ;;  %s2360_s11 = smov [#allocation6]  }
  0x3f   : > { %2015 = vmatprep.subr.bf16.mxu0 %v2224_v2  ;;  %2081 = vmatprep.subr.bf16.mxu1 %v2224_v2  ;;  %v582_v27 = vand.u32 7, %v2556_v16  ;;  %v2586_v28 = vadd.s32 64, %v2547_v13  ;;  %v2589_v29 = vadd.s32 80, %v2547_v13  ;;  %v3559_v30 = vand.u32 7, %v2559_v17 }
  0x40   : > { %v3558_v31 = vand.u32 7, %v2562_v18  ;;  %v3568_v32 = vand.u32 7, %v2565_v19  ;;  %v666_v33 = vand.u32 7, %v2568_v20  ;;  %vm878_vm1 = vcmp.lt.s32.totalorder %v2547_v13, 7 }
  0x41   : > { %v3560_v36 = vand.u32 7, %v2571_v21  ;;  %v3566_v37 = vand.u32 7, %v2574_v22  ;;  %v2599_v38 = vadd.s32 88, %v2547_v13  ;;  %v2602_v39 = vadd.s32 96, %v2547_v13 }
  0x42   : > { %2016 = vmatpush3.bf16.msra.mxu0 %v2224_v2  ;;  %2085 = vmatpush3.bf16.msra.mxu1 %v2224_v2  ;;  %v2607_v44 = vadd.s32 72, %v2547_v13  ;;  %v2610_v45 = vadd.s32 104, %v2547_v13  ;;  %vm2616_vm2 = vcmp.lt.s32.totalorder %v561_v23, 7  ;;  %vm2622_vm3 = vcmp.lt.s32.totalorder %v568_v26, 7 }
  0x43   : > { %2017 = vmatprep.subr.bf16.mxu0 %v2225_v5  ;;  %2082 = vmatprep.subr.bf16.mxu1 %v2225_v5  ;;  %v3565_v52 = vand.u32 7, %v2586_v28  ;;  %v3562_v53 = vand.u32 7, %v2589_v29  ;;  %v3563_v63 = vand.u32 7, %v2599_v38  ;;  %vm2642_vm4 = vcmp.lt.s32.totalorder %v575_v24, 7 }
  0x44   : > { %v3564_v2 = vand.u32 7, %v2607_v44  ;;  %v645_v3 = vand.u32 7, %v2602_v39  ;;  %v3567_v4 = vand.u32 7, %v2610_v45  ;;  %vm2663_vm5 = vcmp.lt.s32.totalorder %v582_v27, 7 }
  0x45   : > { %vm2671_vm6 = vcmp.lt.s32.totalorder %v3559_v30, 7  ;;  %vm2680_vm8 = vcmp.lt.s32.totalorder %v3560_v36, 7  ;;  %vm2697_vm9 = vcmp.lt.s32.totalorder %v3558_v31, 7  ;;  %vm2731_vm10 = vcmp.lt.s32.totalorder %v3566_v37, 7  ;;  %v2236_v30 = vld [vmem:[%s3550_s3 + $0x10] sm:$0xff]  }
  0x46   : > { %2018 = vmatpush3.bf16.msra.mxu0 %v2225_v5  ;;  %2086 = vmatpush3.bf16.msra.mxu1 %v2225_v5  ;;  %vm2741_vm11 = vcmp.lt.s32.totalorder %v3562_v53, 7  ;;  %vm2755_vm12 = vcmp.lt.s32.totalorder %v3565_v52, 7  ;;  %vm2761_vm13 = vcmp.lt.s32.totalorder %v3564_v2, 7  ;;  %vm2767_vm14 = vcmp.lt.s32.totalorder %v3563_v63, 7 }
  0x47   : > { %vm2789_vm15 = vcmp.lt.s32.totalorder %v645_v3, 7  ;;  %v3621_v14 = vand.u32 7, %v2571_v21  ;;  %v3635_v21 = vmov 0  ;;  %v3659_v52 = vand.u32 7, %v2565_v19 }
  0x49   : > { %2020 = vmatmul.mubr.msk.bf16.vlgmr.msra.gmra.mrb[0].mxu0 %vm402_vm0, %v309_v6  ;;  %2032 = vmatmul.mubr.msk.bf16.vlgmr.msra.gmra.mrb[0].mxu1 %vm402_vm0, %v321_v7 }
  0x4a   : > { %2023 = vmatprep.mubr.msk.bf16.mxu0 %vm402_vm0, %v311_v8 }
  0x51   : > { %2024 = vmatmul.mubr.msk.bf16.gmra.mrb[4].mxu0 %vm402_vm0, %v313_v9 }
  0x52   : > { %2027 = vmatprep.mubr.msk.bf16.mxu0 %vm402_vm0, %v315_v10 }
  0x59   : > { %2028 = vmatmul.mubr.msk.bf16.gmra.mrb[8].mxu0 %vm402_vm0, %v317_v11  ;;  %vm2795_vm0 = vcmp.lt.s32.totalorder %v3567_v4, 7 }
 0x11c   : > { %v2021_v34 = vpop.f32.mrb[0].mxu0  ;;  %v2033_v35 = vpop.f32.mrb[0].mxu1 }
 0x11d   : > { %v470_v40 = vadd.f32 %v2021_v34, %v2581_v25  ;;  %v518_v41 = vadd.f32 %v2033_v35, %v2581_v25  ;;  %v461_v42 = vpop.f32.mrb[1].mxu0  ;;  %v509_v43 = vpop.f32.mrb[1].mxu1 }
 0x11e   : > { %v462_v46 = vadd.f32 %v2581_v25, %v461_v42  ;;  %v510_v47 = vadd.f32 %v2581_v25, %v509_v43  ;;  %v2022_v48 = vpop.f32.mrb[2].mxu0  ;;  %v2034_v49 = vpop.f32.mrb[2].mxu1 }
 0x11f   : > { %v2628_v54 = vmax.f32 %v470_v40, 0.0  ;;  %v2630_v55 = vmax.f32 %v518_v41, 0.0  ;;  %v473_v56 = vadd.f32 %v2022_v48, %v2581_v25  ;;  %v521_v57 = vadd.f32 %v2034_v49, %v2581_v25  ;;  %v464_v58 = vpop.f32.mrb[3].mxu0  ;;  %v512_v59 = vpop.f32.mrb[3].mxu1 }
 0x120   : > { %v2634_v60 = vmax.f32 %v462_v46, 0.0  ;;  %v2636_v61 = vmax.f32 %v510_v47, 0.0  ;;  %v465_v62 = vadd.f32 %v2581_v25, %v464_v58  ;;  %v513_v1 = vadd.f32 %v2581_v25, %v512_v59 }
 0x121   : > { %v864_v6 = vrot.slane %v2628_v54, 1  ;;  %v2655_v10 = vmax.f32 %v473_v56, 0.0  ;;  %v2657_v11 = vmax.f32 %v521_v57, 0.0  ;;  %v3556_v57 = vmov 0  }
 0x122   : > { %v2659_v12 = vmax.f32 %v465_v62, 0.0  ;;  %v3561_v35 = vrot.slane %v2634_v60, 1  ;;  %v2684_v56 = vmax.f32 %v513_v1, 0.0  ;;  %305 = vst.msk [vmem:[#allocation2 + $0x20] sm:$0xf0] %vm3569_vm7, %v3556_v57  ;;  %v3652_v39 = vrot.slane %v2636_v61, 1 }
 0x123   : > { %v865_v47 = vrot.slane %v2655_v10, 1  ;;  %306 = vst.msk [vmem:[#allocation2 + $0x48] sm:$0xf0] %vm3569_vm7, %v3556_v57  ;;  %v2142_v7 = vpack.i.bf16 %v2655_v10, %v2628_v54  ;;  %vm2853_vm7 = vcmp.gt.s32.totalorder %v561_v23, 0  ;;  %v3631_v23 = vmov 0 }
 0x124   : > { %v2025_v41 = vpop.f32.mrb[4].mxu0  ;;  %v863_v59 = vrot.slane %v2659_v12, 1  ;;  %v2147_v58 = vpack.i.bf16 %v2659_v12, %v2634_v60  ;;  %v3657_v20 = vrot.slane %v2634_v60, 1 }
 0x125   : > { %v477_v48 = vpop.f32.mrb[5].mxu0  ;;  %v486_v62 = vadd.f32 %v2025_v41, %v2581_v25  ;;  %v891_v41 = vsel %vm878_vm1, %v864_v6, %v865_v47  ;;  %2143 = vrot.lane.b32.xlu0 %v2142_v7, %s2356_s18 }
 0x126   : > { %v2026_v40 = vpop.f32.mrb[6].mxu0  ;;  %v478_v9 = vadd.f32 %v2581_v25, %v477_v48  ;;  %v892_v43 = vsel %vm878_vm1, %v863_v59, %v864_v6 }
 0x127   : > { %v489_v57 = vadd.f32 %v2026_v40, %v2581_v25  ;;  %v480_v5 = vpop.f32.mrb[7].mxu0  ;;  %v2707_v46 = vmax.f32 %v486_v62, 0.0  ;;  %v893_v40 = vsel %vm878_vm1, %v3561_v35, %v863_v59  ;;  %v928_v7 = vsel %vm2622_vm3, %v892_v43, 0.0 }
 0x128   : > { %v481_v8 = vadd.f32 %v2581_v25, %v480_v5  ;;  %v2717_v48 = vmax.f32 %v478_v9, 0.0  ;;  %v927_v62 = vsel %vm2616_vm2, %v893_v40, 0.0  ;;  %vm2806_vm2 = vcmp.lt.s32.totalorder %v3568_v32, 7 }
 0x129   : > { %v2719_v31 = vmax.f32 %v489_v57, 0.0  ;;  %v2152_v36 = vpack.i.bf16 %v928_v7, %v927_v62  ;;  %v868_v50 = vrot.slane %v2707_v46, 1  ;;  %2148 = vrot.lane.b32.xlu0 %v2147_v58, %s2356_s18  ;;  %v929_v57 = vsel %vm2642_vm4, %v891_v41, 0.0 }
 0x12a   : > { %v2727_v6 = vmax.f32 %v481_v8, 0.0  ;;  %v866_v51 = vrot.slane %v2717_v48, 1  ;;  %vm2812_vm3 = vcmp.lt.s32.totalorder %v666_v33, 7  ;;  %v2212_v8 = vpack.i.bf16 %v2657_v11, %v2630_v55 }
 0x12b   : > { %v869_v43 = vrot.slane %v2719_v31, 1  ;;  %2153 = vrot.lane.b32.xlu1 %v2152_v36, %s2357_s20  ;;  %v2167_v35 = vpack.i.bf16 %v2719_v31, %v2707_v46  ;;  %v3648_v36 = vand.u32 7, %v2610_v45 }
 0x12c   : > { %v867_v40 = vrot.slane %v2727_v6, 1  ;;  %v2029_v62 = vpop.f32.mrb[8].mxu0  ;;  %v2157_v7 = vpack.i.bf16 %v2727_v6, %v2717_v48  ;;  %v890_v59 = vsel %vm878_vm1, %v865_v47, %v866_v51  ;;  %v770_v32 = vrot.slane %v2727_v6, 7 }
 0x12d   : > { %v502_v0 = vadd.f32 %v2029_v62, %v2581_v25  ;;  %v493_v41 = vpop.f32.mrb[9].mxu0  ;;  %v887_v5 = vsel %vm878_vm1, %v868_v50, %v869_v43  ;;  %v930_v2 = vsel %vm2663_vm5, %v890_v59, 0.0  ;;  %vm2829_vm5 = vcmp.gt.s32.totalorder %v582_v27, 0 }
 0x12e   : > { %v494_v53 = vadd.f32 %v2581_v25, %v493_v41  ;;  %v2030_v63 = vpop.f32.mrb[10].mxu0  ;;  %v888_v62 = vsel %vm878_vm1, %v867_v40, %v868_v50  ;;  %v889_v47 = vsel %vm878_vm1, %v866_v51, %v867_v40  ;;  %v2162_v37 = vpack.i.bf16 %v930_v2, %v929_v57  ;;  %2158 = vrot.lane.b32.xlu0 %v2157_v7, %s2356_s18 }
 0x12f   : > { %v2799_v34 = vmax.f32 %v502_v0, 0.0  ;;  %v505_v59 = vadd.f32 %v2030_v63, %v2581_v25  ;;  %v496_v50 = vpop.f32.mrb[11].mxu0  ;;  %v931_v51 = vsel %vm2671_vm6, %v889_v47, 0.0  ;;  %v2234_v63 = vld [vmem:[%s3550_s3] sm:$0xff]   ;;  %v772_v2 = vrot.slane %v2719_v31, 7 }
 0x130   : > { %v2821_v42 = vmax.f32 %v494_v53, 0.0  ;;  %v497_v57 = vadd.f32 %v2581_v25, %v496_v50  ;;  %v932_v0 = vsel %vm2680_vm8, %v888_v62, 0.0  ;;  %vm2836_vm6 = vcmp.gt.s32.totalorder %v568_v26, 0  ;;  %2163 = vrot.lane.b32.xlu1 %v2162_v37, %s2357_s20  ;;  %2035 = vmatprep.subr.bf16.mxu1 %v2234_v63 }
 0x131   : > { %v2840_v7 = vmax.f32 %v505_v59, 0.0  ;;  %v2172_v25 = vpack.i.bf16 %v932_v0, %v931_v51  ;;  %v933_v16 = vsel %vm2697_vm9, %v887_v5, 0.0  ;;  %vm2847_vm8 = vcmp.gt.s32.totalorder %v575_v24, 0  ;;  %2036 = vmatpush3.bf16.msra.mxu1 %v2234_v63 }
 0x132   : > { %v872_v26 = vrot.slane %v2799_v34, 1  ;;  %v870_v49 = vrot.slane %v2821_v42, 1  ;;  %v2860_v1 = vmax.f32 %v497_v57, 0.0  ;;  %vm2864_vm9 = vcmp.gt.s32.totalorder %v3621_v14, 0 }
 0x133   : > { %v3622_v24 = vmov 0  ;;  %v873_v5 = vrot.slane %v2840_v7, 1  ;;  %v875_v62 = vrot.slane %v2684_v56, 1  ;;  %v2187_v59 = vpack.i.bf16 %v2840_v7, %v2799_v34  ;;  %2173 = vrot.lane.b32.xlu0 %v2172_v25, %s2357_s20  ;;  %v2235_v25 = vld [vmem:[%s3550_s3 + $0x8] sm:$0xff]  }
 0x134   : > { %v3623_v24 = vsel %vm2864_vm9, 4294967295, %v3622_v24  ;;  %v3624_v50 = vand.u32 7, %v2559_v17  ;;  %v3625_v51 = vmov 0  ;;  %v871_v57 = vrot.slane %v2860_v1, 1  ;;  %2168 = vrot.lane.b32.xlu1 %v2167_v35, %s2356_s18  ;;  %2037 = vmatprep.subr.bf16.mxu1 %v2235_v25 }
 0x135   : > { %v2182_v63 = vpack.i.bf16 %v2860_v1, %v2821_v42  ;;  %v886_v0 = vsel %vm878_vm1, %v869_v43, %v870_v49  ;;  %v3627_v17 = vand.u32 7, %v2562_v18  ;;  %v3633_v18 = vrot.slane %v2636_v61, 1  ;;  %2038 = vmatpush3.bf16.msra.mxu1 %v2235_v25 }
 0x136   : > { %vm2875_vm4 = vcmp.gt.s32.totalorder %v3624_v50, 0  ;;  %v3630_v50 = vand.u32 7, %v2574_v22  ;;  %v934_v43 = vsel %vm2731_vm10, %v886_v0, 0.0  ;;  %v883_v22 = vsel %vm878_vm1, %v872_v26, %v873_v5  ;;  %2039 = vmatprep.subr.bf16.mxu1 %v2236_v30 }
 0x137   : > { %v3626_v51 = vsel %vm2875_vm4, 4294967295, %v3625_v51  ;;  %vm2890_vm9 = vcmp.gt.s32.totalorder %v3627_v17, 0  ;;  %v882_v17 = vsel %vm878_vm1, %v873_v5, %v3633_v18  ;;  %v3634_v37 = vand.u32 7, %v2586_v28  ;;  %2183 = vrot.lane.b32.xlu0 %v2182_v63, %s2356_s18 }
 0x138   : > { %vm2896_vm4 = vcmp.gt.s32.totalorder %v3630_v50, 0  ;;  %v3637_v35 = vand.u32 7, %v2607_v44  ;;  %v2177_v0 = vpack.i.bf16 %v934_v43, %v933_v16  ;;  %v884_v18 = vsel %vm878_vm1, %v871_v57, %v872_v26 }
 0x139   : > { %v3632_v23 = vsel %vm2896_vm4, 4294967295, %v3631_v23  ;;  %vm2916_vm4 = vcmp.gt.s32.totalorder %v3634_v37, 0  ;;  %v885_v5 = vsel %vm878_vm1, %v870_v49, %v871_v57  ;;  %v937_v28 = vsel %vm2741_vm11, %v883_v22, 0.0  ;;  %2040 = vmatpush3.bf16.msra.mxu1 %v2236_v30 }
 0x13a   : > { %v3636_v21 = vsel %vm2916_vm4, 4294967295, %v3635_v21  ;;  %vm2922_vm10 = vcmp.gt.s32.totalorder %v3637_v35, 0  ;;  %v3640_v37 = vand.u32 7, %v2599_v38  ;;  %v935_v44 = vsel %vm2755_vm12, %v885_v5, 0.0  ;;  %2178 = vrot.lane.b32.xlu1 %v2177_v0, %s2357_s20 }
 0x13b   : > { %v936_v16 = vsel %vm2761_vm13, %v884_v18, 0.0  ;;  %v938_v26 = vsel %vm2767_vm14, %v882_v17, 0.0  ;;  %v3643_v49 = vand.u32 7, %v2589_v29  ;;  %vm2957_vm12 = vcmp.gt.s32.totalorder %v645_v3, 0  ;;  %2188 = vrot.lane.b32.xlu0 %v2187_v59, %s2356_s18 }
 0x13c   : > { %vm2934_vm4 = vcmp.gt.s32.totalorder %v3640_v37, 0  ;;  %vm2963_vm13 = vcmp.gt.s32.totalorder %v3648_v36, 0  ;;  %v2192_v29 = vpack.i.bf16 %v936_v16, %v935_v44  ;;  %v2202_v25 = vpack.i.bf16 %v938_v26, %v937_v28 }
 0x13d   : > { %vm2948_vm11 = vcmp.gt.s32.totalorder %v3643_v49, 0  ;;  %v3651_v43 = vrot.slane %v2630_v55, 1  ;;  %v881_v3 = vsel %vm878_vm1, %v3652_v39, %v875_v62  ;;  %vm2978_vm14 = vcmp.gt.s32.totalorder %v666_v33, 0 }
 0x13e   : > { %v939_v63 = vsel %vm2789_vm15, %v881_v3, 0.0  ;;  %v3655_v35 = vrot.slane %v2657_v11, 1  ;;  %vm3001_vm15 = vcmp.gt.s32.totalorder %v3659_v52, 0  ;;  %v3662_v44 = vrot.slane %v2655_v10, 7  ;;  %2193 = vrot.lane.b32.xlu1 %v2192_v29, %s2357_s20 }
 0x13f   : > { %v880_v17 = vsel %vm878_vm1, %v875_v62, %v3651_v43  ;;  %v3656_v18 = vmov %v3651_v43  ;;  %v3663_v16 = vrot.slane %v2628_v54, 7  ;;  %v3666_v36 = vrot.slane %v2659_v12, 7  ;;  %2203 = vrot.lane.b32.xlu0 %v2202_v25, %s2357_s20 }
 0x140   : > { %v940_v22 = vsel %vm2795_vm0, %v880_v17, 0.0  ;;  %v879_v62 = vsel %vm878_vm1, %v3656_v18, %v3655_v35  ;;  %v3658_v33 = vmov %v3655_v35  ;;  %v3669_v17 = vrot.slane %v2634_v60, 7 }
 0x141   : > { %v894_v0 = vsel %vm878_vm1, %v3658_v33, %v3657_v20  ;;  %v2207_v5 = vpack.i.bf16 %v940_v22, %v939_v63  ;;  %v941_v28 = vsel %vm2806_vm2, %v879_v62, 0.0  ;;  %vm3664_vm1 = vcmp.lt.s32.totalorder %v2547_v13, 1 }
 0x142   : > { %v942_v37 = vsel %vm2812_vm3, %v894_v0, 0.0  ;;  %v3015_v26 = vsel %vm3664_vm1, %v3663_v16, %v3662_v44  ;;  %v3665_v49 = vmov %v3663_v16  ;;  %vm3667_vm0 = vmmov %vm3664_vm1  ;;  %v3668_v43 = vmov %v3666_v36 }
 0x143   : > { %v2217_v19 = vpack.i.bf16 %v942_v37, %v941_v28  ;;  %v3023_v40 = vsel %vm3667_vm0, %v3666_v36, %v3665_v49  ;;  %v833_v4 = vsel %vm2829_vm5, %v3015_v26, 0.0  ;;  %vm3670_vm2 = vmmov %vm3667_vm0  ;;  %v3671_v3 = vmov %v3669_v17  ;;  %2213 = vrot.lane.b32.xlu0 %v2212_v8, %s2356_s18 }
 0x144   : > { %v796_v39 = vsel %vm3670_vm2, %v3669_v17, %v3668_v43  ;;  %v832_v54 = vsel %vm2847_vm8, %v3023_v40, 0.0  ;;  %v3672_v63 = vrot.slane %v2657_v11, 7  ;;  %vm3673_vm3 = vmmov %vm3667_vm0  ;;  %v3674_v30 = vrot.slane %v2717_v48, 7 }
 0x145   : > { %v831_v12 = vsel %vm2836_vm6, %v796_v39, 0.0  ;;  %vm3675_vm1 = vmmov %vm3667_vm0  ;;  %v778_v27 = vrot.slane %v2684_v56, 7  ;;  %v3677_v53 = vmov %v3662_v44  ;;  %vm3679_vm8 = vnez %v3623_v24 }
 0x146   : > { %v797_v22 = vsel %vm3673_vm3, %v3672_v63, %v3671_v3  ;;  %v3052_v59 = vsel %vm3675_vm1, %v3674_v30, %v770_v32  ;;  %v3676_v35 = vmov %v3674_v30  ;;  %vm3678_vm6 = vmmov %vm3667_vm0  ;;  %v775_v20 = vrot.slane %v2799_v34, 7 }
 0x147   : > { %v830_v60 = vsel %vm2853_vm7, %v797_v22, 0.0  ;;  %v3064_v18 = vsel %vm3678_vm6, %v3677_v53, %v3676_v35  ;;  %v835_v62 = vsel %vm3679_vm8, %v3052_v59, 0.0  ;;  %vm3680_vm0 = vnez %v3626_v51  ;;  %vm3682_vm7 = vmmov %vm3675_vm1 }
 0x148   : > { %v834_v29 = vsel %vm3680_vm0, %v3064_v18, 0.0  ;;  %v3681_v48 = vrot.slane %v2707_v46, 7  ;;  %vm3684_vm2 = vmmov %vm3675_vm1  ;;  %vm3685_vm3 = vnez %v3632_v23  ;;  %v3686_v52 = vrot.slane %v2860_v1, 7 }
 0x149   : > { %v3687_v28 = vrot.slane %v2821_v42, 7  ;;  %vm3689_vm6 = vmmov %vm3675_vm1  ;;  %v3691_v16 = vrot.slane %v2840_v7, 7  ;;  %v3693_v42 = vmov 0   ;;  %v3696_v40 = vrot.slane %v2636_v61, 7 }
 0x14a   : > { %v3079_v10 = vsel %vm3682_vm7, %v3681_v48, %v772_v2  ;;  %v3683_v15 = vmov %v3681_v48  ;;  %vm3690_vm7 = vnez %v3636_v21  ;;  %v3694_v25 = vmov %v3686_v52 }
 0x14b   : > { %v3087_v33 = vsel %vm3684_vm2, %v770_v32, %v3683_v15  ;;  %v837_v0 = vsel %vm3685_vm3, %v3079_v10, 0.0  ;;  %v3101_v46 = vsel %vm3675_vm1, %v3687_v28, %v3686_v52  ;;  %v3688_v6 = vmov %v3687_v28 }
 0x14c   : > { %v836_v34 = vsel %vm2890_vm9, %v3087_v33, 0.0  ;;  %v3109_v32 = vsel %vm3689_vm6, %v772_v2, %v3688_v6  ;;  %v839_v44 = vsel %vm2922_vm10, %v3101_v46, 0.0  ;;  %vm3574_vm2 = vcmask 388096   ;;  %vm3695_vm6 = vmmov %vm3675_vm1 }
 0x14d   : > { %v838_v37 = vsel %vm3690_vm7, %v3109_v32, 0.0  ;;  %v3122_v31 = vsel %vm3675_vm1, %v775_v20, %v3691_v16  ;;  %v3692_v2 = vpack.i.bf16 %v2684_v56, %v2636_v61  ;;  %302 = vst.msk [vmem:[#allocation2] sm:$0xf] %vm3574_vm2, %v3693_v42  ;;  %303 = vst.msk [vmem:[#allocation2 + $0x28] sm:$0xf] %vm3574_vm2, %v3693_v42  ;;  %v3136_v49 = vsel %vm3695_vm6, %v3694_v25, %v775_v20 }
 0x14e   : > { %v841_v36 = vsel %vm2934_vm4, %v3122_v31, 0.0  ;;  %v3145_v56 = vsel %vm3675_vm1, %v3696_v40, %v778_v27  ;;  %v3697_v43 = vmov %v3696_v40  ;;  %v3698_v17 = vmov %v3691_v16  ;;  %vm3699_vm2 = vmmov %vm3675_vm1 }
 0x14f   : > { %2198 = vrot.lane.b32.xlu1 %v3692_v2, %s2356_s18  ;;  %v3153_v1 = vsel %vm3699_vm2, %v3698_v17, %v3697_v43  ;;  %v840_v39 = vsel %vm2948_vm11, %v3136_v49, 0.0  ;;  %v843_v63 = vsel %vm2963_vm13, %v3145_v56, 0.0  ;;  %v3700_v61 = vrot.slane %v2657_v11, 7  ;;  %vm3702_vm6 = vmmov %vm3675_vm1  ;;  %s2288_s18 = sshll.u32 %s2360_s11, 4  ;;  %s2289_s18 = int_to_ptr.vmem [resolvable:$false] %s2288_s18 }
 0x150   : > { %v842_v3 = vsel %vm2957_vm12, %v3153_v1, 0.0  ;;  %v3701_v7 = vrot.slane %v2630_v55, 7  ;;  %vm3704_vm2 = vmmov %vm3675_vm1  ;;  %vm1088_vm1 = vcmask 261120   ;;  %vm1147_vm5 = vcmask 392192  }
 0x151   : > { %vm3706_vm9 = vcmask 388096   ;;  %vm1775_vm12 = vcmask 519168  }
 0x152   : > { %v3170_v22 = vsel %vm3702_vm6, %v3701_v7, %v3700_v61  ;;  %v3703_v30 = vmov %v3701_v7  ;;  %vm1071_vm6 = vcmask 130048   ;;  %vm3709_vm11 = vmmov %vm3706_vm9 }
 0x153   : > { %v3176_v35 = vsel %vm3704_vm2, %v778_v27, %v3703_v30  ;;  %v845_v53 = vsel %vm2978_vm14, %v3170_v22, 0.0  ;;  %2208 = vrot.lane.b32.xlu1 %v2207_v5, %s2357_s20  ;;  %vm3705_vm2 = vcmask 392196  }
 0x154   : > { %v844_v20 = vsel %vm3001_vm15, %v3176_v35, 0.0  ;;  %vm1121_vm15 = vcmask 1043456   ;;  %vm3707_vm4 = vmmov %vm3705_vm2 }
 0x157   : > { %2218 = vrot.lane.b32.xlu1 %v2217_v19, %s2357_s20  ;;  %s2290_s20 = scalar_lea.vmem %s2289_s18, 2048 }
 0x197   : > { %v2144_v13 = vpop.permute.xlu0 %2143 }
 0x198   : > { %v2146_v16 = vunpack.i.h.bf16 %v2144_v13  ;;  %v2145_v55 = vunpack.i.l.bf16 %v2144_v13 }
 0x19a   : > { %v1074_v7 = vsel %vm1071_vm6, %v832_v54, %v2145_v55 }
 0x19b   : > { %v2149_v27 = vpop.permute.xlu0 %2148 }
 0x19c   : > { %v2151_v15 = vunpack.i.h.bf16 %v2149_v27  ;;  %v2150_v52 = vunpack.i.l.bf16 %v2149_v27 }
 0x19d   : > { %v2154_v48 = vpop.permute.xlu1 %2153 }
 0x19e   : > { %v2156_v28 = vunpack.i.h.bf16 %v2154_v48  ;;  %v2155_v6 = vunpack.i.l.bf16 %v2154_v48  ;;  %v1072_v11 = vsel %vm1071_vm6, %v830_v60, %v2150_v52  ;;  %v1073_v8 = vsel %vm1071_vm6, %v831_v12, %v2151_v15 }
 0x19f   : > { %v1075_v60 = vsel %vm1071_vm6, %v833_v4, %v2146_v16 }
 0x1a0   : > { %v1089_v2 = vsel %vm1088_vm1, %v1072_v11, %v2155_v6  ;;  %v1090_v5 = vsel %vm1088_vm1, %v1073_v8, %v2156_v28  ;;  %v2159_v19 = vpop.permute.xlu0 %2158 }
 0x1a1   : > { %v1105_v42 = vpack.c.bf16 %v1090_v5, %v1089_v2  ;;  %v2161_v40 = vunpack.i.h.bf16 %v2159_v19  ;;  %v2160_v43 = vunpack.i.l.bf16 %v2159_v19 }
 0x1a2   : > { %v2164_v25 = vpop.permute.xlu1 %2163 }
 0x1a3   : > { %v2166_v17 = vunpack.i.h.bf16 %v2164_v25  ;;  %v2165_v61 = vunpack.i.l.bf16 %v2164_v25  ;;  %v1122_v12 = vrot.slane %v1105_v42, 4  ;;  %v1077_v47 = vsel %vm1071_vm6, %v835_v62, %v2161_v40 }
 0x1a4   : > { %v1076_v26 = vsel %vm1071_vm6, %v834_v29, %v2160_v43 }
 0x1a5   : > { %v1092_v30 = vsel %vm1088_vm1, %v1075_v60, %v2166_v17  ;;  %v1091_v13 = vsel %vm1088_vm1, %v1074_v7, %v2165_v61  ;;  %v2174_v27 = vpop.permute.xlu0 %2173  ;;  %1146 = vst.msk [vmem:[#allocation2] sm:$0xf0] %vm3705_vm2, %v1122_v12 }
 0x1a6   : > { %v1106_v48 = vpack.c.bf16 %v1092_v30, %v1091_v13  ;;  %v2176_v15 = vunpack.i.h.bf16 %v2174_v27  ;;  %v2175_v52 = vunpack.i.l.bf16 %v2174_v27  ;;  %v2169_v28 = vpop.permute.xlu1 %2168 }
 0x1a7   : > { %v2171_v4 = vunpack.i.h.bf16 %v2169_v28  ;;  %v2170_v55 = vunpack.i.l.bf16 %v2169_v28 }
 0x1a8   : > { %v1123_v54 = vrot.slane %v1106_v48, 4  ;;  %v1093_v6 = vsel %vm1088_vm1, %v1076_v26, %v2175_v52  ;;  %v1094_v16 = vsel %vm1088_vm1, %v1077_v47, %v2176_v15 }
 0x1a9   : > { %v1107_v11 = vpack.c.bf16 %v1094_v16, %v1093_v6  ;;  %v2184_v24 = vpop.permute.xlu0 %2183  ;;  %v1079_v29 = vsel %vm1071_vm6, %v837_v0, %v2171_v4  ;;  %v1078_v2 = vsel %vm1071_vm6, %v836_v34, %v2170_v55 }
 0x1aa   : > { %v1124_v59 = vsel %vm1121_vm15, %v1122_v12, %v1123_v54  ;;  %v2186_v5 = vunpack.i.h.bf16 %v2184_v24  ;;  %v2185_v19 = vunpack.i.l.bf16 %v2184_v24 }
 0x1ab   : > { %1148 = vst.msk [vmem:[#allocation2 + $0x8] sm:$0xff] %vm1147_vm5, %v1124_v59  ;;  %v1125_v51 = vrot.slane %v1107_v11, 4 }
 0x1ac   : > { %v2179_v8 = vpop.permute.xlu1 %2178  ;;  %v1157_v23 = vld [vmem:[#allocation2] sm:$0xff]  ;;  %v1081_v61 = vsel %vm1071_vm6, %v839_v44, %v2186_v5  ;;  %v1080_v7 = vsel %vm1071_vm6, %v838_v37, %v2185_v19 }
 0x1ad   : > { %v2181_v62 = vunpack.i.h.bf16 %v2179_v8  ;;  %v2180_v18 = vunpack.i.l.bf16 %v2179_v8  ;;  %v1126_v42 = vsel %vm1121_vm15, %v1123_v54, %v1125_v51  ;;  %v2189_v43 = vpop.permute.xlu0 %2188  ;;  %2041 = vmatprep.mubr.msk.bf16.mxu1 %vm1147_vm5, %v1157_v23 }
 0x1ae   : > { %1149 = vst.msk [vmem:[#allocation2 + $0x10] sm:$0xff] %vm1147_vm5, %v1126_v42  ;;  %v2191_v0 = vunpack.i.h.bf16 %v2189_v43  ;;  %v2190_v33 = vunpack.i.l.bf16 %v2189_v43 }
 0x1af   : > { %v1095_v25 = vsel %vm1088_vm1, %v1078_v2, %v2180_v18  ;;  %v1096_v40 = vsel %vm1088_vm1, %v1079_v29, %v2181_v62 }
 0x1b0   : > { %v1108_v10 = vpack.c.bf16 %v1096_v40, %v1095_v25  ;;  %v2194_v14 = vpop.permute.xlu1 %2193  ;;  %v1083_v21 = vsel %vm1071_vm6, %v841_v36, %v2191_v0  ;;  %v1082_v32 = vsel %vm1071_vm6, %v840_v39, %v2190_v33 }
 0x1b1   : > { %v2196_v17 = vunpack.i.h.bf16 %v2194_v14  ;;  %v2195_v34 = vunpack.i.l.bf16 %v2194_v14  ;;  %v2204_v13 = vpop.permute.xlu0 %2203 }
 0x1b2   : > { %v1127_v60 = vrot.slane %v1108_v10, 4  ;;  %v2206_v46 = vunpack.i.h.bf16 %v2204_v13  ;;  %v2205_v48 = vunpack.i.l.bf16 %v2204_v13  ;;  %v1158_v15 = vld [vmem:[#allocation2 + $0x8] sm:$0xff]  ;;  %v2237_v10 = vld [vmem:[%s3552_s5] sm:$0xff]  }
 0x1b3   : > { %v1098_v12 = vsel %vm1088_vm1, %v1081_v61, %v2196_v17  ;;  %v1097_v30 = vsel %vm1088_vm1, %v1080_v7, %v2195_v34  ;;  %2042 = vmatmul.mubr.msk.bf16.vlgmr.msra.gmra.mrb[4].mxu1 %vm1147_vm5, %v1158_v15  ;;  %2061 = vmatprep.subr.bf16.mxu0 %v2237_v10 }
 0x1b4   : > { %v1128_v27 = vsel %vm1121_vm15, %v1125_v51, %v1127_v60  ;;  %1151 = vst.msk [vmem:[#allocation2 + $0x20] sm:$0xf] %vm3706_vm9, %v1127_v60  ;;  %v1109_v9 = vpack.c.bf16 %v1098_v12, %v1097_v30  ;;  %v1099_v28 = vsel %vm1088_vm1, %v1082_v32, %v2205_v48  ;;  %v1100_v47 = vsel %vm1088_vm1, %v1083_v21, %v2206_v46 }
 0x1b5   : > { %1150 = vst.msk [vmem:[#allocation2 + $0x18] sm:$0xff] %vm1147_vm5, %v1128_v27  ;;  %v1110_v50 = vpack.c.bf16 %v1100_v47, %v1099_v28  ;;  %v2214_v4 = vpop.permute.xlu0 %2213  ;;  %v1159_v31 = vld [vmem:[#allocation2 + $0x10] sm:$0xff]  ;;  %2062 = vmatpush3.bf16.msra.mxu0 %v2237_v10  ;;  %v3391_v28 = vld [vmem:[%s3551_s4] ss:$0 sm:$0xff] }
 0x1b6   : > { %v1129_v52 = vrot.slane %v1109_v9, 4  ;;  %2045 = vmatprep.mubr.msk.bf16.mxu1 %vm1147_vm5, %v1159_v31  ;;  %v2216_v16 = vunpack.i.h.bf16 %v2214_v4  ;;  %v2215_v55 = vunpack.i.l.bf16 %v2214_v4 }
 0x1b7   : > { %v1130_v49 = vrot.slane %v1110_v50, 4 }
 0x1b8   : > { %1152 = vst.msk [vmem:[#allocation2 + $0x28] sm:$0xf0] %vm3707_vm4, %v1129_v52  ;;  %v1087_v1 = vsel %vm1071_vm6, %v845_v53, %v2216_v16 }
 0x1b9   : > { %v1131_v11 = vsel %vm1121_vm15, %v1129_v52, %v1130_v49 }
 0x1ba   : > { %1153 = vst.msk [vmem:[#allocation2 + $0x30] sm:$0xff] %vm1147_vm5, %v1131_v11 }
 0x1bb   : > { %v1161_v58 = vld [vmem:[#allocation2 + $0x20] sm:$0xff] }
 0x1bc   : > { %v1160_v8 = vld [vmem:[#allocation2 + $0x18] sm:$0xff] }
 0x1bd   : > { %2046 = vmatmul.mubr.msk.bf16.gmra.mrb[8].mxu1 %vm1147_vm5, %v1160_v8 }
 0x1be   : > { %2049 = vmatprep.mubr.msk.bf16.mxu1 %vm1147_vm5, %v1161_v58 }
 0x1bf   : > { %v1162_v41 = vld [vmem:[#allocation2 + $0x28] sm:$0xff] }
 0x1c1   : > { %v2199_v44 = vpop.permute.xlu1 %2198  ;;  %v1163_v35 = vld [vmem:[#allocation2 + $0x30] sm:$0xff] }
 0x1c2   : > { %v2201_v37 = vunpack.i.h.bf16 %v2199_v44  ;;  %v2200_v26 = vunpack.i.l.bf16 %v2199_v44 }
 0x1c4   : > { %v1085_v54 = vsel %vm1071_vm6, %v843_v63, %v2201_v37  ;;  %v1084_v6 = vsel %vm1071_vm6, %v842_v3, %v2200_v26  ;;  %v1086_v3 = vsel %vm1071_vm6, %v844_v20, %v2215_v55 }
 0x1c5   : > { %v2209_v38 = vpop.permute.xlu1 %2208  ;;  %2050 = vmatmul.mubr.msk.bf16.gmra.mrb[12].mxu1 %vm1147_vm5, %v1162_v41 }
 0x1c6   : > { %v2211_v36 = vunpack.i.h.bf16 %v2209_v38  ;;  %v2210_v39 = vunpack.i.l.bf16 %v2209_v38  ;;  %2053 = vmatprep.mubr.msk.bf16.mxu1 %vm1147_vm5, %v1163_v35 }
 0x1c8   : > { %v1101_v24 = vsel %vm1088_vm1, %v1084_v6, %v2210_v39  ;;  %v1102_v59 = vsel %vm1088_vm1, %v1085_v54, %v2211_v36 }
 0x1c9   : > { %v1111_v57 = vpack.c.bf16 %v1102_v59, %v1101_v24  ;;  %v2219_v56 = vpop.permute.xlu1 %2218 }
 0x1ca   : > { %v2221_v63 = vunpack.i.h.bf16 %v2219_v56  ;;  %v2220_v51 = vunpack.i.l.bf16 %v2219_v56 }
 0x1cb   : > { %v1132_v62 = vrot.slane %v1111_v57, 4 }
 0x1cc   : > { %v1104_v18 = vsel %vm1088_vm1, %v1087_v1, %v2221_v63  ;;  %v1103_v29 = vsel %vm1088_vm1, %v1086_v3, %v2220_v51 }
 0x1cd   : > { %v1133_v2 = vsel %vm1121_vm15, %v1130_v49, %v1132_v62  ;;  %v1112_v45 = vpack.c.bf16 %v1104_v18, %v1103_v29 }
 0x1ce   : > { %1154 = vst.msk [vmem:[#allocation2 + $0x38] sm:$0xff] %vm1147_vm5, %v1133_v2 }
 0x1cf   : > { %v1134_v22 = vrot.slane %v1112_v45, 4 }
 0x1d1   : > { %v1135_v53 = vsel %vm1121_vm15, %v1132_v62, %v1134_v22  ;;  %1156 = vst.msk [vmem:[#allocation2 + $0x48] sm:$0xf] %vm3709_vm11, %v1134_v22 }
 0x1d2   : > { %1155 = vst.msk [vmem:[#allocation2 + $0x40] sm:$0xff] %vm1147_vm5, %v1135_v53 }
 0x1d5   : > { %v1164_v20 = vld [vmem:[#allocation2 + $0x38] sm:$0xff] }
 0x1d6   : > { %2054 = vmatmul.mubr.msk.bf16.gmra.mrb[16].mxu1 %vm1147_vm5, %v1164_v20 }
 0x1d8   : > { %v1166_v19 = vld [vmem:[#allocation2 + $0x48] sm:$0xff] }
 0x1d9   : > { %v1165_v5 = vld [vmem:[#allocation2 + $0x40] sm:$0xff] }
 0x1da   : > { %2057 = vmatprep.mubr.msk.bf16.mxu1 %vm1147_vm5, %v1165_v5 }
 0x1de   : > { %2058 = vmatmul.mubr.msk.bf16.gmra.mrb[20].mxu1 %vm1147_vm5, %v1166_v19 }
 0x286   : > { %v3300_v42 = vpop.f32.mrb[4].mxu1 }
 0x287   : > { %1416 = vrot.lane.b32.xlu0 %v3300_v42, %s2358_s9  ;;  %1352 = vrot.lane.b32.xlu1 %v3300_v42, %s2359_s8  ;;  %v1255_v25 = vpop.f32.mrb[5].mxu1 }
 0x288   : > { %v3306_v40 = vpop.f32.mrb[6].mxu1 }
 0x289   : > { %v1258_v43 = vpop.f32.mrb[7].mxu1 }
 0x28b   : > { %1418 = vrot.lane.b32.xlu1 %v3306_v40, %s2358_s9  ;;  %1354 = vrot.lane.b32.xlu0 %v3306_v40, %s2359_s8 }
 0x28f   : > { %1350 = vrot.lane.b32.xlu0 %v1258_v43, %s2359_s8 }
 0x290   : > { %v3312_v23 = vpop.f32.mrb[8].mxu1 }
 0x291   : > { %1360 = vrot.lane.b32.xlu1 %v3312_v23, %s2359_s8  ;;  %v3320_v14 = vpop.f32.mrb[9].mxu1 }
 0x292   : > { %v3322_v0 = vpop.f32.mrb[10].mxu1 }
 0x293   : > { %v3324_v33 = vpop.f32.mrb[11].mxu1  ;;  %1424 = vrot.lane.b32.xlu0 %v3312_v23, %s2358_s9 }
 0x295   : > { %1356 = vrot.lane.b32.xlu1 %v3320_v14, %s2359_s8 }
 0x297   : > { %1420 = vrot.lane.b32.xlu0 %v3320_v14, %s2358_s9 }
 0x298   : > { %v3330_v17 = vpop.f32.mrb[12].mxu1 }
 0x299   : > { %1426 = vrot.lane.b32.xlu1 %v3322_v0, %s2358_s9  ;;  %v1287_v34 = vpop.f32.mrb[13].mxu1 }
 0x29a   : > { %v3336_v61 = vpop.f32.mrb[14].mxu1 }
 0x29b   : > { %v1290_v7 = vpop.f32.mrb[15].mxu1  ;;  %1362 = vrot.lane.b32.xlu0 %v3322_v0, %s2359_s8 }
 0x29d   : > { %1422 = vrot.lane.b32.xlu1 %v3324_v33, %s2358_s9 }
 0x29f   : > { %1358 = vrot.lane.b32.xlu0 %v3324_v33, %s2359_s8 }
 0x2a1   : > { %1364 = vrot.lane.b32.xlu1 %v1287_v34, %s2359_s8 }
 0x2a3   : > { %1428 = vrot.lane.b32.xlu0 %v1287_v34, %s2358_s9 }
 0x2a5   : > { %1430 = vrot.lane.b32.xlu1 %v1290_v7, %s2358_s9 }
 0x2a7   : > { %1366 = vrot.lane.b32.xlu0 %v3336_v61, %s2359_s8 }
 0x2a9   : > { %v3342_v60 = vpop.f32.mrb[16].mxu1 }
 0x2aa   : > { %v3347_v12 = vpop.f32.mrb[17].mxu1  ;;  %1372 = vrot.lane.b32.xlu1 %v3342_v60, %s2359_s8 }
 0x2ab   : > { %v3349_v30 = vpop.f32.mrb[18].mxu1  ;;  %1436 = vrot.lane.b32.xlu0 %v3342_v60, %s2358_s9 }
 0x2ac   : > { %v3351_v13 = vpop.f32.mrb[19].mxu1 }
 0x2ae   : > { %1368 = vrot.lane.b32.xlu1 %v3347_v12, %s2359_s8 }
 0x2af   : > { %1432 = vrot.lane.b32.xlu0 %v3347_v12, %s2358_s9 }
 0x2b1   : > { %v2059_v27 = vpop.f32.mrb[20].mxu1 }
 0x2b2   : > { %v3359_v9 = vpop.f32.mrb[21].mxu1  ;;  %1438 = vrot.lane.b32.xlu1 %v3349_v30, %s2358_s9 }
 0x2b3   : > { %v2060_v46 = vpop.f32.mrb[22].mxu1  ;;  %1374 = vrot.lane.b32.xlu0 %v3349_v30, %s2359_s8 }
 0x2b4   : > { %v3361_v48 = vpop.f32.mrb[23].mxu1 }
 0x2b6   : > { %1434 = vrot.lane.b32.xlu1 %v3351_v13, %s2358_s9 }
 0x2b7   : > { %1370 = vrot.lane.b32.xlu0 %v3351_v13, %s2359_s8 }
 0x2ba   : > { %1380 = vrot.lane.b32.xlu1 %v2059_v27, %s2359_s8 }
 0x2bb   : > { %1440 = vrot.lane.b32.xlu0 %v3359_v9, %s2358_s9 }
 0x2be   : > { %1376 = vrot.lane.b32.xlu1 %v3359_v9, %s2359_s8 }
 0x2bf   : > { %1378 = vrot.lane.b32.xlu0 %v3361_v48, %s2359_s8 }
 0x2c2   : > { %1442 = vrot.lane.b32.xlu1 %v3361_v48, %s2358_s9 }
 0x2c3   : > { %1444 = vrot.lane.b32.xlu0 %v2059_v27, %s2358_s9 }
 0x2c6   : > { %1446 = vrot.lane.b32.xlu1 %v2060_v46, %s2358_s9  ;;  %s3495_s9 = scalar_lea.hbm %s3554_s7, %s1976_s17 }
 0x2f9   : > { %v1417_v44 = vpop.permute.xlu0 %1416  ;;  %v1353_v15 = vpop.permute.xlu1 %1352 }
 0x2fa   : > { %v1399_v37 = vadd.f32 %v1353_v15, %v1258_v43 }
 0x2fd   : > { %v1419_v21 = vpop.permute.xlu1 %1418  ;;  %v1355_v32 = vpop.permute.xlu0 %1354 }
 0x2fe   : > { %v1465_v52 = vadd.f32 %v1419_v21, %v1399_v37  ;;  %v1400_v54 = vadd.f32 %v3300_v42, %v1355_v32 }
 0x300   : > { %v1488_v4 = vadd.f32 %v3391_v28, %v1465_v52 }
 0x301   : > { %v1351_v47 = vpop.permute.xlu0 %1350 }
 0x302   : > { %v1398_v50 = vadd.f32 %v1351_v47, %v1255_v25  ;;  %v1504_v39 = vmax.f32 %v1488_v4, 0.0 }
 0x303   : > { %v1361_v26 = vpop.permute.xlu1 %1360 }
 0x304   : > { %v1464_v31 = vadd.f32 %v1417_v44, %v1398_v50  ;;  %v1403_v57 = vadd.f32 %v1361_v26, %v3324_v33 }
 0x305   : > { %v1425_v38 = vpop.permute.xlu0 %1424 }
 0x306   : > { %v1487_v36 = vadd.f32 %v3391_v28, %v1464_v31 }
 0x307   : > { %v1357_v49 = vpop.permute.xlu1 %1356 }
 0x308   : > { %v1503_v6 = vmax.f32 %v1487_v36, 0.0  ;;  %v1401_v59 = vadd.f32 %v3306_v40, %v1357_v49 }
 0x309   : > { %v1421_v16 = vpop.permute.xlu0 %1420 }
 0x30a   : > { %v1519_v11 = vpack.c.bf16 %v1504_v39, %v1503_v6  ;;  %v1466_v24 = vadd.f32 %v1421_v16, %v1400_v54 }
 0x30b   : > { %v1427_v55 = vpop.permute.xlu1 %1426 }
 0x30c   : > { %2063 = vmatprep.mubr.msk.bf16.mxu0 %vm1071_vm6, %v1519_v11  ;;  %v1489_v63 = vadd.f32 %v3391_v28, %v1466_v24  ;;  %v1469_v58 = vadd.f32 %v1427_v55, %v1403_v57 }
 0x30d   : > { %v1363_v56 = vpop.permute.xlu0 %1362 }
 0x30e   : > { %v1505_v18 = vmax.f32 %v1489_v63, 0.0  ;;  %v1492_v45 = vadd.f32 %v3391_v28, %v1469_v58  ;;  %v1404_v22 = vadd.f32 %v3312_v23, %v1363_v56 }
 0x30f   : > { %v1423_v8 = vpop.permute.xlu1 %1422 }
 0x310   : > { %v1467_v51 = vadd.f32 %v1423_v8, %v1401_v59  ;;  %v1508_v40 = vmax.f32 %v1492_v45, 0.0 }
 0x311   : > { %v1359_v3 = vpop.permute.xlu0 %1358 }
 0x312   : > { %v1490_v1 = vadd.f32 %v3391_v28, %v1467_v51  ;;  %v1402_v2 = vadd.f32 %v1359_v3, %v3320_v14 }
 0x313   : > { %v1365_v62 = vpop.permute.xlu1 %1364 }
 0x314   : > { %v1506_v29 = vmax.f32 %v1490_v1, 0.0  ;;  %v1468_v41 = vadd.f32 %v1425_v38, %v1402_v2  ;;  %v1405_v35 = vadd.f32 %v3322_v0, %v1365_v62 }
 0x315   : > { %v1429_v20 = vpop.permute.xlu0 %1428 }
 0x316   : > { %v1520_v53 = vpack.c.bf16 %v1506_v29, %v1505_v18  ;;  %v1491_v19 = vadd.f32 %v3391_v28, %v1468_v41  ;;  %v1470_v42 = vadd.f32 %v1429_v20, %v1404_v22 }
 0x317   : > { %v1431_v5 = vpop.permute.xlu1 %1430 }
 0x318   : > { %v1471_v25 = vadd.f32 %v1431_v5, %v1405_v35  ;;  %2064 = vmatmul.mubr.msk.bf16.vlgmr.msra.gmra.mrb[12].mxu0 %vm1071_vm6, %v1520_v53  ;;  %v1507_v43 = vmax.f32 %v1491_v19, 0.0  ;;  %v1493_v10 = vadd.f32 %v3391_v28, %v1470_v42  ;;  %v3434_v19 = vld [vmem:[%s3553_s6] ss:$0 sm:$0xff]  ;;  %v2246_v42 = vld [vmem:[%s2513_s15 + $0x8] sm:$0xff]  }
 0x319   : > { %v1367_v33 = vpop.permute.xlu0 %1366 }
 0x31a   : > { %v1494_v14 = vadd.f32 %v3391_v28, %v1471_v25  ;;  %v1521_v34 = vpack.c.bf16 %v1508_v40, %v1507_v43  ;;  %v1509_v7 = vmax.f32 %v1493_v10, 0.0  ;;  %v1406_v15 = vadd.f32 %v3330_v17, %v1367_v33  ;;  %v2247_v40 = vld [vmem:[%s2513_s15] sm:$0xff]  }
 0x31b   : > { %v1665_v25 = vunpack.c.l.bf16 %v2246_v42  ;;  %v1663_v43 = vunpack.c.l.bf16 %v2247_v40  ;;  %v1666_v33 = vunpack.c.h.bf16 %v2246_v42 }
 0x31c   : > { %v1373_v23 = vpop.permute.xlu1 %1372  ;;  %v1510_v27 = vmax.f32 %v1494_v14, 0.0  ;;  %2067 = vmatprep.mubr.msk.bf16.mxu0 %vm1071_vm6, %v1521_v34 }
 0x31d   : > { %v1437_v46 = vpop.permute.xlu0 %1436  ;;  %v1409_v50 = vadd.f32 %v1373_v23, %v3351_v13  ;;  %v1664_v23 = vunpack.c.h.bf16 %v2247_v40 }
 0x31e   : > { %v1522_v0 = vpack.c.bf16 %v1510_v27, %v1509_v7 }
 0x320   : > { %v1369_v44 = vpop.permute.xlu1 %1368  ;;  %2068 = vmatmul.mubr.msk.bf16.gmra.mrb[16].mxu0 %vm1071_vm6, %v1522_v0 }
 0x321   : > { %v1433_v21 = vpop.permute.xlu0 %1432  ;;  %v1407_v52 = vadd.f32 %v3336_v61, %v1369_v44 }
 0x322   : > { %v1472_v37 = vadd.f32 %v1433_v21, %v1406_v15 }
 0x324   : > { %v1439_v32 = vpop.permute.xlu1 %1438  ;;  %v1495_v4 = vadd.f32 %v3391_v28, %v1472_v37 }
 0x325   : > { %v1375_v47 = vpop.permute.xlu0 %1374  ;;  %v1475_v38 = vadd.f32 %v1439_v32, %v1409_v50  ;;  %v2248_v50 = vld [vmem:[%s2513_s15 + $0x18] sm:$0xff]  }
 0x326   : > { %v1511_v54 = vmax.f32 %v1495_v4, 0.0  ;;  %v1410_v61 = vadd.f32 %v3342_v60, %v1375_v47  ;;  %v1669_v4 = vunpack.c.l.bf16 %v2248_v50 }
 0x327   : > { %v1498_v16 = vadd.f32 %v3391_v28, %v1475_v38 }
 0x328   : > { %v1435_v26 = vpop.permute.xlu1 %1434 }
 0x329   : > { %v1473_v31 = vadd.f32 %v1435_v26, %v1407_v52  ;;  %v1371_v36 = vpop.permute.xlu0 %1370  ;;  %v1514_v56 = vmax.f32 %v1498_v16, 0.0  ;;  %v1670_v16 = vunpack.c.h.bf16 %v2248_v50 }
 0x32a   : > { %v1408_v17 = vadd.f32 %v1371_v36, %v3347_v12  ;;  %v2249_v36 = vld [vmem:[%s2513_s15 + $0x10] sm:$0xff]  }
 0x32b   : > { %v1496_v49 = vadd.f32 %v3391_v28, %v1473_v31 }
 0x32c   : > { %v1381_v39 = vpop.permute.xlu1 %1380  ;;  %v1474_v11 = vadd.f32 %v1437_v46, %v1408_v17 }
 0x32d   : > { %v1512_v6 = vmax.f32 %v1496_v49, 0.0  ;;  %v1441_v24 = vpop.permute.xlu0 %1440  ;;  %v1413_v60 = vadd.f32 %v1381_v39, %v3361_v48  ;;  %v1667_v39 = vunpack.c.l.bf16 %v2249_v36 }
 0x32e   : > { %v1497_v59 = vadd.f32 %v3391_v28, %v1474_v11  ;;  %v1476_v57 = vadd.f32 %v1441_v24, %v1410_v61  ;;  %v1668_v24 = vunpack.c.h.bf16 %v2249_v36 }
 0x32f   : > { %v1523_v55 = vpack.c.bf16 %v1512_v6, %v1511_v54 }
 0x330   : > { %v1377_v13 = vpop.permute.xlu1 %1376  ;;  %v1513_v8 = vmax.f32 %v1497_v59, 0.0  ;;  %v1499_v1 = vadd.f32 %v3391_v28, %v1476_v57 }
 0x331   : > { %2071 = vmatprep.mubr.msk.bf16.mxu0 %vm1071_vm6, %v1523_v55  ;;  %v1411_v63 = vadd.f32 %v3349_v30, %v1377_v13  ;;  %v1379_v58 = vpop.permute.xlu0 %1378 }
 0x332   : > { %v1524_v12 = vpack.c.bf16 %v1514_v56, %v1513_v8  ;;  %v1412_v18 = vadd.f32 %v1379_v58, %v3359_v9  ;;  %v1515_v45 = vmax.f32 %v1499_v1, 0.0 }
 0x334   : > { %v1443_v51 = vpop.permute.xlu1 %1442  ;;  %2072 = vmatmul.mubr.msk.bf16.gmra.mrb[20].mxu0 %vm1071_vm6, %v1524_v12 }
 0x335   : > { %v1477_v3 = vadd.f32 %v1443_v51, %v1411_v63  ;;  %v1445_v2 = vpop.permute.xlu0 %1444 }
 0x336   : > { %v1478_v53 = vadd.f32 %v1445_v2, %v1412_v18  ;;  %v2250_v2 = vld [vmem:[%s2513_s15 + $0x28] sm:$0xff]  }
 0x337   : > { %v1500_v62 = vadd.f32 %v3391_v28, %v1477_v3 }
 0x338   : > { %v1447_v29 = vpop.permute.xlu1 %1446  ;;  %v1501_v20 = vadd.f32 %v3391_v28, %v1478_v53 }
 0x339   : > { %v1516_v30 = vmax.f32 %v1500_v62, 0.0  ;;  %v1479_v22 = vadd.f32 %v1447_v29, %v1413_v60 }
 0x33a   : > { %v1517_v5 = vmax.f32 %v1501_v20, 0.0  ;;  %v1674_v20 = vunpack.c.h.bf16 %v2250_v2 }
 0x33b   : > { %v1525_v41 = vpack.c.bf16 %v1516_v30, %v1515_v45  ;;  %v1502_v35 = vadd.f32 %v3391_v28, %v1479_v22  ;;  %v1673_v45 = vunpack.c.l.bf16 %v2250_v2  ;;  %v2251_v22 = vld [vmem:[%s2513_s15 + $0x20] sm:$0xff]  }
 0x33c   : > { %v1671_v53 = vunpack.c.l.bf16 %v2251_v22 }
 0x33d   : > { %v1518_v48 = vmax.f32 %v1502_v35, 0.0  ;;  %2075 = vmatprep.mubr.msk.bf16.mxu0 %vm1071_vm6, %v1525_v41 }
 0x33f   : > { %v1526_v9 = vpack.c.bf16 %v1518_v48, %v1517_v5 }
 0x341   : > { %2076 = vmatmul.mubr.msk.bf16.gmra.mrb[24].mxu0 %vm1071_vm6, %v1526_v9  ;;  %v1672_v9 = vunpack.c.h.bf16 %v2251_v22 }
 0x3eb   : > { %v2065_v10 = vpop.f32.mrb[12].mxu0 }
 0x3ec   : > { %v1609_v14 = vadd.f32 %v2065_v10, %v3434_v19  ;;  %v1600_v28 = vpop.f32.mrb[13].mxu0 }
 0x3ed   : > { %v1601_v34 = vadd.f32 %v3434_v19, %v1600_v28  ;;  %v2066_v7 = vpop.f32.mrb[14].mxu0 }
 0x3ee   : > { %v1681_v27 = vadd.f32 %v1665_v25, %v1609_v14  ;;  %v1612_v0 = vadd.f32 %v2066_v7, %v3434_v19  ;;  %v1603_v46 = vpop.f32.mrb[15].mxu0 }
 0x3ef   : > { %v1679_v44 = vadd.f32 %v1663_v43, %v1601_v34  ;;  %v1604_v15 = vadd.f32 %v3434_v19, %v1603_v46 }
 0x3f0   : > { %v1697_v21 = vmax.f32 %v1681_v27, 0.0  ;;  %v1682_v32 = vadd.f32 %v1666_v33, %v1612_v0 }
 0x3f1   : > { %v1695_v37 = vmax.f32 %v1679_v44, 0.0  ;;  %v1680_v52 = vadd.f32 %v1664_v23, %v1604_v15  ;;  %v2252_v44 = vld [vmem:[%s2513_s15 + $0x38] sm:$0xff]  }
 0x3f2   : > { %v1961_v47 = vpack.c.bf16 %v1697_v21, %v1697_v21  ;;  %v1698_v26 = vmax.f32 %v1682_v32, 0.0  ;;  %v1677_v15 = vunpack.c.l.bf16 %v2252_v44  ;;  %v2253_v21 = vld [vmem:[%s2513_s15 + $0x30] sm:$0xff]   ;;  %v1678_v50 = vunpack.c.h.bf16 %v2252_v44  ;;  %s1807_s15 = sshll.u32 %s3446_s12, 4  ;;  %s3497_s15 = int_to_ptr.vmem [resolvable:$true] %s1807_s15 }
 0x3f3   : > { %v1959_v31 = vpack.c.bf16 %v1695_v37, %v1695_v37  ;;  %v1696_v38 = vmax.f32 %v1680_v52, 0.0  ;;  %v2069_v49 = vpop.f32.mrb[16].mxu0  ;;  %v1675_v32 = vunpack.c.l.bf16 %v2253_v21  ;;  %s2284_s8 = scalar_lea.vmem %s3497_s15, 1024  ;;  %p2291_p8 = scmp.lt.s32.totalorder %s3497_s15, %s2289_s18 }
 0x3f4   : > { %1778 = vst.msk [vmem:[%s3446_s12 + $0x8] sm:$0xf] %vm1775_vm12, %v1961_v47  ;;  %v1962_v54 = vpack.c.bf16 %v1698_v26, %v1698_v26  ;;  %v1625_v6 = vadd.f32 %v2069_v49, %v3434_v19  ;;  %v1616_v17 = vpop.f32.mrb[17].mxu0  ;;  %p2285_p6 = scmp.ne.s32.totalorder %s3497_s15, %s2284_s8  ;;  %p2292_p10 = scmp.lt.s32.totalorder %s2290_s20, %s2284_s8 }
 0x3f5   : > { %1776 = vst.msk [vmem:[%s3446_s12] sm:$0xf] %vm1775_vm12, %v1959_v31  ;;  %v1960_v61 = vpack.c.bf16 %v1696_v38, %v1696_v38  ;;  %v1617_v55 = vadd.f32 %v3434_v19, %v1616_v17  ;;  %v2070_v11 = vpop.f32.mrb[18].mxu0 }
 0x3f6   : > { %1779 = vst.msk [vmem:[%s3446_s12 + $0xc] sm:$0xf] %vm1775_vm12, %v1962_v54  ;;  %v1685_v13 = vadd.f32 %v1669_v4, %v1625_v6  ;;  %v1628_v59 = vadd.f32 %v2070_v11, %v3434_v19  ;;  %v1619_v57 = vpop.f32.mrb[19].mxu0  ;;  %v1676_v4 = vunpack.c.h.bf16 %v2253_v21  ;;  %p2286_p12 = pnand %p2285_p6, %p3710_p11  ;;  %p2293_p0 = por %p2292_p10, %p2291_p8 }
 0x3f7   : > { %1777 = vst.msk [vmem:[%s3446_s12 + $0x4] sm:$0xf] %vm1775_vm12, %v1960_v61  ;;  %v1683_v56 = vadd.f32 %v1667_v39, %v1617_v55  ;;  %v1620_v8 = vadd.f32 %v3434_v19, %v1619_v57 }
 0x3f8   : > { %v1701_v63 = vmax.f32 %v1685_v13, 0.0  ;;  %v1686_v51 = vadd.f32 %v1670_v16, %v1628_v59  ;;  %p2287_p13 = pneg %p2286_p12 }
 0x3f9   : > { %v1699_v58 = vmax.f32 %v1683_v56, 0.0  ;;  %v1684_v12 = vadd.f32 %v1668_v24, %v1620_v8 }
 0x3fa   : > { %v1965_v1 = vpack.c.bf16 %v1701_v63, %v1701_v63  ;;  %v1702_v3 = vmax.f32 %v1686_v51, 0.0  ;;  %p2294_p2 = pnand %p2293_p0, %p2287_p13 }
 0x3fb   : > { %v1963_v60 = vpack.c.bf16 %v1699_v58, %v1699_v58  ;;  %v1700_v62 = vmax.f32 %v1684_v12, 0.0 }
 0x3fc   : > { %1782 = vst.msk [vmem:[%s3446_s12 + $0x18] sm:$0xf] %vm1775_vm12, %v1965_v1  ;;  %v1966_v18 = vpack.c.bf16 %v1702_v3, %v1702_v3 }
 0x3fd   : > { %1780 = vst.msk [vmem:[%s3446_s12 + $0x10] sm:$0xf] %vm1775_vm12, %v1963_v60  ;;  %v1964_v29 = vpack.c.bf16 %v1700_v62, %v1700_v62 }
 0x3fe   : > { %1783 = vst.msk [vmem:[%s3446_s12 + $0x1c] sm:$0xf] %vm1775_vm12, %v1966_v18 }
 0x3ff   : > { %1781 = vst.msk [vmem:[%s3446_s12 + $0x14] sm:$0xf] %vm1775_vm12, %v1964_v29 }
 0x407   : > { %v2073_v30 = vpop.f32.mrb[20].mxu0 }
 0x408   : > { %v1641_v41 = vadd.f32 %v2073_v30, %v3434_v19  ;;  %v1632_v35 = vpop.f32.mrb[21].mxu0 }
 0x409   : > { %v1633_v48 = vadd.f32 %v3434_v19, %v1632_v35  ;;  %v2074_v5 = vpop.f32.mrb[22].mxu0 }
 0x40a   : > { %v1689_v42 = vadd.f32 %v1673_v45, %v1641_v41  ;;  %v1644_v25 = vadd.f32 %v2074_v5, %v3434_v19  ;;  %v1635_v40 = vpop.f32.mrb[23].mxu0 }
 0x40b   : > { %v1687_v43 = vadd.f32 %v1671_v53, %v1633_v48  ;;  %v1636_v10 = vadd.f32 %v3434_v19, %v1635_v40 }
 0x40c   : > { %v1705_v14 = vmax.f32 %v1689_v42, 0.0  ;;  %v1690_v28 = vadd.f32 %v1674_v20, %v1644_v25 }
 0x40d   : > { %v1703_v33 = vmax.f32 %v1687_v43, 0.0  ;;  %v1688_v23 = vadd.f32 %v1672_v9, %v1636_v10 }
 0x40e   : > { %v1969_v34 = vpack.c.bf16 %v1705_v14, %v1705_v14  ;;  %v1706_v7 = vmax.f32 %v1690_v28, 0.0 }
 0x40f   : > { %v1967_v27 = vpack.c.bf16 %v1703_v33, %v1703_v33  ;;  %v1704_v0 = vmax.f32 %v1688_v23, 0.0 }
 0x410   : > { %1786 = vst.msk [vmem:[%s3446_s12 + $0x28] sm:$0xf] %vm1775_vm12, %v1969_v34  ;;  %v1970_v46 = vpack.c.bf16 %v1706_v7, %v1706_v7 }
 0x411   : > { %1784 = vst.msk [vmem:[%s3446_s12 + $0x20] sm:$0xf] %vm1775_vm12, %v1967_v27  ;;  %v1968_v37 = vpack.c.bf16 %v1704_v0, %v1704_v0 }
 0x412   : > { %1787 = vst.msk [vmem:[%s3446_s12 + $0x2c] sm:$0xf] %vm1775_vm12, %v1970_v46 }
 0x413   : > { %1785 = vst.msk [vmem:[%s3446_s12 + $0x24] sm:$0xf] %vm1775_vm12, %v1968_v37 }
 0x414   : > { %v2077_v52 = vpop.f32.mrb[24].mxu0 }
 0x415   : > { %v1657_v47 = vadd.f32 %v2077_v52, %v3434_v19  ;;  %v1648_v26 = vpop.f32.mrb[25].mxu0 }
 0x416   : > { %v1649_v31 = vadd.f32 %v3434_v19, %v1648_v26  ;;  %v2078_v38 = vpop.f32.mrb[26].mxu0 }
 0x417   : > { %v1693_v49 = vadd.f32 %v1677_v15, %v1657_v47  ;;  %v1660_v36 = vadd.f32 %v2078_v38, %v3434_v19  ;;  %v1651_v39 = vpop.f32.mrb[27].mxu0 }
 0x418   : > { %v1691_v54 = vadd.f32 %v1675_v32, %v1649_v31  ;;  %v1652_v6 = vadd.f32 %v3434_v19, %v1651_v39 }
 0x419   : > { %v1709_v17 = vmax.f32 %v1693_v49, 0.0  ;;  %v1694_v16 = vadd.f32 %v1678_v50, %v1660_v36 }
 0x41a   : > { %v1707_v61 = vmax.f32 %v1691_v54, 0.0  ;;  %v1692_v55 = vadd.f32 %v1676_v4, %v1652_v6 }
 0x41b   : > { %v1973_v11 = vpack.c.bf16 %v1709_v17, %v1709_v17  ;;  %v1710_v24 = vmax.f32 %v1694_v16, 0.0 }
 0x41c   : > { %v1971_v13 = vpack.c.bf16 %v1707_v61, %v1707_v61  ;;  %v1708_v59 = vmax.f32 %v1692_v55, 0.0 }
 0x41d   : > { %1790 = vst.msk [vmem:[%s3446_s12 + $0x38] sm:$0xf] %vm1775_vm12, %v1973_v11  ;;  %v1974_v57 = vpack.c.bf16 %v1710_v24, %v1710_v24 }
 0x41e   : > { %1788 = vst.msk [vmem:[%s3446_s12 + $0x30] sm:$0xf] %vm1775_vm12, %v1971_v13  ;;  %v1972_v19 = vpack.c.bf16 %v1708_v59, %v1708_v59 }
 0x41f   : > { %1791 = vst.msk [vmem:[%s3446_s12 + $0x3c] sm:$0xf] %vm1775_vm12, %v1974_v57 }
 0x420   : > { %1789 = vst.msk [vmem:[%s3446_s12 + $0x34] sm:$0xf] %vm1775_vm12, %v1972_v19 }
 0x421   : > { %2297 = shalt.err (!%p2294_p2)
}
 0x422   : > { %s2298_s22 = scalar_lea.hbm %s3495_s9, 1024  ;;  %s2302_s12 = scalar_lea.hbm %s3554_s7, 2048 }
 0x423   : > { %p2299_p4 = scmp.ne.s32.totalorder %s3495_s9, %s2298_s22  ;;  %p2303_p9 = scmp.lt.u32.totalorder %s3495_s9, %s3554_s7 }
 0x424   : > { %p2304_p1 = scmp.lt.u32.totalorder %s2302_s12, %s2298_s22  ;;  %p2306_p6 = scmp.lt.u32.totalorder %s2298_s22, %s3495_s9 }
 0x425   : > { %p2300_p5 = pnand %p2299_p4, %p3710_p11 }
 0x426   : > { %p2305_p3 = por %p2304_p1, %p2303_p9 }
 0x427   : > { %p2301_p7 = pneg %p2300_p5 }
 0x428   : > { %p2307_p12 = por %p2306_p6, %p2305_p3 }
 0x42a   : > { %p2308_p13 = pnand %p2307_p12, %p2301_p7 }
 0x42c   : > { %2311 = shalt.err (!%p2308_p13)
}
 0x42d   : > { %s2361_s21 = smov 64   ;;  %s2362_s8 = smov 4  }
 0x42e   : > { %2089 = dma.vmem_to_hbm [thread:$0]  (%p3710_p11), %s3497_s15, 1024, %s3495_s9, %s1793_s28, %s2361_s21, %s2361_s21, %s2362_s8  }
 0x42f PF: > { %s1822_s11 = sand.u32 1, %s2338_s24   ;;  %p3711_p8 = scmp.ne.s32.totalorder %s3579_s14, 0 }
 0x430   : > { %p3712_p10 = scmp.ge.s32.totalorder %s2350_s27, 2  ;;  %s1823_s18 = scalar_lea.sflag [#allocation5], %s1822_s11 }
 0x432   : > { %p2096_p0 = pnand %p3712_p10, %p3711_p8 }
 0x434   : > { %2333 = dma.done.wait (!%p2096_p0), %s1823_s18, 1024  }
 0x435   : > { %2335 = vsyncadd (!%p2096_p0), %s1823_s18, 4294966272  ;;  %p20_p2 = scmp.ge.s32.totalorder %s2428_s30, 4   ;;  %s3713_s24 = smov %s2342_s25 }
 0x436   : > { %s3714_s25 = smov %s2346_s26  ;;  %s3715_s26 = smov %s2440_s10 }
 0x437   : > { %s3716_s27 = smov %s2428_s30  ;;  %22 = sbr.rel (!%p20_p2) target bundleno = 5 (0x5), region = 93 }
 0x43e   :  { %1828 = vsyncpa [#allocation4], 1 }
 0x43f   :  { %1830 = vsyncpa [#allocation4 + $0x1], 1 }
 0x440   :  { %1831 = vsyncpa [#allocation5], 1 }
 0x441   :  { %1833 = vsyncpa [#allocation5 + $0x1], 1 }

// kernel: tpu_custom_call.1
= control target key start
LH: loop header
LB: loop body
LE: loop exit
PB: predicated region body
PF: predicated region fallthrough
CT: control target
= control target key end

     0   :  { %12 = vsyncpa [#allocation4], 0  ;;  %s3547_s0 = inlined_call_operand.hbm [shape: bf16[4,64,64], index: 0, kind: input, shape index: {}]   ;;  %s3548_s1 = inlined_call_operand.vmem [shape: bf16[64,16], index: 1, kind: input, shape index: {}]   ;;  %s3549_s2 = inlined_call_operand.vmem [shape: f32[1,16], index: 2, kind: input, shape index: {}]   ;;  %s3550_s3 = inlined_call_operand.vmem [shape: bf16[48,48], index: 3, kind: input, shape index: {}]   ;;  %s3551_s4 = inlined_call_operand.vmem [shape: f32[1,16], index: 4, kind: input, shape index: {}]   ;;  %s3552_s5 = inlined_call_operand.vmem [shape: bf16[16,64], index: 5, kind: input, shape index: {}]   ;;  %s3553_s6 = inlined_call_operand.vmem [shape: f32[1,64], index: 6, kind: input, shape index: {}]   ;;  %s3554_s7 = inlined_call_operand.hbm [shape: bf16[4,64,64], index: 7, kind: output, shape index: {}]  }
   0x1   :  { %14 = vsyncpa [#allocation4 + $0x1], 0 }
   0x2   :  { %15 = vsyncpa [#allocation5], 0 }
   0x3   :  { %17 = vsyncpa [#allocation5 + $0x1], 0  ;;  %s2403_s24 = smov 0   ;;  %s2405_s25 = smov 0  }
   0x4   :  { %s2407_s26 = smov 0   ;;  %s2409_s27 = smov 0  }
   0x5 LB: > { %s2424_s28 = sadd.s32 4294967295, %s2350_s27   ;;  %s1880_s29 = sadd.s32 4294967294, %s2350_s27   ;;  %s2350_s27 = sphi %s2409_s27, %s3716_s27   ;;  %s2346_s26 = sphi %s2407_s26, %s3715_s26   ;;  %s2342_s25 = sphi %s2405_s25, %s3714_s25   ;;  %s2338_s24 = sphi %s2403_s24, %s3713_s24  }
   0x6   : > { %s2428_s30 = sadd.s32 1, %s2350_s27   ;;  %s30_s8 = sadd.s32 1, %s2346_s26 }
   0x7   : > { %s27_s9 = ssub.s32 %s2350_s27, %s2428_s30  ;;  %p37_p0 = scmp.ne.s32.totalorder %s2346_s26, %s2342_s25 }
   0x8   : > { %p28_p1 = scmp.eq.s32.totalorder %s27_s9, 0  ;;  %p38_p2 = scmp.eq.s32.totalorder %s2350_s27, 0 }
   0x9   : > { %p43_p3 = scmp.ne.s32.totalorder %s2342_s25, %s2338_s24  ;;  %p44_p4 = scmp.eq.s32.totalorder %s2424_s28, 0 }
   0xa   : > { %s2440_s10 = scalar_select %p28_p1, %s2346_s26, %s30_s8  }
   0xb   : > { %p2442_p5 = por %p38_p2, %p37_p0  ;;  %p2446_p6 = por %p44_p4, %p43_p3 }
   0xc   : > { %p193_p7 = scmp.eq.s32.totalorder %s2424_s28, 1  ;;  %p199_p8 = scmp.eq.s32.totalorder %s1880_s29, 1 }
   0xd   : > { %p2099_p10 = scmp.lt.s32.totalorder %s2350_s27, 2  ;;  %s237_s15 = sand.u32 1, %s2346_s26  }
   0xe   : > { %p2453_p11 = por %p193_p7, %p37_p0  ;;  %p2457_p12 = por %p199_p8, %p43_p3 }
   0xf   : > { %s1958_s16 = sshll.u32 %s2350_s27, 10  ;;  %s1883_s17 = sshll.u32 %s237_s15, 6 }
  0x10   : > { %s3578_s13 = scalar_select %p2453_p11, 1, 0 }
  0x11   : > { %s3579_s14 = scalar_select %p2457_p12, 1, 0 }
  0x12   : > { %s2466_s20 = scalar_lea.hbm %s3547_s0, %s1958_s16  ;;  %s241_s21 = scalar_lea.vmem [#allocation3], %s1883_s17 }
  0x13   : > { %s249_s22 = sshll.u32 %s241_s21, 4  ;;  %p2470_p13 = pnand %p2099_p10, %p2442_p5  ;;  %s2474_s22 = int_to_ptr.vmem [resolvable:$true] %s249_s22 }
  0x14   : > { %s2476_s29 = scalar_lea.sflag [#allocation4], %s237_s15  ;;  %s2254_s8 = scalar_lea.hbm %s2466_s20, 1024 }
  0x15   : > { %p2255_p0 = scmp.ne.s32.totalorder %s2466_s20, %s2254_s8  ;;  %p2256_p1 = pneg %p2470_p13 }
  0x16   : > { %s2259_s16 = scalar_lea.hbm %s3547_s0, 2048  ;;  %p2260_p4 = scmp.lt.u32.totalorder %s2466_s20, %s3547_s0 }
  0x17   : > { %p2257_p2 = pnand %p2256_p1, %p2255_p0  ;;  %p2261_p5 = scmp.lt.u32.totalorder %s2259_s16, %s2254_s8 }
  0x18   : > { %p2263_p8 = scmp.lt.u32.totalorder %s2254_s8, %s2466_s20 }
  0x19   : > { %p2258_p3 = pneg %p2257_p2  ;;  %p2262_p7 = por %p2261_p5, %p2260_p4 }
  0x1b   : > { %p2264_p10 = por %p2263_p8, %p2262_p7 }
  0x1d   : > { %p2265_p9 = pnand %p2264_p10, %p2258_p3 }
  0x1f   : > { %2268 = shalt.err (!%p2265_p9)
}
  0x20   : > { %s2269_s15 = scalar_lea.vmem %s2474_s22, 1024  ;;  %s2352_s19 = smov [#allocation3]  }
  0x21   : > { %p2270_p0 = scmp.ne.s32.totalorder %s2474_s22, %s2269_s15  ;;  %s2274_s21 = sshll.u32 %s2352_s19, 4  ;;  %s2275_s21 = int_to_ptr.vmem [resolvable:$false] %s2274_s21 }
  0x22   : > { %s2276_s9 = scalar_lea.vmem %s2275_s21, 2048  ;;  %p2277_p11 = scmp.lt.s32.totalorder %s2474_s22, %s2275_s21 }
  0x23   : > { %p2272_p2 = pnand %p2270_p0, %p2256_p1  ;;  %p2278_p4 = scmp.lt.s32.totalorder %s2276_s9, %s2269_s15 }
  0x25   : > { %p2273_p12 = pneg %p2272_p2  ;;  %p2279_p5 = por %p2278_p4, %p2277_p11 }
  0x27   : > { %p2280_p7 = pnand %p2279_p5, %p2273_p12 }
  0x29   : > { %2283 = shalt.err (!%p2280_p7)
}
  0x2a   : > { %s2353_s8 = smov 64   ;;  %s2354_s11 = smov 4  }
  0x2b   : > { %2094 = dma.hbm_to_vmem [thread:$0]  (!%p2470_p13), %s2466_s20, 1024, %s2474_s22, %s2476_s29, %s2353_s8, %s2353_s8, %s2354_s11  }
  0x2c   : > { %p1887_p9 = scmp.ge.s32.totalorder %s2350_s27, 1  ;;  %p257_p1 = scmp.lt.s32.totalorder %s2350_s27, 3 }
  0x2e   : > { %p258_p3 = pnand %p1887_p9, %p257_p1 }
  0x2f   : > { %s2507_s16 = sand.u32 (!%p258_p3), 1, %s2342_s25  }
  0x30   : > { %261 = sbr.rel (%p258_p3) target bundleno = 1071 (0x42f), region = 48  ;;  %s1888_s17 = sshll.u32 (!%p258_p3), %s2507_s16, 6 }
  0x31   : > { %s264_s18 = scalar_lea.sflag (!%p258_p3), [#allocation4], %s2507_s16  ;;  %s2513_s15 = scalar_lea.vmem (!%p258_p3), [#allocation3], %s1888_s17 }
  0x37   : > { %2329 = dma.done.wait (%p2446_p6), %s264_s18, 1024  }
  0x38   : > { %2331 = vsyncadd (%p2446_p6), %s264_s18, 4294966272  ;;  %v2222_v0 = vld [vmem:[%s3548_s1] sm:$0xff]   ;;  %v2223_v1 = vld [vmem:[%s3548_s1 + $0x8] sm:$0xff]   ;;  %vm402_vm0 = vcmask 523264   ;;  %v540_v12 = vlaneseq  ;;  %vm3569_vm7 = vcmask 392196   ;;  %s2356_s18 = smov 16  }
  0x39   : > { %2011 = vmatprep.subr.bf16.mxu0 %v2222_v0  ;;  %2079 = vmatprep.subr.bf16.mxu1 %v2222_v0  ;;  %v2224_v2 = vld [vmem:[%s3548_s1 + $0x10] sm:$0xff]   ;;  %v319_v4 = vld [vmem:[%s2513_s15 + $0x30] sm:$0xff]   ;;  %v2225_v5 = vld [vmem:[%s3548_s1 + $0x18] sm:$0xff]   ;;  %s2357_s20 = smov 32   ;;  %s2358_s9 = smov 96  }
  0x3a   : > { %2012 = vmatpush3.bf16.msra.mxu0 %v2222_v0  ;;  %2083 = vmatpush3.bf16.msra.mxu1 %v2222_v0  ;;  %v307_v3 = vld [vmem:[%s2513_s15] sm:$0xff]   ;;  %v309_v6 = vld [vmem:[%s2513_s15 + $0x8] sm:$0xff]   ;;  %v321_v7 = vld [vmem:[%s2513_s15 + $0x38] sm:$0xff]   ;;  %v2547_v13 = vshrl.u32 %v540_v12, 7  ;;  %s2359_s8 = smov 112   ;;  %s3446_s12 = scalar_lea.vmem [#allocation6], %s1888_s17 }
  0x3b   : > { %2013 = vmatprep.subr.bf16.mxu0 %v2223_v1  ;;  %2080 = vmatprep.subr.bf16.mxu1 %v2223_v1  ;;  %v311_v8 = vld [vmem:[%s2513_s15 + $0x10] sm:$0xff]   ;;  %v313_v9 = vld [vmem:[%s2513_s15 + $0x18] sm:$0xff]   ;;  %v315_v10 = vld [vmem:[%s2513_s15 + $0x20] sm:$0xff]   ;;  %s1976_s17 = sshll.u32 %s2424_s28, 10  ;;  %s1793_s28 = scalar_lea.sflag [#allocation5], %s2507_s16 }
  0x3c   : > { %2019 = vmatprep.mubr.msk.bf16.mxu0 %vm402_vm0, %v307_v3  ;;  %2031 = vmatprep.mubr.msk.bf16.mxu1 %vm402_vm0, %v319_v4  ;;  %v317_v11 = vld [vmem:[%s2513_s15 + $0x28] sm:$0xff]   ;;  %v2550_v14 = vadd.s32 16, %v2547_v13  ;;  %v2553_v15 = vadd.s32 8, %v2547_v13  ;;  %v2556_v16 = vadd.s32 24, %v2547_v13  ;;  %v2559_v17 = vadd.s32 32, %v2547_v13  ;;  %p3710_p11 = scmp.ne.s32.totalorder %s3578_s13, 0 }
  0x3d   : > { %v2562_v18 = vadd.s32 48, %v2547_v13  ;;  %v2565_v19 = vadd.s32 112, %v2547_v13  ;;  %v2568_v20 = vadd.s32 120, %v2547_v13  ;;  %v2571_v21 = vadd.s32 40, %v2547_v13  ;;  %v2581_v25 = vld [vmem:[%s3549_s2] ss:$0 sm:$0xff] }
  0x3e   : > { %2014 = vmatpush3.bf16.msra.mxu0 %v2223_v1  ;;  %2084 = vmatpush3.bf16.msra.mxu1 %v2223_v1  ;;  %v2574_v22 = vadd.s32 56, %v2547_v13  ;;  %v561_v23 = vand.u32 7, %v2547_v13  ;;  %v575_v24 = vand.u32 7, %v2550_v14  ;;  %v568_v26 = vand.u32 7, %v2553_v15  ;;  %s2360_s11 = smov [#allocation6]  }
  0x3f   : > { %2015 = vmatprep.subr.bf16.mxu0 %v2224_v2  ;;  %2081 = vmatprep.subr.bf16.mxu1 %v2224_v2  ;;  %v582_v27 = vand.u32 7, %v2556_v16  ;;  %v2586_v28 = vadd.s32 64, %v2547_v13  ;;  %v2589_v29 = vadd.s32 80, %v2547_v13  ;;  %v3559_v30 = vand.u32 7, %v2559_v17 }
  0x40   : > { %v3558_v31 = vand.u32 7, %v2562_v18  ;;  %v3568_v32 = vand.u32 7, %v2565_v19  ;;  %v666_v33 = vand.u32 7, %v2568_v20  ;;  %vm878_vm1 = vcmp.lt.s32.totalorder %v2547_v13, 7 }
  0x41   : > { %v3560_v36 = vand.u32 7, %v2571_v21  ;;  %v3566_v37 = vand.u32 7, %v2574_v22  ;;  %v2599_v38 = vadd.s32 88, %v2547_v13  ;;  %v2602_v39 = vadd.s32 96, %v2547_v13 }
  0x42   : > { %2016 = vmatpush3.bf16.msra.mxu0 %v2224_v2  ;;  %2085 = vmatpush3.bf16.msra.mxu1 %v2224_v2  ;;  %v2607_v44 = vadd.s32 72, %v2547_v13  ;;  %v2610_v45 = vadd.s32 104, %v2547_v13  ;;  %vm2616_vm2 = vcmp.lt.s32.totalorder %v561_v23, 7  ;;  %vm2622_vm3 = vcmp.lt.s32.totalorder %v568_v26, 7 }
  0x43   : > { %2017 = vmatprep.subr.bf16.mxu0 %v2225_v5  ;;  %2082 = vmatprep.subr.bf16.mxu1 %v2225_v5  ;;  %v3565_v52 = vand.u32 7, %v2586_v28  ;;  %v3562_v53 = vand.u32 7, %v2589_v29  ;;  %v3563_v63 = vand.u32 7, %v2599_v38  ;;  %vm2642_vm4 = vcmp.lt.s32.totalorder %v575_v24, 7 }
  0x44   : > { %v3564_v2 = vand.u32 7, %v2607_v44  ;;  %v645_v3 = vand.u32 7, %v2602_v39  ;;  %v3567_v4 = vand.u32 7, %v2610_v45  ;;  %vm2663_vm5 = vcmp.lt.s32.totalorder %v582_v27, 7 }
  0x45   : > { %vm2671_vm6 = vcmp.lt.s32.totalorder %v3559_v30, 7  ;;  %vm2680_vm8 = vcmp.lt.s32.totalorder %v3560_v36, 7  ;;  %vm2697_vm9 = vcmp.lt.s32.totalorder %v3558_v31, 7  ;;  %vm2731_vm10 = vcmp.lt.s32.totalorder %v3566_v37, 7  ;;  %v2236_v30 = vld [vmem:[%s3550_s3 + $0x10] sm:$0xff]  }
  0x46   : > { %2018 = vmatpush3.bf16.msra.mxu0 %v2225_v5  ;;  %2086 = vmatpush3.bf16.msra.mxu1 %v2225_v5  ;;  %vm2741_vm11 = vcmp.lt.s32.totalorder %v3562_v53, 7  ;;  %vm2755_vm12 = vcmp.lt.s32.totalorder %v3565_v52, 7  ;;  %vm2761_vm13 = vcmp.lt.s32.totalorder %v3564_v2, 7  ;;  %vm2767_vm14 = vcmp.lt.s32.totalorder %v3563_v63, 7 }
  0x47   : > { %vm2789_vm15 = vcmp.lt.s32.totalorder %v645_v3, 7  ;;  %v3621_v14 = vand.u32 7, %v2571_v21  ;;  %v3635_v21 = vmov 0  ;;  %v3659_v52 = vand.u32 7, %v2565_v19 }
  0x49   : > { %2020 = vmatmul.mubr.msk.bf16.vlgmr.msra.gmra.mrb[0].mxu0 %vm402_vm0, %v309_v6  ;;  %2032 = vmatmul.mubr.msk.bf16.vlgmr.msra.gmra.mrb[0].mxu1 %vm402_vm0, %v321_v7 }
  0x4a   : > { %2023 = vmatprep.mubr.msk.bf16.mxu0 %vm402_vm0, %v311_v8 }
  0x51   : > { %2024 = vmatmul.mubr.msk.bf16.gmra.mrb[4].mxu0 %vm402_vm0, %v313_v9 }
  0x52   : > { %2027 = vmatprep.mubr.msk.bf16.mxu0 %vm402_vm0, %v315_v10 }
  0x59   : > { %2028 = vmatmul.mubr.msk.bf16.gmra.mrb[8].mxu0 %vm402_vm0, %v317_v11  ;;  %vm2795_vm0 = vcmp.lt.s32.totalorder %v3567_v4, 7 }
 0x11c   : > { %v2021_v34 = vpop.f32.mrb[0].mxu0  ;;  %v2033_v35 = vpop.f32.mrb[0].mxu1 }
 0x11d   : > { %v470_v40 = vadd.f32 %v2021_v34, %v2581_v25  ;;  %v518_v41 = vadd.f32 %v2033_v35, %v2581_v25  ;;  %v461_v42 = vpop.f32.mrb[1].mxu0  ;;  %v509_v43 = vpop.f32.mrb[1].mxu1 }
 0x11e   : > { %v462_v46 = vadd.f32 %v2581_v25, %v461_v42  ;;  %v510_v47 = vadd.f32 %v2581_v25, %v509_v43  ;;  %v2022_v48 = vpop.f32.mrb[2].mxu0  ;;  %v2034_v49 = vpop.f32.mrb[2].mxu1 }
 0x11f   : > { %v2628_v54 = vmax.f32 %v470_v40, 0.0  ;;  %v2630_v55 = vmax.f32 %v518_v41, 0.0  ;;  %v473_v56 = vadd.f32 %v2022_v48, %v2581_v25  ;;  %v521_v57 = vadd.f32 %v2034_v49, %v2581_v25  ;;  %v464_v58 = vpop.f32.mrb[3].mxu0  ;;  %v512_v59 = vpop.f32.mrb[3].mxu1 }
 0x120   : > { %v2634_v60 = vmax.f32 %v462_v46, 0.0  ;;  %v2636_v61 = vmax.f32 %v510_v47, 0.0  ;;  %v465_v62 = vadd.f32 %v2581_v25, %v464_v58  ;;  %v513_v1 = vadd.f32 %v2581_v25, %v512_v59 }
 0x121   : > { %v864_v6 = vrot.slane %v2628_v54, 1  ;;  %v2655_v10 = vmax.f32 %v473_v56, 0.0  ;;  %v2657_v11 = vmax.f32 %v521_v57, 0.0  ;;  %v3556_v57 = vmov 0  }
 0x122   : > { %v2659_v12 = vmax.f32 %v465_v62, 0.0  ;;  %v3561_v35 = vrot.slane %v2634_v60, 1  ;;  %v2684_v56 = vmax.f32 %v513_v1, 0.0  ;;  %305 = vst.msk [vmem:[#allocation2 + $0x20] sm:$0xf0] %vm3569_vm7, %v3556_v57  ;;  %v3652_v39 = vrot.slane %v2636_v61, 1 }
 0x123   : > { %v865_v47 = vrot.slane %v2655_v10, 1  ;;  %306 = vst.msk [vmem:[#allocation2 + $0x48] sm:$0xf0] %vm3569_vm7, %v3556_v57  ;;  %v2142_v7 = vpack.i.bf16 %v2655_v10, %v2628_v54  ;;  %vm2853_vm7 = vcmp.gt.s32.totalorder %v561_v23, 0  ;;  %v3631_v23 = vmov 0 }
 0x124   : > { %v2025_v41 = vpop.f32.mrb[4].mxu0  ;;  %v863_v59 = vrot.slane %v2659_v12, 1  ;;  %v2147_v58 = vpack.i.bf16 %v2659_v12, %v2634_v60  ;;  %v3657_v20 = vrot.slane %v2634_v60, 1 }
 0x125   : > { %v477_v48 = vpop.f32.mrb[5].mxu0  ;;  %v486_v62 = vadd.f32 %v2025_v41, %v2581_v25  ;;  %v891_v41 = vsel %vm878_vm1, %v864_v6, %v865_v47  ;;  %2143 = vrot.lane.b32.xlu0 %v2142_v7, %s2356_s18 }
 0x126   : > { %v2026_v40 = vpop.f32.mrb[6].mxu0  ;;  %v478_v9 = vadd.f32 %v2581_v25, %v477_v48  ;;  %v892_v43 = vsel %vm878_vm1, %v863_v59, %v864_v6 }
 0x127   : > { %v489_v57 = vadd.f32 %v2026_v40, %v2581_v25  ;;  %v480_v5 = vpop.f32.mrb[7].mxu0  ;;  %v2707_v46 = vmax.f32 %v486_v62, 0.0  ;;  %v893_v40 = vsel %vm878_vm1, %v3561_v35, %v863_v59  ;;  %v928_v7 = vsel %vm2622_vm3, %v892_v43, 0.0 }
 0x128   : > { %v481_v8 = vadd.f32 %v2581_v25, %v480_v5  ;;  %v2717_v48 = vmax.f32 %v478_v9, 0.0  ;;  %v927_v62 = vsel %vm2616_vm2, %v893_v40, 0.0  ;;  %vm2806_vm2 = vcmp.lt.s32.totalorder %v3568_v32, 7 }
 0x129   : > { %v2719_v31 = vmax.f32 %v489_v57, 0.0  ;;  %v2152_v36 = vpack.i.bf16 %v928_v7, %v927_v62  ;;  %v868_v50 = vrot.slane %v2707_v46, 1  ;;  %2148 = vrot.lane.b32.xlu0 %v2147_v58, %s2356_s18  ;;  %v929_v57 = vsel %vm2642_vm4, %v891_v41, 0.0 }
 0x12a   : > { %v2727_v6 = vmax.f32 %v481_v8, 0.0  ;;  %v866_v51 = vrot.slane %v2717_v48, 1  ;;  %vm2812_vm3 = vcmp.lt.s32.totalorder %v666_v33, 7  ;;  %v2212_v8 = vpack.i.bf16 %v2657_v11, %v2630_v55 }
 0x12b   : > { %v869_v43 = vrot.slane %v2719_v31, 1  ;;  %2153 = vrot.lane.b32.xlu1 %v2152_v36, %s2357_s20  ;;  %v2167_v35 = vpack.i.bf16 %v2719_v31, %v2707_v46  ;;  %v3648_v36 = vand.u32 7, %v2610_v45 }
 0x12c   : > { %v867_v40 = vrot.slane %v2727_v6, 1  ;;  %v2029_v62 = vpop.f32.mrb[8].mxu0  ;;  %v2157_v7 = vpack.i.bf16 %v2727_v6, %v2717_v48  ;;  %v890_v59 = vsel %vm878_vm1, %v865_v47, %v866_v51  ;;  %v770_v32 = vrot.slane %v2727_v6, 7 }
 0x12d   : > { %v502_v0 = vadd.f32 %v2029_v62, %v2581_v25  ;;  %v493_v41 = vpop.f32.mrb[9].mxu0  ;;  %v887_v5 = vsel %vm878_vm1, %v868_v50, %v869_v43  ;;  %v930_v2 = vsel %vm2663_vm5, %v890_v59, 0.0  ;;  %vm2829_vm5 = vcmp.gt.s32.totalorder %v582_v27, 0 }
 0x12e   : > { %v494_v53 = vadd.f32 %v2581_v25, %v493_v41  ;;  %v2030_v63 = vpop.f32.mrb[10].mxu0  ;;  %v888_v62 = vsel %vm878_vm1, %v867_v40, %v868_v50  ;;  %v889_v47 = vsel %vm878_vm1, %v866_v51, %v867_v40  ;;  %v2162_v37 = vpack.i.bf16 %v930_v2, %v929_v57  ;;  %2158 = vrot.lane.b32.xlu0 %v2157_v7, %s2356_s18 }
 0x12f   : > { %v2799_v34 = vmax.f32 %v502_v0, 0.0  ;;  %v505_v59 = vadd.f32 %v2030_v63, %v2581_v25  ;;  %v496_v50 = vpop.f32.mrb[11].mxu0  ;;  %v931_v51 = vsel %vm2671_vm6, %v889_v47, 0.0  ;;  %v2234_v63 = vld [vmem:[%s3550_s3] sm:$0xff]   ;;  %v772_v2 = vrot.slane %v2719_v31, 7 }
 0x130   : > { %v2821_v42 = vmax.f32 %v494_v53, 0.0  ;;  %v497_v57 = vadd.f32 %v2581_v25, %v496_v50  ;;  %v932_v0 = vsel %vm2680_vm8, %v888_v62, 0.0  ;;  %vm2836_vm6 = vcmp.gt.s32.totalorder %v568_v26, 0  ;;  %2163 = vrot.lane.b32.xlu1 %v2162_v37, %s2357_s20  ;;  %2035 = vmatprep.subr.bf16.mxu1 %v2234_v63 }
 0x131   : > { %v2840_v7 = vmax.f32 %v505_v59, 0.0  ;;  %v2172_v25 = vpack.i.bf16 %v932_v0, %v931_v51  ;;  %v933_v16 = vsel %vm2697_vm9, %v887_v5, 0.0  ;;  %vm2847_vm8 = vcmp.gt.s32.totalorder %v575_v24, 0  ;;  %2036 = vmatpush3.bf16.msra.mxu1 %v2234_v63 }
 0x132   : > { %v872_v26 = vrot.slane %v2799_v34, 1  ;;  %v870_v49 = vrot.slane %v2821_v42, 1  ;;  %v2860_v1 = vmax.f32 %v497_v57, 0.0  ;;  %vm2864_vm9 = vcmp.gt.s32.totalorder %v3621_v14, 0 }
 0x133   : > { %v3622_v24 = vmov 0  ;;  %v873_v5 = vrot.slane %v2840_v7, 1  ;;  %v875_v62 = vrot.slane %v2684_v56, 1  ;;  %v2187_v59 = vpack.i.bf16 %v2840_v7, %v2799_v34  ;;  %2173 = vrot.lane.b32.xlu0 %v2172_v25, %s2357_s20  ;;  %v2235_v25 = vld [vmem:[%s3550_s3 + $0x8] sm:$0xff]  }
 0x134   : > { %v3623_v24 = vsel %vm2864_vm9, 4294967295, %v3622_v24  ;;  %v3624_v50 = vand.u32 7, %v2559_v17  ;;  %v3625_v51 = vmov 0  ;;  %v871_v57 = vrot.slane %v2860_v1, 1  ;;  %2168 = vrot.lane.b32.xlu1 %v2167_v35, %s2356_s18  ;;  %2037 = vmatprep.subr.bf16.mxu1 %v2235_v25 }
 0x135   : > { %v2182_v63 = vpack.i.bf16 %v2860_v1, %v2821_v42  ;;  %v886_v0 = vsel %vm878_vm1, %v869_v43, %v870_v49  ;;  %v3627_v17 = vand.u32 7, %v2562_v18  ;;  %v3633_v18 = vrot.slane %v2636_v61, 1  ;;  %2038 = vmatpush3.bf16.msra.mxu1 %v2235_v25 }
 0x136   : > { %vm2875_vm4 = vcmp.gt.s32.totalorder %v3624_v50, 0  ;;  %v3630_v50 = vand.u32 7, %v2574_v22  ;;  %v934_v43 = vsel %vm2731_vm10, %v886_v0, 0.0  ;;  %v883_v22 = vsel %vm878_vm1, %v872_v26, %v873_v5  ;;  %2039 = vmatprep.subr.bf16.mxu1 %v2236_v30 }
 0x137   : > { %v3626_v51 = vsel %vm2875_vm4, 4294967295, %v3625_v51  ;;  %vm2890_vm9 = vcmp.gt.s32.totalorder %v3627_v17, 0  ;;  %v882_v17 = vsel %vm878_vm1, %v873_v5, %v3633_v18  ;;  %v3634_v37 = vand.u32 7, %v2586_v28  ;;  %2183 = vrot.lane.b32.xlu0 %v2182_v63, %s2356_s18 }
 0x138   : > { %vm2896_vm4 = vcmp.gt.s32.totalorder %v3630_v50, 0  ;;  %v3637_v35 = vand.u32 7, %v2607_v44  ;;  %v2177_v0 = vpack.i.bf16 %v934_v43, %v933_v16  ;;  %v884_v18 = vsel %vm878_vm1, %v871_v57, %v872_v26 }
 0x139   : > { %v3632_v23 = vsel %vm2896_vm4, 4294967295, %v3631_v23  ;;  %vm2916_vm4 = vcmp.gt.s32.totalorder %v3634_v37, 0  ;;  %v885_v5 = vsel %vm878_vm1, %v870_v49, %v871_v57  ;;  %v937_v28 = vsel %vm2741_vm11, %v883_v22, 0.0  ;;  %2040 = vmatpush3.bf16.msra.mxu1 %v2236_v30 }
 0x13a   : > { %v3636_v21 = vsel %vm2916_vm4, 4294967295, %v3635_v21  ;;  %vm2922_vm10 = vcmp.gt.s32.totalorder %v3637_v35, 0  ;;  %v3640_v37 = vand.u32 7, %v2599_v38  ;;  %v935_v44 = vsel %vm2755_vm12, %v885_v5, 0.0  ;;  %2178 = vrot.lane.b32.xlu1 %v2177_v0, %s2357_s20 }
 0x13b   : > { %v936_v16 = vsel %vm2761_vm13, %v884_v18, 0.0  ;;  %v938_v26 = vsel %vm2767_vm14, %v882_v17, 0.0  ;;  %v3643_v49 = vand.u32 7, %v2589_v29  ;;  %vm2957_vm12 = vcmp.gt.s32.totalorder %v645_v3, 0  ;;  %2188 = vrot.lane.b32.xlu0 %v2187_v59, %s2356_s18 }
 0x13c   : > { %vm2934_vm4 = vcmp.gt.s32.totalorder %v3640_v37, 0  ;;  %vm2963_vm13 = vcmp.gt.s32.totalorder %v3648_v36, 0  ;;  %v2192_v29 = vpack.i.bf16 %v936_v16, %v935_v44  ;;  %v2202_v25 = vpack.i.bf16 %v938_v26, %v937_v28 }
 0x13d   : > { %vm2948_vm11 = vcmp.gt.s32.totalorder %v3643_v49, 0  ;;  %v3651_v43 = vrot.slane %v2630_v55, 1  ;;  %v881_v3 = vsel %vm878_vm1, %v3652_v39, %v875_v62  ;;  %vm2978_vm14 = vcmp.gt.s32.totalorder %v666_v33, 0 }
 0x13e   : > { %v939_v63 = vsel %vm2789_vm15, %v881_v3, 0.0  ;;  %v3655_v35 = vrot.slane %v2657_v11, 1  ;;  %vm3001_vm15 = vcmp.gt.s32.totalorder %v3659_v52, 0  ;;  %v3662_v44 = vrot.slane %v2655_v10, 7  ;;  %2193 = vrot.lane.b32.xlu1 %v2192_v29, %s2357_s20 }
 0x13f   : > { %v880_v17 = vsel %vm878_vm1, %v875_v62, %v3651_v43  ;;  %v3656_v18 = vmov %v3651_v43  ;;  %v3663_v16 = vrot.slane %v2628_v54, 7  ;;  %v3666_v36 = vrot.slane %v2659_v12, 7  ;;  %2203 = vrot.lane.b32.xlu0 %v2202_v25, %s2357_s20 }
 0x140   : > { %v940_v22 = vsel %vm2795_vm0, %v880_v17, 0.0  ;;  %v879_v62 = vsel %vm878_vm1, %v3656_v18, %v3655_v35  ;;  %v3658_v33 = vmov %v3655_v35  ;;  %v3669_v17 = vrot.slane %v2634_v60, 7 }
 0x141   : > { %v894_v0 = vsel %vm878_vm1, %v3658_v33, %v3657_v20  ;;  %v2207_v5 = vpack.i.bf16 %v940_v22, %v939_v63  ;;  %v941_v28 = vsel %vm2806_vm2, %v879_v62, 0.0  ;;  %vm3664_vm1 = vcmp.lt.s32.totalorder %v2547_v13, 1 }
 0x142   : > { %v942_v37 = vsel %vm2812_vm3, %v894_v0, 0.0  ;;  %v3015_v26 = vsel %vm3664_vm1, %v3663_v16, %v3662_v44  ;;  %v3665_v49 = vmov %v3663_v16  ;;  %vm3667_vm0 = vmmov %vm3664_vm1  ;;  %v3668_v43 = vmov %v3666_v36 }
 0x143   : > { %v2217_v19 = vpack.i.bf16 %v942_v37, %v941_v28  ;;  %v3023_v40 = vsel %vm3667_vm0, %v3666_v36, %v3665_v49  ;;  %v833_v4 = vsel %vm2829_vm5, %v3015_v26, 0.0  ;;  %vm3670_vm2 = vmmov %vm3667_vm0  ;;  %v3671_v3 = vmov %v3669_v17  ;;  %2213 = vrot.lane.b32.xlu0 %v2212_v8, %s2356_s18 }
 0x144   : > { %v796_v39 = vsel %vm3670_vm2, %v3669_v17, %v3668_v43  ;;  %v832_v54 = vsel %vm2847_vm8, %v3023_v40, 0.0  ;;  %v3672_v63 = vrot.slane %v2657_v11, 7  ;;  %vm3673_vm3 = vmmov %vm3667_vm0  ;;  %v3674_v30 = vrot.slane %v2717_v48, 7 }
 0x145   : > { %v831_v12 = vsel %vm2836_vm6, %v796_v39, 0.0  ;;  %vm3675_vm1 = vmmov %vm3667_vm0  ;;  %v778_v27 = vrot.slane %v2684_v56, 7  ;;  %v3677_v53 = vmov %v3662_v44  ;;  %vm3679_vm8 = vnez %v3623_v24 }
 0x146   : > { %v797_v22 = vsel %vm3673_vm3, %v3672_v63, %v3671_v3  ;;  %v3052_v59 = vsel %vm3675_vm1, %v3674_v30, %v770_v32  ;;  %v3676_v35 = vmov %v3674_v30  ;;  %vm3678_vm6 = vmmov %vm3667_vm0  ;;  %v775_v20 = vrot.slane %v2799_v34, 7 }
 0x147   : > { %v830_v60 = vsel %vm2853_vm7, %v797_v22, 0.0  ;;  %v3064_v18 = vsel %vm3678_vm6, %v3677_v53, %v3676_v35  ;;  %v835_v62 = vsel %vm3679_vm8, %v3052_v59, 0.0  ;;  %vm3680_vm0 = vnez %v3626_v51  ;;  %vm3682_vm7 = vmmov %vm3675_vm1 }
 0x148   : > { %v834_v29 = vsel %vm3680_vm0, %v3064_v18, 0.0  ;;  %v3681_v48 = vrot.slane %v2707_v46, 7  ;;  %vm3684_vm2 = vmmov %vm3675_vm1  ;;  %vm3685_vm3 = vnez %v3632_v23  ;;  %v3686_v52 = vrot.slane %v2860_v1, 7 }
 0x149   : > { %v3687_v28 = vrot.slane %v2821_v42, 7  ;;  %vm3689_vm6 = vmmov %vm3675_vm1  ;;  %v3691_v16 = vrot.slane %v2840_v7, 7  ;;  %v3693_v42 = vmov 0   ;;  %v3696_v40 = vrot.slane %v2636_v61, 7 }
 0x14a   : > { %v3079_v10 = vsel %vm3682_vm7, %v3681_v48, %v772_v2  ;;  %v3683_v15 = vmov %v3681_v48  ;;  %vm3690_vm7 = vnez %v3636_v21  ;;  %v3694_v25 = vmov %v3686_v52 }
 0x14b   : > { %v3087_v33 = vsel %vm3684_vm2, %v770_v32, %v3683_v15  ;;  %v837_v0 = vsel %vm3685_vm3, %v3079_v10, 0.0  ;;  %v3101_v46 = vsel %vm3675_vm1, %v3687_v28, %v3686_v52  ;;  %v3688_v6 = vmov %v3687_v28 }
 0x14c   : > { %v836_v34 = vsel %vm2890_vm9, %v3087_v33, 0.0  ;;  %v3109_v32 = vsel %vm3689_vm6, %v772_v2, %v3688_v6  ;;  %v839_v44 = vsel %vm2922_vm10, %v3101_v46, 0.0  ;;  %vm3574_vm2 = vcmask 388096   ;;  %vm3695_vm6 = vmmov %vm3675_vm1 }
 0x14d   : > { %v838_v37 = vsel %vm3690_vm7, %v3109_v32, 0.0  ;;  %v3122_v31 = vsel %vm3675_vm1, %v775_v20, %v3691_v16  ;;  %v3692_v2 = vpack.i.bf16 %v2684_v56, %v2636_v61  ;;  %302 = vst.msk [vmem:[#allocation2] sm:$0xf] %vm3574_vm2, %v3693_v42  ;;  %303 = vst.msk [vmem:[#allocation2 + $0x28] sm:$0xf] %vm3574_vm2, %v3693_v42  ;;  %v3136_v49 = vsel %vm3695_vm6, %v3694_v25, %v775_v20 }
 0x14e   : > { %v841_v36 = vsel %vm2934_vm4, %v3122_v31, 0.0  ;;  %v3145_v56 = vsel %vm3675_vm1, %v3696_v40, %v778_v27  ;;  %v3697_v43 = vmov %v3696_v40  ;;  %v3698_v17 = vmov %v3691_v16  ;;  %vm3699_vm2 = vmmov %vm3675_vm1 }
 0x14f   : > { %2198 = vrot.lane.b32.xlu1 %v3692_v2, %s2356_s18  ;;  %v3153_v1 = vsel %vm3699_vm2, %v3698_v17, %v3697_v43  ;;  %v840_v39 = vsel %vm2948_vm11, %v3136_v49, 0.0  ;;  %v843_v63 = vsel %vm2963_vm13, %v3145_v56, 0.0  ;;  %v3700_v61 = vrot.slane %v2657_v11, 7  ;;  %vm3702_vm6 = vmmov %vm3675_vm1  ;;  %s2288_s18 = sshll.u32 %s2360_s11, 4  ;;  %s2289_s18 = int_to_ptr.vmem [resolvable:$false] %s2288_s18 }
 0x150   : > { %v842_v3 = vsel %vm2957_vm12, %v3153_v1, 0.0  ;;  %v3701_v7 = vrot.slane %v2630_v55, 7  ;;  %vm3704_vm2 = vmmov %vm3675_vm1  ;;  %vm1088_vm1 = vcmask 261120   ;;  %vm1147_vm5 = vcmask 392192  }
 0x151   : > { %vm3706_vm9 = vcmask 388096   ;;  %vm1775_vm12 = vcmask 519168  }
 0x152   : > { %v3170_v22 = vsel %vm3702_vm6, %v3701_v7, %v3700_v61  ;;  %v3703_v30 = vmov %v3701_v7  ;;  %vm1071_vm6 = vcmask 130048   ;;  %vm3709_vm11 = vmmov %vm3706_vm9 }
 0x153   : > { %v3176_v35 = vsel %vm3704_vm2, %v778_v27, %v3703_v30  ;;  %v845_v53 = vsel %vm2978_vm14, %v3170_v22, 0.0  ;;  %2208 = vrot.lane.b32.xlu1 %v2207_v5, %s2357_s20  ;;  %vm3705_vm2 = vcmask 392196  }
 0x154   : > { %v844_v20 = vsel %vm3001_vm15, %v3176_v35, 0.0  ;;  %vm1121_vm15 = vcmask 1043456   ;;  %vm3707_vm4 = vmmov %vm3705_vm2 }
 0x157   : > { %2218 = vrot.lane.b32.xlu1 %v2217_v19, %s2357_s20  ;;  %s2290_s20 = scalar_lea.vmem %s2289_s18, 2048 }
 0x197   : > { %v2144_v13 = vpop.permute.xlu0 %2143 }
 0x198   : > { %v2146_v16 = vunpack.i.h.bf16 %v2144_v13  ;;  %v2145_v55 = vunpack.i.l.bf16 %v2144_v13 }
 0x19a   : > { %v1074_v7 = vsel %vm1071_vm6, %v832_v54, %v2145_v55 }
 0x19b   : > { %v2149_v27 = vpop.permute.xlu0 %2148 }
 0x19c   : > { %v2151_v15 = vunpack.i.h.bf16 %v2149_v27  ;;  %v2150_v52 = vunpack.i.l.bf16 %v2149_v27 }
 0x19d   : > { %v2154_v48 = vpop.permute.xlu1 %2153 }
 0x19e   : > { %v2156_v28 = vunpack.i.h.bf16 %v2154_v48  ;;  %v2155_v6 = vunpack.i.l.bf16 %v2154_v48  ;;  %v1072_v11 = vsel %vm1071_vm6, %v830_v60, %v2150_v52  ;;  %v1073_v8 = vsel %vm1071_vm6, %v831_v12, %v2151_v15 }
 0x19f   : > { %v1075_v60 = vsel %vm1071_vm6, %v833_v4, %v2146_v16 }
 0x1a0   : > { %v1089_v2 = vsel %vm1088_vm1, %v1072_v11, %v2155_v6  ;;  %v1090_v5 = vsel %vm1088_vm1, %v1073_v8, %v2156_v28  ;;  %v2159_v19 = vpop.permute.xlu0 %2158 }
 0x1a1   : > { %v1105_v42 = vpack.c.bf16 %v1090_v5, %v1089_v2  ;;  %v2161_v40 = vunpack.i.h.bf16 %v2159_v19  ;;  %v2160_v43 = vunpack.i.l.bf16 %v2159_v19 }
 0x1a2   : > { %v2164_v25 = vpop.permute.xlu1 %2163 }
 0x1a3   : > { %v2166_v17 = vunpack.i.h.bf16 %v2164_v25  ;;  %v2165_v61 = vunpack.i.l.bf16 %v2164_v25  ;;  %v1122_v12 = vrot.slane %v1105_v42, 4  ;;  %v1077_v47 = vsel %vm1071_vm6, %v835_v62, %v2161_v40 }
 0x1a4   : > { %v1076_v26 = vsel %vm1071_vm6, %v834_v29, %v2160_v43 }
 0x1a5   : > { %v1092_v30 = vsel %vm1088_vm1, %v1075_v60, %v2166_v17  ;;  %v1091_v13 = vsel %vm1088_vm1, %v1074_v7, %v2165_v61  ;;  %v2174_v27 = vpop.permute.xlu0 %2173  ;;  %1146 = vst.msk [vmem:[#allocation2] sm:$0xf0] %vm3705_vm2, %v1122_v12 }
 0x1a6   : > { %v1106_v48 = vpack.c.bf16 %v1092_v30, %v1091_v13  ;;  %v2176_v15 = vunpack.i.h.bf16 %v2174_v27  ;;  %v2175_v52 = vunpack.i.l.bf16 %v2174_v27  ;;  %v2169_v28 = vpop.permute.xlu1 %2168 }
 0x1a7   : > { %v2171_v4 = vunpack.i.h.bf16 %v2169_v28  ;;  %v2170_v55 = vunpack.i.l.bf16 %v2169_v28 }
 0x1a8   : > { %v1123_v54 = vrot.slane %v1106_v48, 4  ;;  %v1093_v6 = vsel %vm1088_vm1, %v1076_v26, %v2175_v52  ;;  %v1094_v16 = vsel %vm1088_vm1, %v1077_v47, %v2176_v15 }
 0x1a9   : > { %v1107_v11 = vpack.c.bf16 %v1094_v16, %v1093_v6  ;;  %v2184_v24 = vpop.permute.xlu0 %2183  ;;  %v1079_v29 = vsel %vm1071_vm6, %v837_v0, %v2171_v4  ;;  %v1078_v2 = vsel %vm1071_vm6, %v836_v34, %v2170_v55 }
 0x1aa   : > { %v1124_v59 = vsel %vm1121_vm15, %v1122_v12, %v1123_v54  ;;  %v2186_v5 = vunpack.i.h.bf16 %v2184_v24  ;;  %v2185_v19 = vunpack.i.l.bf16 %v2184_v24 }
 0x1ab   : > { %1148 = vst.msk [vmem:[#allocation2 + $0x8] sm:$0xff] %vm1147_vm5, %v1124_v59  ;;  %v1125_v51 = vrot.slane %v1107_v11, 4 }
 0x1ac   : > { %v2179_v8 = vpop.permute.xlu1 %2178  ;;  %v1157_v23 = vld [vmem:[#allocation2] sm:$0xff]  ;;  %v1081_v61 = vsel %vm1071_vm6, %v839_v44, %v2186_v5  ;;  %v1080_v7 = vsel %vm1071_vm6, %v838_v37, %v2185_v19 }
 0x1ad   : > { %v2181_v62 = vunpack.i.h.bf16 %v2179_v8  ;;  %v2180_v18 = vunpack.i.l.bf16 %v2179_v8  ;;  %v1126_v42 = vsel %vm1121_vm15, %v1123_v54, %v1125_v51  ;;  %v2189_v43 = vpop.permute.xlu0 %2188  ;;  %2041 = vmatprep.mubr.msk.bf16.mxu1 %vm1147_vm5, %v1157_v23 }
 0x1ae   : > { %1149 = vst.msk [vmem:[#allocation2 + $0x10] sm:$0xff] %vm1147_vm5, %v1126_v42  ;;  %v2191_v0 = vunpack.i.h.bf16 %v2189_v43  ;;  %v2190_v33 = vunpack.i.l.bf16 %v2189_v43 }
 0x1af   : > { %v1095_v25 = vsel %vm1088_vm1, %v1078_v2, %v2180_v18  ;;  %v1096_v40 = vsel %vm1088_vm1, %v1079_v29, %v2181_v62 }
 0x1b0   : > { %v1108_v10 = vpack.c.bf16 %v1096_v40, %v1095_v25  ;;  %v2194_v14 = vpop.permute.xlu1 %2193  ;;  %v1083_v21 = vsel %vm1071_vm6, %v841_v36, %v2191_v0  ;;  %v1082_v32 = vsel %vm1071_vm6, %v840_v39, %v2190_v33 }
 0x1b1   : > { %v2196_v17 = vunpack.i.h.bf16 %v2194_v14  ;;  %v2195_v34 = vunpack.i.l.bf16 %v2194_v14  ;;  %v2204_v13 = vpop.permute.xlu0 %2203 }
 0x1b2   : > { %v1127_v60 = vrot.slane %v1108_v10, 4  ;;  %v2206_v46 = vunpack.i.h.bf16 %v2204_v13  ;;  %v2205_v48 = vunpack.i.l.bf16 %v2204_v13  ;;  %v1158_v15 = vld [vmem:[#allocation2 + $0x8] sm:$0xff]  ;;  %v2237_v10 = vld [vmem:[%s3552_s5] sm:$0xff]  }
 0x1b3   : > { %v1098_v12 = vsel %vm1088_vm1, %v1081_v61, %v2196_v17  ;;  %v1097_v30 = vsel %vm1088_vm1, %v1080_v7, %v2195_v34  ;;  %2042 = vmatmul.mubr.msk.bf16.vlgmr.msra.gmra.mrb[4].mxu1 %vm1147_vm5, %v1158_v15  ;;  %2061 = vmatprep.subr.bf16.mxu0 %v2237_v10 }
 0x1b4   : > { %v1128_v27 = vsel %vm1121_vm15, %v1125_v51, %v1127_v60  ;;  %1151 = vst.msk [vmem:[#allocation2 + $0x20] sm:$0xf] %vm3706_vm9, %v1127_v60  ;;  %v1109_v9 = vpack.c.bf16 %v1098_v12, %v1097_v30  ;;  %v1099_v28 = vsel %vm1088_vm1, %v1082_v32, %v2205_v48  ;;  %v1100_v47 = vsel %vm1088_vm1, %v1083_v21, %v2206_v46 }
 0x1b5   : > { %1150 = vst.msk [vmem:[#allocation2 + $0x18] sm:$0xff] %vm1147_vm5, %v1128_v27  ;;  %v1110_v50 = vpack.c.bf16 %v1100_v47, %v1099_v28  ;;  %v2214_v4 = vpop.permute.xlu0 %2213  ;;  %v1159_v31 = vld [vmem:[#allocation2 + $0x10] sm:$0xff]  ;;  %2062 = vmatpush3.bf16.msra.mxu0 %v2237_v10  ;;  %v3391_v28 = vld [vmem:[%s3551_s4] ss:$0 sm:$0xff] }
 0x1b6   : > { %v1129_v52 = vrot.slane %v1109_v9, 4  ;;  %2045 = vmatprep.mubr.msk.bf16.mxu1 %vm1147_vm5, %v1159_v31  ;;  %v2216_v16 = vunpack.i.h.bf16 %v2214_v4  ;;  %v2215_v55 = vunpack.i.l.bf16 %v2214_v4 }
 0x1b7   : > { %v1130_v49 = vrot.slane %v1110_v50, 4 }
 0x1b8   : > { %1152 = vst.msk [vmem:[#allocation2 + $0x28] sm:$0xf0] %vm3707_vm4, %v1129_v52  ;;  %v1087_v1 = vsel %vm1071_vm6, %v845_v53, %v2216_v16 }
 0x1b9   : > { %v1131_v11 = vsel %vm1121_vm15, %v1129_v52, %v1130_v49 }
 0x1ba   : > { %1153 = vst.msk [vmem:[#allocation2 + $0x30] sm:$0xff] %vm1147_vm5, %v1131_v11 }
 0x1bb   : > { %v1161_v58 = vld [vmem:[#allocation2 + $0x20] sm:$0xff] }
 0x1bc   : > { %v1160_v8 = vld [vmem:[#allocation2 + $0x18] sm:$0xff] }
 0x1bd   : > { %2046 = vmatmul.mubr.msk.bf16.gmra.mrb[8].mxu1 %vm1147_vm5, %v1160_v8 }
 0x1be   : > { %2049 = vmatprep.mubr.msk.bf16.mxu1 %vm1147_vm5, %v1161_v58 }
 0x1bf   : > { %v1162_v41 = vld [vmem:[#allocation2 + $0x28] sm:$0xff] }
 0x1c1   : > { %v2199_v44 = vpop.permute.xlu1 %2198  ;;  %v1163_v35 = vld [vmem:[#allocation2 + $0x30] sm:$0xff] }
 0x1c2   : > { %v2201_v37 = vunpack.i.h.bf16 %v2199_v44  ;;  %v2200_v26 = vunpack.i.l.bf16 %v2199_v44 }
 0x1c4   : > { %v1085_v54 = vsel %vm1071_vm6, %v843_v63, %v2201_v37  ;;  %v1084_v6 = vsel %vm1071_vm6, %v842_v3, %v2200_v26  ;;  %v1086_v3 = vsel %vm1071_vm6, %v844_v20, %v2215_v55 }
 0x1c5   : > { %v2209_v38 = vpop.permute.xlu1 %2208  ;;  %2050 = vmatmul.mubr.msk.bf16.gmra.mrb[12].mxu1 %vm1147_vm5, %v1162_v41 }
 0x1c6   : > { %v2211_v36 = vunpack.i.h.bf16 %v2209_v38  ;;  %v2210_v39 = vunpack.i.l.bf16 %v2209_v38  ;;  %2053 = vmatprep.mubr.msk.bf16.mxu1 %vm1147_vm5, %v1163_v35 }
 0x1c8   : > { %v1101_v24 = vsel %vm1088_vm1, %v1084_v6, %v2210_v39  ;;  %v1102_v59 = vsel %vm1088_vm1, %v1085_v54, %v2211_v36 }
 0x1c9   : > { %v1111_v57 = vpack.c.bf16 %v1102_v59, %v1101_v24  ;;  %v2219_v56 = vpop.permute.xlu1 %2218 }
 0x1ca   : > { %v2221_v63 = vunpack.i.h.bf16 %v2219_v56  ;;  %v2220_v51 = vunpack.i.l.bf16 %v2219_v56 }
 0x1cb   : > { %v1132_v62 = vrot.slane %v1111_v57, 4 }
 0x1cc   : > { %v1104_v18 = vsel %vm1088_vm1, %v1087_v1, %v2221_v63  ;;  %v1103_v29 = vsel %vm1088_vm1, %v1086_v3, %v2220_v51 }
 0x1cd   : > { %v1133_v2 = vsel %vm1121_vm15, %v1130_v49, %v1132_v62  ;;  %v1112_v45 = vpack.c.bf16 %v1104_v18, %v1103_v29 }
 0x1ce   : > { %1154 = vst.msk [vmem:[#allocation2 + $0x38] sm:$0xff] %vm1147_vm5, %v1133_v2 }
 0x1cf   : > { %v1134_v22 = vrot.slane %v1112_v45, 4 }
 0x1d1   : > { %v1135_v53 = vsel %vm1121_vm15, %v1132_v62, %v1134_v22  ;;  %1156 = vst.msk [vmem:[#allocation2 + $0x48] sm:$0xf] %vm3709_vm11, %v1134_v22 }
 0x1d2   : > { %1155 = vst.msk [vmem:[#allocation2 + $0x40] sm:$0xff] %vm1147_vm5, %v1135_v53 }
 0x1d5   : > { %v1164_v20 = vld [vmem:[#allocation2 + $0x38] sm:$0xff] }
 0x1d6   : > { %2054 = vmatmul.mubr.msk.bf16.gmra.mrb[16].mxu1 %vm1147_vm5, %v1164_v20 }
 0x1d8   : > { %v1166_v19 = vld [vmem:[#allocation2 + $0x48] sm:$0xff] }
 0x1d9   : > { %v1165_v5 = vld [vmem:[#allocation2 + $0x40] sm:$0xff] }
 0x1da   : > { %2057 = vmatprep.mubr.msk.bf16.mxu1 %vm1147_vm5, %v1165_v5 }
 0x1de   : > { %2058 = vmatmul.mubr.msk.bf16.gmra.mrb[20].mxu1 %vm1147_vm5, %v1166_v19 }
 0x286   : > { %v3300_v42 = vpop.f32.mrb[4].mxu1 }
 0x287   : > { %1416 = vrot.lane.b32.xlu0 %v3300_v42, %s2358_s9  ;;  %1352 = vrot.lane.b32.xlu1 %v3300_v42, %s2359_s8  ;;  %v1255_v25 = vpop.f32.mrb[5].mxu1 }
 0x288   : > { %v3306_v40 = vpop.f32.mrb[6].mxu1 }
 0x289   : > { %v1258_v43 = vpop.f32.mrb[7].mxu1 }
 0x28b   : > { %1418 = vrot.lane.b32.xlu1 %v3306_v40, %s2358_s9  ;;  %1354 = vrot.lane.b32.xlu0 %v3306_v40, %s2359_s8 }
 0x28f   : > { %1350 = vrot.lane.b32.xlu0 %v1258_v43, %s2359_s8 }
 0x290   : > { %v3312_v23 = vpop.f32.mrb[8].mxu1 }
 0x291   : > { %1360 = vrot.lane.b32.xlu1 %v3312_v23, %s2359_s8  ;;  %v3320_v14 = vpop.f32.mrb[9].mxu1 }
 0x292   : > { %v3322_v0 = vpop.f32.mrb[10].mxu1 }
 0x293   : > { %v3324_v33 = vpop.f32.mrb[11].mxu1  ;;  %1424 = vrot.lane.b32.xlu0 %v3312_v23, %s2358_s9 }
 0x295   : > { %1356 = vrot.lane.b32.xlu1 %v3320_v14, %s2359_s8 }
 0x297   : > { %1420 = vrot.lane.b32.xlu0 %v3320_v14, %s2358_s9 }
 0x298   : > { %v3330_v17 = vpop.f32.mrb[12].mxu1 }
 0x299   : > { %1426 = vrot.lane.b32.xlu1 %v3322_v0, %s2358_s9  ;;  %v1287_v34 = vpop.f32.mrb[13].mxu1 }
 0x29a   : > { %v3336_v61 = vpop.f32.mrb[14].mxu1 }
 0x29b   : > { %v1290_v7 = vpop.f32.mrb[15].mxu1  ;;  %1362 = vrot.lane.b32.xlu0 %v3322_v0, %s2359_s8 }
 0x29d   : > { %1422 = vrot.lane.b32.xlu1 %v3324_v33, %s2358_s9 }
 0x29f   : > { %1358 = vrot.lane.b32.xlu0 %v3324_v33, %s2359_s8 }
 0x2a1   : > { %1364 = vrot.lane.b32.xlu1 %v1287_v34, %s2359_s8 }
 0x2a3   : > { %1428 = vrot.lane.b32.xlu0 %v1287_v34, %s2358_s9 }
 0x2a5   : > { %1430 = vrot.lane.b32.xlu1 %v1290_v7, %s2358_s9 }
 0x2a7   : > { %1366 = vrot.lane.b32.xlu0 %v3336_v61, %s2359_s8 }
 0x2a9   : > { %v3342_v60 = vpop.f32.mrb[16].mxu1 }
 0x2aa   : > { %v3347_v12 = vpop.f32.mrb[17].mxu1  ;;  %1372 = vrot.lane.b32.xlu1 %v3342_v60, %s2359_s8 }
 0x2ab   : > { %v3349_v30 = vpop.f32.mrb[18].mxu1  ;;  %1436 = vrot.lane.b32.xlu0 %v3342_v60, %s2358_s9 }
 0x2ac   : > { %v3351_v13 = vpop.f32.mrb[19].mxu1 }
 0x2ae   : > { %1368 = vrot.lane.b32.xlu1 %v3347_v12, %s2359_s8 }
 0x2af   : > { %1432 = vrot.lane.b32.xlu0 %v3347_v12, %s2358_s9 }
 0x2b1   : > { %v2059_v27 = vpop.f32.mrb[20].mxu1 }
 0x2b2   : > { %v3359_v9 = vpop.f32.mrb[21].mxu1  ;;  %1438 = vrot.lane.b32.xlu1 %v3349_v30, %s2358_s9 }
 0x2b3   : > { %v2060_v46 = vpop.f32.mrb[22].mxu1  ;;  %1374 = vrot.lane.b32.xlu0 %v3349_v30, %s2359_s8 }
 0x2b4   : > { %v3361_v48 = vpop.f32.mrb[23].mxu1 }
 0x2b6   : > { %1434 = vrot.lane.b32.xlu1 %v3351_v13, %s2358_s9 }
 0x2b7   : > { %1370 = vrot.lane.b32.xlu0 %v3351_v13, %s2359_s8 }
 0x2ba   : > { %1380 = vrot.lane.b32.xlu1 %v2059_v27, %s2359_s8 }
 0x2bb   : > { %1440 = vrot.lane.b32.xlu0 %v3359_v9, %s2358_s9 }
 0x2be   : > { %1376 = vrot.lane.b32.xlu1 %v3359_v9, %s2359_s8 }
 0x2bf   : > { %1378 = vrot.lane.b32.xlu0 %v3361_v48, %s2359_s8 }
 0x2c2   : > { %1442 = vrot.lane.b32.xlu1 %v3361_v48, %s2358_s9 }
 0x2c3   : > { %1444 = vrot.lane.b32.xlu0 %v2059_v27, %s2358_s9 }
 0x2c6   : > { %1446 = vrot.lane.b32.xlu1 %v2060_v46, %s2358_s9  ;;  %s3495_s9 = scalar_lea.hbm %s3554_s7, %s1976_s17 }
 0x2f9   : > { %v1417_v44 = vpop.permute.xlu0 %1416  ;;  %v1353_v15 = vpop.permute.xlu1 %1352 }
 0x2fa   : > { %v1399_v37 = vadd.f32 %v1353_v15, %v1258_v43 }
 0x2fd   : > { %v1419_v21 = vpop.permute.xlu1 %1418  ;;  %v1355_v32 = vpop.permute.xlu0 %1354 }
 0x2fe   : > { %v1465_v52 = vadd.f32 %v1419_v21, %v1399_v37  ;;  %v1400_v54 = vadd.f32 %v3300_v42, %v1355_v32 }
 0x300   : > { %v1488_v4 = vadd.f32 %v3391_v28, %v1465_v52 }
 0x301   : > { %v1351_v47 = vpop.permute.xlu0 %1350 }
 0x302   : > { %v1398_v50 = vadd.f32 %v1351_v47, %v1255_v25  ;;  %v1504_v39 = vmax.f32 %v1488_v4, 0.0 }
 0x303   : > { %v1361_v26 = vpop.permute.xlu1 %1360 }
 0x304   : > { %v1464_v31 = vadd.f32 %v1417_v44, %v1398_v50  ;;  %v1403_v57 = vadd.f32 %v1361_v26, %v3324_v33 }
 0x305   : > { %v1425_v38 = vpop.permute.xlu0 %1424 }
 0x306   : > { %v1487_v36 = vadd.f32 %v3391_v28, %v1464_v31 }
 0x307   : > { %v1357_v49 = vpop.permute.xlu1 %1356 }
 0x308   : > { %v1503_v6 = vmax.f32 %v1487_v36, 0.0  ;;  %v1401_v59 = vadd.f32 %v3306_v40, %v1357_v49 }
 0x309   : > { %v1421_v16 = vpop.permute.xlu0 %1420 }
 0x30a   : > { %v1519_v11 = vpack.c.bf16 %v1504_v39, %v1503_v6  ;;  %v1466_v24 = vadd.f32 %v1421_v16, %v1400_v54 }
 0x30b   : > { %v1427_v55 = vpop.permute.xlu1 %1426 }
 0x30c   : > { %2063 = vmatprep.mubr.msk.bf16.mxu0 %vm1071_vm6, %v1519_v11  ;;  %v1489_v63 = vadd.f32 %v3391_v28, %v1466_v24  ;;  %v1469_v58 = vadd.f32 %v1427_v55, %v1403_v57 }
 0x30d   : > { %v1363_v56 = vpop.permute.xlu0 %1362 }
 0x30e   : > { %v1505_v18 = vmax.f32 %v1489_v63, 0.0  ;;  %v1492_v45 = vadd.f32 %v3391_v28, %v1469_v58  ;;  %v1404_v22 = vadd.f32 %v3312_v23, %v1363_v56 }
 0x30f   : > { %v1423_v8 = vpop.permute.xlu1 %1422 }
 0x310   : > { %v1467_v51 = vadd.f32 %v1423_v8, %v1401_v59  ;;  %v1508_v40 = vmax.f32 %v1492_v45, 0.0 }
 0x311   : > { %v1359_v3 = vpop.permute.xlu0 %1358 }
 0x312   : > { %v1490_v1 = vadd.f32 %v3391_v28, %v1467_v51  ;;  %v1402_v2 = vadd.f32 %v1359_v3, %v3320_v14 }
 0x313   : > { %v1365_v62 = vpop.permute.xlu1 %1364 }
 0x314   : > { %v1506_v29 = vmax.f32 %v1490_v1, 0.0  ;;  %v1468_v41 = vadd.f32 %v1425_v38, %v1402_v2  ;;  %v1405_v35 = vadd.f32 %v3322_v0, %v1365_v62 }
 0x315   : > { %v1429_v20 = vpop.permute.xlu0 %1428 }
 0x316   : > { %v1520_v53 = vpack.c.bf16 %v1506_v29, %v1505_v18  ;;  %v1491_v19 = vadd.f32 %v3391_v28, %v1468_v41  ;;  %v1470_v42 = vadd.f32 %v1429_v20, %v1404_v22 }
 0x317   : > { %v1431_v5 = vpop.permute.xlu1 %1430 }
 0x318   : > { %v1471_v25 = vadd.f32 %v1431_v5, %v1405_v35  ;;  %2064 = vmatmul.mubr.msk.bf16.vlgmr.msra.gmra.mrb[12].mxu0 %vm1071_vm6, %v1520_v53  ;;  %v1507_v43 = vmax.f32 %v1491_v19, 0.0  ;;  %v1493_v10 = vadd.f32 %v3391_v28, %v1470_v42  ;;  %v3434_v19 = vld [vmem:[%s3553_s6] ss:$0 sm:$0xff]  ;;  %v2246_v42 = vld [vmem:[%s2513_s15 + $0x8] sm:$0xff]  }
 0x319   : > { %v1367_v33 = vpop.permute.xlu0 %1366 }
 0x31a   : > { %v1494_v14 = vadd.f32 %v3391_v28, %v1471_v25  ;;  %v1521_v34 = vpack.c.bf16 %v1508_v40, %v1507_v43  ;;  %v1509_v7 = vmax.f32 %v1493_v10, 0.0  ;;  %v1406_v15 = vadd.f32 %v3330_v17, %v1367_v33  ;;  %v2247_v40 = vld [vmem:[%s2513_s15] sm:$0xff]  }
 0x31b   : > { %v1665_v25 = vunpack.c.l.bf16 %v2246_v42  ;;  %v1663_v43 = vunpack.c.l.bf16 %v2247_v40  ;;  %v1666_v33 = vunpack.c.h.bf16 %v2246_v42 }
 0x31c   : > { %v1373_v23 = vpop.permute.xlu1 %1372  ;;  %v1510_v27 = vmax.f32 %v1494_v14, 0.0  ;;  %2067 = vmatprep.mubr.msk.bf16.mxu0 %vm1071_vm6, %v1521_v34 }
 0x31d   : > { %v1437_v46 = vpop.permute.xlu0 %1436  ;;  %v1409_v50 = vadd.f32 %v1373_v23, %v3351_v13  ;;  %v1664_v23 = vunpack.c.h.bf16 %v2247_v40 }
 0x31e   : > { %v1522_v0 = vpack.c.bf16 %v1510_v27, %v1509_v7 }
 0x320   : > { %v1369_v44 = vpop.permute.xlu1 %1368  ;;  %2068 = vmatmul.mubr.msk.bf16.gmra.mrb[16].mxu0 %vm1071_vm6, %v1522_v0 }
 0x321   : > { %v1433_v21 = vpop.permute.xlu0 %1432  ;;  %v1407_v52 = vadd.f32 %v3336_v61, %v1369_v44 }
 0x322   : > { %v1472_v37 = vadd.f32 %v1433_v21, %v1406_v15 }
 0x324   : > { %v1439_v32 = vpop.permute.xlu1 %1438  ;;  %v1495_v4 = vadd.f32 %v3391_v28, %v1472_v37 }
 0x325   : > { %v1375_v47 = vpop.permute.xlu0 %1374  ;;  %v1475_v38 = vadd.f32 %v1439_v32, %v1409_v50  ;;  %v2248_v50 = vld [vmem:[%s2513_s15 + $0x18] sm:$0xff]  }
 0x326   : > { %v1511_v54 = vmax.f32 %v1495_v4, 0.0  ;;  %v1410_v61 = vadd.f32 %v3342_v60, %v1375_v47  ;;  %v1669_v4 = vunpack.c.l.bf16 %v2248_v50 }
 0x327   : > { %v1498_v16 = vadd.f32 %v3391_v28, %v1475_v38 }
 0x328   : > { %v1435_v26 = vpop.permute.xlu1 %1434 }
 0x329   : > { %v1473_v31 = vadd.f32 %v1435_v26, %v1407_v52  ;;  %v1371_v36 = vpop.permute.xlu0 %1370  ;;  %v1514_v56 = vmax.f32 %v1498_v16, 0.0  ;;  %v1670_v16 = vunpack.c.h.bf16 %v2248_v50 }
 0x32a   : > { %v1408_v17 = vadd.f32 %v1371_v36, %v3347_v12  ;;  %v2249_v36 = vld [vmem:[%s2513_s15 + $0x10] sm:$0xff]  }
 0x32b   : > { %v1496_v49 = vadd.f32 %v3391_v28, %v1473_v31 }
 0x32c   : > { %v1381_v39 = vpop.permute.xlu1 %1380  ;;  %v1474_v11 = vadd.f32 %v1437_v46, %v1408_v17 }
 0x32d   : > { %v1512_v6 = vmax.f32 %v1496_v49, 0.0  ;;  %v1441_v24 = vpop.permute.xlu0 %1440  ;;  %v1413_v60 = vadd.f32 %v1381_v39, %v3361_v48  ;;  %v1667_v39 = vunpack.c.l.bf16 %v2249_v36 }
 0x32e   : > { %v1497_v59 = vadd.f32 %v3391_v28, %v1474_v11  ;;  %v1476_v57 = vadd.f32 %v1441_v24, %v1410_v61  ;;  %v1668_v24 = vunpack.c.h.bf16 %v2249_v36 }
 0x32f   : > { %v1523_v55 = vpack.c.bf16 %v1512_v6, %v1511_v54 }
 0x330   : > { %v1377_v13 = vpop.permute.xlu1 %1376  ;;  %v1513_v8 = vmax.f32 %v1497_v59, 0.0  ;;  %v1499_v1 = vadd.f32 %v3391_v28, %v1476_v57 }
 0x331   : > { %2071 = vmatprep.mubr.msk.bf16.mxu0 %vm1071_vm6, %v1523_v55  ;;  %v1411_v63 = vadd.f32 %v3349_v30, %v1377_v13  ;;  %v1379_v58 = vpop.permute.xlu0 %1378 }
 0x332   : > { %v1524_v12 = vpack.c.bf16 %v1514_v56, %v1513_v8  ;;  %v1412_v18 = vadd.f32 %v1379_v58, %v3359_v9  ;;  %v1515_v45 = vmax.f32 %v1499_v1, 0.0 }
 0x334   : > { %v1443_v51 = vpop.permute.xlu1 %1442  ;;  %2072 = vmatmul.mubr.msk.bf16.gmra.mrb[20].mxu0 %vm1071_vm6, %v1524_v12 }
 0x335   : > { %v1477_v3 = vadd.f32 %v1443_v51, %v1411_v63  ;;  %v1445_v2 = vpop.permute.xlu0 %1444 }
 0x336   : > { %v1478_v53 = vadd.f32 %v1445_v2, %v1412_v18  ;;  %v2250_v2 = vld [vmem:[%s2513_s15 + $0x28] sm:$0xff]  }
 0x337   : > { %v1500_v62 = vadd.f32 %v3391_v28, %v1477_v3 }
 0x338   : > { %v1447_v29 = vpop.permute.xlu1 %1446  ;;  %v1501_v20 = vadd.f32 %v3391_v28, %v1478_v53 }
 0x339   : > { %v1516_v30 = vmax.f32 %v1500_v62, 0.0  ;;  %v1479_v22 = vadd.f32 %v1447_v29, %v1413_v60 }
 0x33a   : > { %v1517_v5 = vmax.f32 %v1501_v20, 0.0  ;;  %v1674_v20 = vunpack.c.h.bf16 %v2250_v2 }
 0x33b   : > { %v1525_v41 = vpack.c.bf16 %v1516_v30, %v1515_v45  ;;  %v1502_v35 = vadd.f32 %v3391_v28, %v1479_v22  ;;  %v1673_v45 = vunpack.c.l.bf16 %v2250_v2  ;;  %v2251_v22 = vld [vmem:[%s2513_s15 + $0x20] sm:$0xff]  }
 0x33c   : > { %v1671_v53 = vunpack.c.l.bf16 %v2251_v22 }
 0x33d   : > { %v1518_v48 = vmax.f32 %v1502_v35, 0.0  ;;  %2075 = vmatprep.mubr.msk.bf16.mxu0 %vm1071_vm6, %v1525_v41 }
 0x33f   : > { %v1526_v9 = vpack.c.bf16 %v1518_v48, %v1517_v5 }
 0x341   : > { %2076 = vmatmul.mubr.msk.bf16.gmra.mrb[24].mxu0 %vm1071_vm6, %v1526_v9  ;;  %v1672_v9 = vunpack.c.h.bf16 %v2251_v22 }
 0x3eb   : > { %v2065_v10 = vpop.f32.mrb[12].mxu0 }
 0x3ec   : > { %v1609_v14 = vadd.f32 %v2065_v10, %v3434_v19  ;;  %v1600_v28 = vpop.f32.mrb[13].mxu0 }
 0x3ed   : > { %v1601_v34 = vadd.f32 %v3434_v19, %v1600_v28  ;;  %v2066_v7 = vpop.f32.mrb[14].mxu0 }
 0x3ee   : > { %v1681_v27 = vadd.f32 %v1665_v25, %v1609_v14  ;;  %v1612_v0 = vadd.f32 %v2066_v7, %v3434_v19  ;;  %v1603_v46 = vpop.f32.mrb[15].mxu0 }
 0x3ef   : > { %v1679_v44 = vadd.f32 %v1663_v43, %v1601_v34  ;;  %v1604_v15 = vadd.f32 %v3434_v19, %v1603_v46 }
 0x3f0   : > { %v1697_v21 = vmax.f32 %v1681_v27, 0.0  ;;  %v1682_v32 = vadd.f32 %v1666_v33, %v1612_v0 }
 0x3f1   : > { %v1695_v37 = vmax.f32 %v1679_v44, 0.0  ;;  %v1680_v52 = vadd.f32 %v1664_v23, %v1604_v15  ;;  %v2252_v44 = vld [vmem:[%s2513_s15 + $0x38] sm:$0xff]  }
 0x3f2   : > { %v1961_v47 = vpack.c.bf16 %v1697_v21, %v1697_v21  ;;  %v1698_v26 = vmax.f32 %v1682_v32, 0.0  ;;  %v1677_v15 = vunpack.c.l.bf16 %v2252_v44  ;;  %v2253_v21 = vld [vmem:[%s2513_s15 + $0x30] sm:$0xff]   ;;  %v1678_v50 = vunpack.c.h.bf16 %v2252_v44  ;;  %s1807_s15 = sshll.u32 %s3446_s12, 4  ;;  %s3497_s15 = int_to_ptr.vmem [resolvable:$true] %s1807_s15 }
 0x3f3   : > { %v1959_v31 = vpack.c.bf16 %v1695_v37, %v1695_v37  ;;  %v1696_v38 = vmax.f32 %v1680_v52, 0.0  ;;  %v2069_v49 = vpop.f32.mrb[16].mxu0  ;;  %v1675_v32 = vunpack.c.l.bf16 %v2253_v21  ;;  %s2284_s8 = scalar_lea.vmem %s3497_s15, 1024  ;;  %p2291_p8 = scmp.lt.s32.totalorder %s3497_s15, %s2289_s18 }
 0x3f4   : > { %1778 = vst.msk [vmem:[%s3446_s12 + $0x8] sm:$0xf] %vm1775_vm12, %v1961_v47  ;;  %v1962_v54 = vpack.c.bf16 %v1698_v26, %v1698_v26  ;;  %v1625_v6 = vadd.f32 %v2069_v49, %v3434_v19  ;;  %v1616_v17 = vpop.f32.mrb[17].mxu0  ;;  %p2285_p6 = scmp.ne.s32.totalorder %s3497_s15, %s2284_s8  ;;  %p2292_p10 = scmp.lt.s32.totalorder %s2290_s20, %s2284_s8 }
 0x3f5   : > { %1776 = vst.msk [vmem:[%s3446_s12] sm:$0xf] %vm1775_vm12, %v1959_v31  ;;  %v1960_v61 = vpack.c.bf16 %v1696_v38, %v1696_v38  ;;  %v1617_v55 = vadd.f32 %v3434_v19, %v1616_v17  ;;  %v2070_v11 = vpop.f32.mrb[18].mxu0 }
 0x3f6   : > { %1779 = vst.msk [vmem:[%s3446_s12 + $0xc] sm:$0xf] %vm1775_vm12, %v1962_v54  ;;  %v1685_v13 = vadd.f32 %v1669_v4, %v1625_v6  ;;  %v1628_v59 = vadd.f32 %v2070_v11, %v3434_v19  ;;  %v1619_v57 = vpop.f32.mrb[19].mxu0  ;;  %v1676_v4 = vunpack.c.h.bf16 %v2253_v21  ;;  %p2286_p12 = pnand %p2285_p6, %p3710_p11  ;;  %p2293_p0 = por %p2292_p10, %p2291_p8 }
 0x3f7   : > { %1777 = vst.msk [vmem:[%s3446_s12 + $0x4] sm:$0xf] %vm1775_vm12, %v1960_v61  ;;  %v1683_v56 = vadd.f32 %v1667_v39, %v1617_v55  ;;  %v1620_v8 = vadd.f32 %v3434_v19, %v1619_v57 }
 0x3f8   : > { %v1701_v63 = vmax.f32 %v1685_v13, 0.0  ;;  %v1686_v51 = vadd.f32 %v1670_v16, %v1628_v59  ;;  %p2287_p13 = pneg %p2286_p12 }
 0x3f9   : > { %v1699_v58 = vmax.f32 %v1683_v56, 0.0  ;;  %v1684_v12 = vadd.f32 %v1668_v24, %v1620_v8 }
 0x3fa   : > { %v1965_v1 = vpack.c.bf16 %v1701_v63, %v1701_v63  ;;  %v1702_v3 = vmax.f32 %v1686_v51, 0.0  ;;  %p2294_p2 = pnand %p2293_p0, %p2287_p13 }
 0x3fb   : > { %v1963_v60 = vpack.c.bf16 %v1699_v58, %v1699_v58  ;;  %v1700_v62 = vmax.f32 %v1684_v12, 0.0 }
 0x3fc   : > { %1782 = vst.msk [vmem:[%s3446_s12 + $0x18] sm:$0xf] %vm1775_vm12, %v1965_v1  ;;  %v1966_v18 = vpack.c.bf16 %v1702_v3, %v1702_v3 }
 0x3fd   : > { %1780 = vst.msk [vmem:[%s3446_s12 + $0x10] sm:$0xf] %vm1775_vm12, %v1963_v60  ;;  %v1964_v29 = vpack.c.bf16 %v1700_v62, %v1700_v62 }
 0x3fe   : > { %1783 = vst.msk [vmem:[%s3446_s12 + $0x1c] sm:$0xf] %vm1775_vm12, %v1966_v18 }
 0x3ff   : > { %1781 = vst.msk [vmem:[%s3446_s12 + $0x14] sm:$0xf] %vm1775_vm12, %v1964_v29 }
 0x407   : > { %v2073_v30 = vpop.f32.mrb[20].mxu0 }
 0x408   : > { %v1641_v41 = vadd.f32 %v2073_v30, %v3434_v19  ;;  %v1632_v35 = vpop.f32.mrb[21].mxu0 }
 0x409   : > { %v1633_v48 = vadd.f32 %v3434_v19, %v1632_v35  ;;  %v2074_v5 = vpop.f32.mrb[22].mxu0 }
 0x40a   : > { %v1689_v42 = vadd.f32 %v1673_v45, %v1641_v41  ;;  %v1644_v25 = vadd.f32 %v2074_v5, %v3434_v19  ;;  %v1635_v40 = vpop.f32.mrb[23].mxu0 }
 0x40b   : > { %v1687_v43 = vadd.f32 %v1671_v53, %v1633_v48  ;;  %v1636_v10 = vadd.f32 %v3434_v19, %v1635_v40 }
 0x40c   : > { %v1705_v14 = vmax.f32 %v1689_v42, 0.0  ;;  %v1690_v28 = vadd.f32 %v1674_v20, %v1644_v25 }
 0x40d   : > { %v1703_v33 = vmax.f32 %v1687_v43, 0.0  ;;  %v1688_v23 = vadd.f32 %v1672_v9, %v1636_v10 }
 0x40e   : > { %v1969_v34 = vpack.c.bf16 %v1705_v14, %v1705_v14  ;;  %v1706_v7 = vmax.f32 %v1690_v28, 0.0 }
 0x40f   : > { %v1967_v27 = vpack.c.bf16 %v1703_v33, %v1703_v33  ;;  %v1704_v0 = vmax.f32 %v1688_v23, 0.0 }
 0x410   : > { %1786 = vst.msk [vmem:[%s3446_s12 + $0x28] sm:$0xf] %vm1775_vm12, %v1969_v34  ;;  %v1970_v46 = vpack.c.bf16 %v1706_v7, %v1706_v7 }
 0x411   : > { %1784 = vst.msk [vmem:[%s3446_s12 + $0x20] sm:$0xf] %vm1775_vm12, %v1967_v27  ;;  %v1968_v37 = vpack.c.bf16 %v1704_v0, %v1704_v0 }
 0x412   : > { %1787 = vst.msk [vmem:[%s3446_s12 + $0x2c] sm:$0xf] %vm1775_vm12, %v1970_v46 }
 0x413   : > { %1785 = vst.msk [vmem:[%s3446_s12 + $0x24] sm:$0xf] %vm1775_vm12, %v1968_v37 }
 0x414   : > { %v2077_v52 = vpop.f32.mrb[24].mxu0 }
 0x415   : > { %v1657_v47 = vadd.f32 %v2077_v52, %v3434_v19  ;;  %v1648_v26 = vpop.f32.mrb[25].mxu0 }
 0x416   : > { %v1649_v31 = vadd.f32 %v3434_v19, %v1648_v26  ;;  %v2078_v38 = vpop.f32.mrb[26].mxu0 }
 0x417   : > { %v1693_v49 = vadd.f32 %v1677_v15, %v1657_v47  ;;  %v1660_v36 = vadd.f32 %v2078_v38, %v3434_v19  ;;  %v1651_v39 = vpop.f32.mrb[27].mxu0 }
 0x418   : > { %v1691_v54 = vadd.f32 %v1675_v32, %v1649_v31  ;;  %v1652_v6 = vadd.f32 %v3434_v19, %v1651_v39 }
 0x419   : > { %v1709_v17 = vmax.f32 %v1693_v49, 0.0  ;;  %v1694_v16 = vadd.f32 %v1678_v50, %v1660_v36 }
 0x41a   : > { %v1707_v61 = vmax.f32 %v1691_v54, 0.0  ;;  %v1692_v55 = vadd.f32 %v1676_v4, %v1652_v6 }
 0x41b   : > { %v1973_v11 = vpack.c.bf16 %v1709_v17, %v1709_v17  ;;  %v1710_v24 = vmax.f32 %v1694_v16, 0.0 }
 0x41c   : > { %v1971_v13 = vpack.c.bf16 %v1707_v61, %v1707_v61  ;;  %v1708_v59 = vmax.f32 %v1692_v55, 0.0 }
 0x41d   : > { %1790 = vst.msk [vmem:[%s3446_s12 + $0x38] sm:$0xf] %vm1775_vm12, %v1973_v11  ;;  %v1974_v57 = vpack.c.bf16 %v1710_v24, %v1710_v24 }
 0x41e   : > { %1788 = vst.msk [vmem:[%s3446_s12 + $0x30] sm:$0xf] %vm1775_vm12, %v1971_v13  ;;  %v1972_v19 = vpack.c.bf16 %v1708_v59, %v1708_v59 }
 0x41f   : > { %1791 = vst.msk [vmem:[%s3446_s12 + $0x3c] sm:$0xf] %vm1775_vm12, %v1974_v57 }
 0x420   : > { %1789 = vst.msk [vmem:[%s3446_s12 + $0x34] sm:$0xf] %vm1775_vm12, %v1972_v19 }
 0x421   : > { %2297 = shalt.err (!%p2294_p2)
}
 0x422   : > { %s2298_s22 = scalar_lea.hbm %s3495_s9, 1024  ;;  %s2302_s12 = scalar_lea.hbm %s3554_s7, 2048 }
 0x423   : > { %p2299_p4 = scmp.ne.s32.totalorder %s3495_s9, %s2298_s22  ;;  %p2303_p9 = scmp.lt.u32.totalorder %s3495_s9, %s3554_s7 }
 0x424   : > { %p2304_p1 = scmp.lt.u32.totalorder %s2302_s12, %s2298_s22  ;;  %p2306_p6 = scmp.lt.u32.totalorder %s2298_s22, %s3495_s9 }
 0x425   : > { %p2300_p5 = pnand %p2299_p4, %p3710_p11 }
 0x426   : > { %p2305_p3 = por %p2304_p1, %p2303_p9 }
 0x427   : > { %p2301_p7 = pneg %p2300_p5 }
 0x428   : > { %p2307_p12 = por %p2306_p6, %p2305_p3 }
 0x42a   : > { %p2308_p13 = pnand %p2307_p12, %p2301_p7 }
 0x42c   : > { %2311 = shalt.err (!%p2308_p13)
}
 0x42d   : > { %s2361_s21 = smov 64   ;;  %s2362_s8 = smov 4  }
 0x42e   : > { %2089 = dma.vmem_to_hbm [thread:$0]  (%p3710_p11), %s3497_s15, 1024, %s3495_s9, %s1793_s28, %s2361_s21, %s2361_s21, %s2362_s8  }
 0x42f PF: > { %s1822_s11 = sand.u32 1, %s2338_s24   ;;  %p3711_p8 = scmp.ne.s32.totalorder %s3579_s14, 0 }
 0x430   : > { %p3712_p10 = scmp.ge.s32.totalorder %s2350_s27, 2  ;;  %s1823_s18 = scalar_lea.sflag [#allocation5], %s1822_s11 }
 0x432   : > { %p2096_p0 = pnand %p3712_p10, %p3711_p8 }
 0x434   : > { %2333 = dma.done.wait (!%p2096_p0), %s1823_s18, 1024  }
 0x435   : > { %2335 = vsyncadd (!%p2096_p0), %s1823_s18, 4294966272  ;;  %p20_p2 = scmp.ge.s32.totalorder %s2428_s30, 4   ;;  %s3713_s24 = smov %s2342_s25 }
 0x436   : > { %s3714_s25 = smov %s2346_s26  ;;  %s3715_s26 = smov %s2440_s10 }
 0x437   : > { %s3716_s27 = smov %s2428_s30  ;;  %22 = sbr.rel (!%p20_p2) target bundleno = 5 (0x5), region = 93 }
 0x43e   :  { %1828 = vsyncpa [#allocation4], 1 }
 0x43f   :  { %1830 = vsyncpa [#allocation4 + $0x1], 1 }
 0x440   :  { %1831 = vsyncpa [#allocation5], 1 }
 0x441   :  { %1833 = vsyncpa [#allocation5 + $0x1], 1 }

</bundles_post_ra>
